<compile_context>
chip_gen: v6e
topology: v6e:2x2x1
jax: 0.10.0
libtpu: 0.0.40
codegen_flags: <defaults>
</compile_context>

<pallas_src>
import jax
import jax.numpy as jnp
import numpy as np
from jax.experimental import pallas as pl
from jax.experimental.pallas import tpu as pltpu

# ---- small, module-consistent configuration -------------------------------
N_FINE = 8                    # PyTorch: 50
N_VARS = 1
D_STATE = N_FINE * N_FINE * N_VARS          # input_dim - 1 = 64
INPUT_DIM = D_STATE + 1                     # 65
HIDDEN = 32                   # PyTorch: 2048
D_MODEL = 32                  # PyTorch: 512
NHEAD = 4                     # head dim irrelevant for seq_len = 1
DFF = 64                      # PyTorch TransformerEncoderLayer default: 2048
NUM_ENC_LAYERS = 2            # transformer_num_layers
T_STEPS = 5                   # number of time points fed to the Euler solver
BATCH = 1                     # the only batch size the PyTorch forward supports

LANE = 128                    # lane width of a vreg / output slab
OUT_ROWS = 8                  # T_STEPS padded to a full sublane tile

# ---- packed-parameter layout ------------------------------------------------
# Weight slab (W_ROWS, 128): each block has its TRUE K rows and full-128 columns
# (unused columns are zero), so every in-kernel weight operand is a full-lane,
# natural-layout load.
W_A_OFF = 0                                   # fused input projection
W_A_K = D_STATE + 8                           # [y | t | 1 | pad]  -> 72 rows
#   rows 0..63 : cols 0..31 = wey      | cols 32..63 = w1y
#   row  64    : cols 0..31 = wet      | cols 32..63 = w1t
#   row  65    : cols 0..31 = be + pe0 | cols 32..63 = b1
W_B2_OFF = W_A_OFF + W_A_K                    # w2          (32 rows, cols 0..31)
W_L_OFF = W_B2_OFF + HIDDEN                   # encoder layers
W_L_STRIDE = D_MODEL + D_MODEL + DFF          # (I+wv@wo)(32) + wf1(32) + wf2(64)
W_DEC_OFF = W_L_OFF + NUM_ENC_LAYERS * W_L_STRIDE   # stacked [w3[:, :D]; wd[:, :D]]
DEC_K = HIDDEN + D_MODEL                      # 64 rows
W_ROWS = W_DEC_OFF + DEC_K                    # 424 (multiple of 8)

# Bias slab (B_ROWS, 128): one (1, width) row vector per row.  Most biases are
# folded into the weight slab; only the non-foldable ones remain.
B_DEC = 0                                     # b3[:, :D] + bd[:, :D]
B_B2 = 1                                      # b2
B_L0 = 2                                      # per layer: bvo, g1, bt1, bf1, bf2, g2, bt2
B_L_STRIDE = 7
B_ROWS = 16                                   # 16 rows (2 + 14 used)


# ---- shared math ------------------------------------------------------------
def _softplus(x):
    # numerically-stable softplus, matches nn.Softplus below its linear threshold
    return jnp.maximum(x, 0.0) + jnp.log(1.0 + jnp.exp(-jnp.abs(x)))


def _layer_norm(x, g, b, eps=1e-5):
    m = jnp.mean(x, axis=-1, keepdims=True)
    v = jnp.mean(jnp.square(x - m), axis=-1, keepdims=True)
    return (x - m) * jax.lax.rsqrt(v + eps) * g + b


# ---- Pallas kernel: whole Euler rollout -------------------------------------
def neural_ode_kernel(t_ref, y0_ref, w_ref, b_ref, out_ref):
    f32 = jnp.float32
    dot = lambda a, b: jnp.dot(a, b, preferred_element_type=f32)

    # -------- hoisted loop invariants (defined once, live across the unroll) --
    dt = t_ref[1] - t_ref[0]          # basic_euler_ode_solver: single constant dt
    lane = jax.lax.broadcasted_iota(jnp.int32, (1, LANE), 1)
    e_t = (lane == D_STATE).astype(f32)        # one-hot "time" lane (64)
    e_c = (lane == D_STATE + 1).astype(f32)    # one-hot "constant 1" lane (65)

    # Non-foldable bias rows, hoisted once out of the Euler loop.
    b2 = b_ref[B_B2:B_B2 + 1, :HIDDEN]
    b_dec = b_ref[B_DEC:B_DEC + 1, :]          # full row: lanes >= D_STATE are 0
    enc = []
    for l in range(NUM_ENC_LAYERS):
        bb = B_L0 + l * B_L_STRIDE
        enc.append(dict(
            bvo=b_ref[bb + 0:bb + 1, :D_MODEL],
            g1=b_ref[bb + 1:bb + 2, :D_MODEL],
            bt1=b_ref[bb + 2:bb + 3, :D_MODEL],
            bf1=b_ref[bb + 3:bb + 4, :DFF],
            bf2=b_ref[bb + 4:bb + 5, :D_MODEL],
            g2=b_ref[bb + 5:bb + 6, :D_MODEL],
            bt2=b_ref[bb + 6:bb + 7, :D_MODEL]))

    def ode_func(t_i, y):
        # y: (1, 128) with lanes D_STATE..127 exactly 0
        # Augmented LHS [y | t_i | 1]: folds w1t/wet and b1/(be+pe0) into one dot.
        y_aug = (y + t_i * e_t + e_c)[:, :W_A_K]                    # (1, 72)
        yproj = dot(y_aug, w_ref[W_A_OFF:W_A_OFF + W_A_K, :])       # (1, 128)
        x = yproj[:, :D_MODEL]                        # encoder input (lanes 0..31)
        y_mlp = yproj[:, D_MODEL:D_MODEL + HIDDEN]    # MLP pre-tanh (lanes 32..63)

        # --- MLP branch: Tanh -> Linear -> Softplus (short, off critical path) --
        h = jnp.tanh(y_mlp)
        h = dot(h, w_ref[W_B2_OFF:W_B2_OFF + HIDDEN, :])[:, :HIDDEN] + b2
        h = _softplus(h)

        # --- Transformer encoder, seq_len == 1 ----------------------------------
        # attention + residual folded into one weight: x @ (I + wv@wo) + bvo
        for l in range(NUM_ENC_LAYERS):
            wb = W_L_OFF + l * W_L_STRIDE
            bl = enc[l]
            a = dot(x, w_ref[wb:wb + D_MODEL, :])[:, :D_MODEL] + bl['bvo']
            x = _layer_norm(a, bl['g1'], bl['bt1'])
            f = dot(x, w_ref[wb + D_MODEL:wb + 2 * D_MODEL, :])[:, :DFF] + bl['bf1']
            f = jnp.maximum(f, 0.0)
            f = (dot(f, w_ref[wb + 2 * D_MODEL:wb + 2 * D_MODEL + DFF, :])[:, :D_MODEL]
                 + bl['bf2'])
            x = _layer_norm(x + f, bl['g2'], bl['bt2'])

        # --- fused decoder: [h | x] @ [[w3[:, :D]]; [wd[:, :D]]] + (b3 + bd) ----
        dec_in = jnp.concatenate([h, x], axis=-1)                   # (1, 64)
        deriv = dot(dec_in, w_ref[W_DEC_OFF:W_DEC_OFF + DEC_K, :]) + b_dec
        return deriv                                  # (1, 128); lanes >= 64 are 0

    # gu_update_func is None -> gu == 0; y <- y + func(t_i, y) * dt
    y = y0_ref[...]                                   # (1, 128), zero-padded state
    rows = [y]
    for i in range(T_STEPS - 1):                      # statically unrolled Euler
        y = y + ode_func(t_ref[i], y) * dt
        rows.append(y)
    rows.append(jnp.zeros((OUT_ROWS - T_STEPS, LANE), f32))
    out_ref[...] = jnp.concatenate(rows, axis=0)      # single dense (8,128) store


def neural_ode_forward(y0, t, w_slab, b_slab):
    """NeuralODE.forward(y0, t) -> (B, T, input_dim - 1), B == 1."""
    # Pad the state to a full 128-lane row so every in-kernel row is lane-dense.
    y0p = jnp.zeros((BATCH, LANE), jnp.float32).at[:, :D_STATE].set(y0)
    out = pl.pallas_call(
        neural_ode_kernel,
        out_shape=jax.ShapeDtypeStruct((OUT_ROWS, LANE), jnp.float32),
        in_specs=[
            pl.BlockSpec(memory_space=pltpu.MemorySpace.SMEM),   # t (scalars)
            pl.BlockSpec(memory_space=pltpu.MemorySpace.VMEM),   # y0 (padded)
            pl.BlockSpec(memory_space=pltpu.MemorySpace.VMEM),   # packed weights
            pl.BlockSpec(memory_space=pltpu.MemorySpace.VMEM),   # packed biases
        ],
        out_specs=pl.BlockSpec(memory_space=pltpu.MemorySpace.VMEM),
    )(t, y0p, w_slab, b_slab)
    # torch.stack(ys) is (T, 1, D); .view(-1, T, D) -> (1, T, D)
    return out[:T_STEPS, :D_STATE].reshape(BATCH, T_STEPS, D_STATE)


# ---- deterministic parameter initialization (logical / unfused layout) ------
def init_params(key):
    keys = iter(jax.random.split(key, 64))

    def w(shape, scale=0.05):
        return jax.random.normal(next(keys), shape, jnp.float32) * scale

    params = []
    # MLP: Linear(INPUT_DIM, HIDDEN) split into time-row / state-rows
    W1 = w((INPUT_DIM, HIDDEN))
    params += [W1[:1, :], W1[1:, :], w((1, HIDDEN))]          # w1t, w1y, b1
    params += [w((HIDDEN, HIDDEN)), w((1, HIDDEN))]           # w2, b2
    params += [w((HIDDEN, INPUT_DIM)), w((1, INPUT_DIM))]     # w3, b3

    # Transformer embedding: Linear(INPUT_DIM, D_MODEL), split the same way
    We = w((INPUT_DIM, D_MODEL))
    params += [We[:1, :], We[1:, :], w((1, D_MODEL))]         # wet, wey, be

    # Positional encoding row 0: sin(0)=0 on even dims, cos(0)=1 on odd dims
    pe0 = jnp.zeros((1, D_MODEL), jnp.float32).at[0, 1::2].set(1.0)
    params += [pe0]

    # Encoder layers (post-norm, ReLU feed-forward, dropout == identity)
    for _ in range(NUM_ENC_LAYERS):
        params += [
            w((D_MODEL, D_MODEL)), w((1, D_MODEL)),           # V projection (in_proj V-slice)
            w((D_MODEL, D_MODEL)), w((1, D_MODEL)),           # attention out_proj
            jnp.ones((1, D_MODEL), jnp.float32), jnp.zeros((1, D_MODEL), jnp.float32),  # norm1
            w((D_MODEL, DFF)), w((1, DFF)),                   # linear1
            w((DFF, D_MODEL)), w((1, D_MODEL)),               # linear2
            jnp.ones((1, D_MODEL), jnp.float32), jnp.zeros((1, D_MODEL), jnp.float32),  # norm2
        ]

    # Transformer decoder: Linear(D_MODEL, INPUT_DIM)
    params += [w((D_MODEL, INPUT_DIM)), w((1, INPUT_DIM))]    # wd, bd
    return params


# ---- pack + algebraically fold parameters into the two VMEM slabs -----------
def pack_params(params):
    (w1t, w1y, b1, w2, b2, w3, b3, wet, wey, be, pe0) = params[:11]
    wd, bd = params[-2], params[-1]

    W = jnp.zeros((W_ROWS, LANE), jnp.float32)
    # Block A: [y | t | 1] @ A -> [encoder_pre (cols 0..31) | mlp_pre (cols 32..63)]
    W = W.at[W_A_OFF:W_A_OFF + D_STATE, :D_MODEL].set(wey)
    W = W.at[W_A_OFF:W_A_OFF + D_STATE, D_MODEL:D_MODEL + HIDDEN].set(w1y)
    W = W.at[W_A_OFF + D_STATE, :D_MODEL].set(wet[0])
    W = W.at[W_A_OFF + D_STATE, D_MODEL:D_MODEL + HIDDEN].set(w1t[0])
    W = W.at[W_A_OFF + D_STATE + 1, :D_MODEL].set(be[0] + pe0[0])
    W = W.at[W_A_OFF + D_STATE + 1, D_MODEL:D_MODEL + HIDDEN].set(b1[0])
    # Block B: w2
    W = W.at[W_B2_OFF:W_B2_OFF + HIDDEN, :HIDDEN].set(w2)

    B = jnp.zeros((B_ROWS, LANE), jnp.float32)
    B = B.at[B_B2, :HIDDEN].set(b2[0])
    B = B.at[B_DEC, :D_STATE].set(b3[0, :D_STATE] + bd[0, :D_STATE])

    off = 11
    for l in range(NUM_ENC_LAYERS):
        (wv, bv, wo, bo, g1, bt1, wf1, bf1, wf2, bf2, g2, bt2) = params[off:off + 12]
        off += 12
        wvo = jnp.eye(D_MODEL, dtype=jnp.float32) + wv @ wo   # seq_len==1 attn + residual fold
        bvo = bv @ wo + bo
        wb = W_L_OFF + l * W_L_STRIDE
        W = W.at[wb:wb + D_MODEL, :D_MODEL].set(wvo)
        W = W.at[wb + D_MODEL:wb + 2 * D_MODEL, :DFF].set(wf1)
        W = W.at[wb + 2 * D_MODEL:wb + 2 * D_MODEL + DFF, :D_MODEL].set(wf2)
        bb = B_L0 + l * B_L_STRIDE
        B = B.at[bb + 0, :D_MODEL].set(bvo[0])
        B = B.at[bb + 1, :D_MODEL].set(g1[0])
        B = B.at[bb + 2, :D_MODEL].set(bt1[0])
        B = B.at[bb + 3, :DFF].set(bf1[0])
        B = B.at[bb + 4, :D_MODEL].set(bf2[0])
        B = B.at[bb + 5, :D_MODEL].set(g2[0])
        B = B.at[bb + 6, :D_MODEL].set(bt2[0])

    # Block D: stacked decoder [w3[:, :D]; wd[:, :D]]
    W = W.at[W_DEC_OFF:W_DEC_OFF + HIDDEN, :D_STATE].set(w3[:, :D_STATE])
    W = W.at[W_DEC_OFF + HIDDEN:W_DEC_OFF + HIDDEN + D_MODEL, :D_STATE].set(wd[:, :D_STATE])
    return W, B


# ---- pure-JAX reference (original unfused math; validates the folds) --------
def _ode_func_ref(t_i, y, P):
    f32 = jnp.float32
    (w1t, w1y, b1, w2, b2, w3, b3, wet, wey, be, pe0) = P[:11]
    wd, bd = P[-2], P[-1]

    h = jnp.tanh(t_i * w1t + jnp.dot(y, w1y, preferred_element_type=f32) + b1)
    h = _softplus(jnp.dot(h, w2, preferred_element_type=f32) + b2)
    mlp_out = jnp.dot(h, w3, preferred_element_type=f32) + b3
    y1 = mlp_out[:, :D_STATE]

    x = t_i * wet + jnp.dot(y, wey, preferred_element_type=f32) + be + pe0
    off = 11
    for _ in range(NUM_ENC_LAYERS):
        (wv, bv, wo, bo, g1, bt1, wf1, bf1, wf2, bf2, g2, bt2) = P[off:off + 12]
        off += 12
        v = jnp.dot(x, wv, preferred_element_type=f32) + bv
        attn = jnp.dot(v, wo, preferred_element_type=f32) + bo
        x = _layer_norm(x + attn, g1, bt1)
        ff = jnp.dot(
            jnp.maximum(jnp.dot(x, wf1, preferred_element_type=f32) + bf1, 0.0),
            wf2, preferred_element_type=f32) + bf2
        x = _layer_norm(x + ff, g2, bt2)
    dec = jnp.dot(x, wd, preferred_element_type=f32) + bd
    y2 = dec[:, :D_STATE]
    return y1 + y2


def reference_forward(y0, t, params):
    dt = t[1] - t[0]            # matches basic_euler_ode_solver (single constant dt)
    y = y0
    ys = [y0]
    for i in range(T_STEPS - 1):
        y = y + _ode_func_ref(t[i], y, params) * dt
        ys.append(y)
    out = jnp.stack(ys)                       # (T, 1, D)
    return out.reshape(BATCH, T_STEPS, D_STATE)


if __name__ == "__main__":
    key = jax.random.PRNGKey(0)
    kp, ky = jax.random.split(key)
    params = init_params(kp)
    w_slab, b_slab = pack_params(params)

    y0 = jax.random.normal(ky, (BATCH, D_STATE), jnp.float32) * 0.1
    t = jnp.linspace(0.0, 0.4, T_STEPS).astype(jnp.float32)

    out = neural_ode_forward(y0, t, w_slab, b_slab)
    out = jax.block_until_ready(out)

    ref = reference_forward(y0, t, params)
    np.testing.assert_allclose(np.asarray(out), np.asarray(ref), rtol=1e-2, atol=1e-2)

    print("KERNEL_OK")
</pallas_src>

<mosaic_0001>
module attributes {stable_mosaic.version = 11 : i64} {
  func.func @neural_ode_kernel(%arg0: memref<5xf32, #tpu.memory_space<smem>>, %arg1: memref<1x128xf32, #tpu.memory_space<vmem>>, %arg2: memref<424x128xf32, #tpu.memory_space<vmem>>, %arg3: memref<16x128xf32, #tpu.memory_space<vmem>>, %arg4: memref<8x128xf32, #tpu.memory_space<vmem>>) attributes {dimension_semantics = [], scalar_prefetch = 0 : i64, scratch_operands = 0 : i64, tpu.core_type = #tpu.core_type<tc>} {
    %c1 = arith.constant 1 : index
    %0 = memref.load %arg0[%c1] : memref<5xf32, #tpu.memory_space<smem>>
    %c0 = arith.constant 0 : index
    %1 = memref.load %arg0[%c0] : memref<5xf32, #tpu.memory_space<smem>>
    %2 = arith.subf %0, %1 : f32
    %3 = tpu.iota {dimensions = array<i32: 1>} : vector<1x128xi32>
    %c64_i32 = arith.constant 64 : i32
    %4 = vector.broadcast %c64_i32 : i32 to vector<1x128xi32>
    %5 = arith.cmpi eq, %3, %4 : vector<1x128xi32>
    %6 = arith.extui %5 : vector<1x128xi1> to vector<1x128xi32>
    %7 = arith.sitofp %6 : vector<1x128xi32> to vector<1x128xf32>
    %c65_i32 = arith.constant 65 : i32
    %8 = vector.broadcast %c65_i32 : i32 to vector<1x128xi32>
    %9 = arith.cmpi eq, %3, %8 : vector<1x128xi32>
    %10 = arith.extui %9 : vector<1x128xi1> to vector<1x128xi32>
    %11 = arith.sitofp %10 : vector<1x128xi32> to vector<1x128xf32>
    %c1_0 = arith.constant 1 : index
    %c0_1 = arith.constant 0 : index
    %12 = vector.load %arg3[%c1_0, %c0_1] : memref<16x128xf32, #tpu.memory_space<vmem>>, vector<1x32xf32>
    %c0_2 = arith.constant 0 : index
    %c0_3 = arith.constant 0 : index
    %13 = vector.load %arg3[%c0_2, %c0_3] : memref<16x128xf32, #tpu.memory_space<vmem>>, vector<1x128xf32>
    %c2 = arith.constant 2 : index
    %c0_4 = arith.constant 0 : index
    %14 = vector.load %arg3[%c2, %c0_4] : memref<16x128xf32, #tpu.memory_space<vmem>>, vector<1x32xf32>
    %c3 = arith.constant 3 : index
    %c0_5 = arith.constant 0 : index
    %15 = vector.load %arg3[%c3, %c0_5] : memref<16x128xf32, #tpu.memory_space<vmem>>, vector<1x32xf32>
    %c4 = arith.constant 4 : index
    %c0_6 = arith.constant 0 : index
    %16 = vector.load %arg3[%c4, %c0_6] : memref<16x128xf32, #tpu.memory_space<vmem>>, vector<1x32xf32>
    %c5 = arith.constant 5 : index
    %c0_7 = arith.constant 0 : index
    %17 = vector.load %arg3[%c5, %c0_7] : memref<16x128xf32, #tpu.memory_space<vmem>>, vector<1x64xf32>
    %c6 = arith.constant 6 : index
    %c0_8 = arith.constant 0 : index
    %18 = vector.load %arg3[%c6, %c0_8] : memref<16x128xf32, #tpu.memory_space<vmem>>, vector<1x32xf32>
    %c7 = arith.constant 7 : index
    %c0_9 = arith.constant 0 : index
    %19 = vector.load %arg3[%c7, %c0_9] : memref<16x128xf32, #tpu.memory_space<vmem>>, vector<1x32xf32>
    %c8 = arith.constant 8 : index
    %c0_10 = arith.constant 0 : index
    %20 = vector.load %arg3[%c8, %c0_10] : memref<16x128xf32, #tpu.memory_space<vmem>>, vector<1x32xf32>
    %c9 = arith.constant 9 : index
    %c0_11 = arith.constant 0 : index
    %21 = vector.load %arg3[%c9, %c0_11] : memref<16x128xf32, #tpu.memory_space<vmem>>, vector<1x32xf32>
    %c10 = arith.constant 10 : index
    %c0_12 = arith.constant 0 : index
    %22 = vector.load %arg3[%c10, %c0_12] : memref<16x128xf32, #tpu.memory_space<vmem>>, vector<1x32xf32>
    %c11 = arith.constant 11 : index
    %c0_13 = arith.constant 0 : index
    %23 = vector.load %arg3[%c11, %c0_13] : memref<16x128xf32, #tpu.memory_space<vmem>>, vector<1x32xf32>
    %c12 = arith.constant 12 : index
    %c0_14 = arith.constant 0 : index
    %24 = vector.load %arg3[%c12, %c0_14] : memref<16x128xf32, #tpu.memory_space<vmem>>, vector<1x64xf32>
    %c13 = arith.constant 13 : index
    %c0_15 = arith.constant 0 : index
    %25 = vector.load %arg3[%c13, %c0_15] : memref<16x128xf32, #tpu.memory_space<vmem>>, vector<1x32xf32>
    %c14 = arith.constant 14 : index
    %c0_16 = arith.constant 0 : index
    %26 = vector.load %arg3[%c14, %c0_16] : memref<16x128xf32, #tpu.memory_space<vmem>>, vector<1x32xf32>
    %c15 = arith.constant 15 : index
    %c0_17 = arith.constant 0 : index
    %27 = vector.load %arg3[%c15, %c0_17] : memref<16x128xf32, #tpu.memory_space<vmem>>, vector<1x32xf32>
    %c0_18 = arith.constant 0 : index
    %c0_19 = arith.constant 0 : index
    %28 = vector.load %arg1[%c0_18, %c0_19] : memref<1x128xf32, #tpu.memory_space<vmem>>, vector<1x128xf32>
    %c0_20 = arith.constant 0 : index
    %29 = memref.load %arg0[%c0_20] : memref<5xf32, #tpu.memory_space<smem>>
    %30 = vector.broadcast %29 : f32 to vector<1x128xf32>
    %31 = arith.mulf %30, %7 : vector<1x128xf32>
    %32 = arith.addf %28, %31 : vector<1x128xf32>
    %33 = arith.addf %32, %11 : vector<1x128xf32>
    %34 = vector.extract_strided_slice %33 {offsets = [0, 0], sizes = [1, 72], strides = [1, 1]} : vector<1x128xf32> to vector<1x72xf32>
    %c0_21 = arith.constant 0 : index
    %c0_22 = arith.constant 0 : index
    %35 = vector.load %arg2[%c0_21, %c0_22] : memref<424x128xf32, #tpu.memory_space<vmem>>, vector<72x128xf32>
    %cst = arith.constant dense<0.000000e+00> : vector<1x128xf32>
    %36 = tpu.matmul %34, %35, %cst {dimension_numbers = #tpu.dot_dimension_numbers<[1], [0], [0], [1], [0, 0, 1, 1], [], []>} : vector<1x72xf32>, vector<72x128xf32>, vector<1x128xf32> -> vector<1x128xf32>
    %37 = vector.extract_strided_slice %36 {offsets = [0, 0], sizes = [1, 32], strides = [1, 1]} : vector<1x128xf32> to vector<1x32xf32>
    %38 = vector.extract_strided_slice %36 {offsets = [0, 32], sizes = [1, 32], strides = [1, 1]} : vector<1x128xf32> to vector<1x32xf32>
    %39 = math.tanh %38 : vector<1x32xf32>
    %c72 = arith.constant 72 : index
    %c0_23 = arith.constant 0 : index
    %40 = vector.load %arg2[%c72, %c0_23] : memref<424x128xf32, #tpu.memory_space<vmem>>, vector<32x128xf32>
    %cst_24 = arith.constant dense<0.000000e+00> : vector<1x128xf32>
    %41 = tpu.matmul %39, %40, %cst_24 {dimension_numbers = #tpu.dot_dimension_numbers<[1], [0], [0], [1], [0, 0, 1, 1], [], []>} : vector<1x32xf32>, vector<32x128xf32>, vector<1x128xf32> -> vector<1x128xf32>
    %42 = vector.extract_strided_slice %41 {offsets = [0, 0], sizes = [1, 32], strides = [1, 1]} : vector<1x128xf32> to vector<1x32xf32>
    %43 = arith.addf %42, %12 : vector<1x32xf32>
    %cst_25 = arith.constant 0.000000e+00 : f32
    %44 = vector.broadcast %cst_25 : f32 to vector<1x32xf32>
    %45 = arith.maximumf %43, %44 : vector<1x32xf32>
    %46 = math.absf %43 : vector<1x32xf32>
    %cst_26 = arith.constant 0.000000e+00 : f32
    %47 = vector.broadcast %cst_26 : f32 to vector<1x32xf32>
    %48 = arith.subf %47, %46 : vector<1x32xf32>
    %49 = math.exp %48 : vector<1x32xf32>
    %cst_27 = arith.constant 1.000000e+00 : f32
    %50 = vector.broadcast %cst_27 : f32 to vector<1x32xf32>
    %51 = arith.addf %50, %49 : vector<1x32xf32>
    %52 = math.log %51 : vector<1x32xf32>
    %53 = arith.addf %45, %52 : vector<1x32xf32>
    %c104 = arith.constant 104 : index
    %c0_28 = arith.constant 0 : index
    %54 = vector.load %arg2[%c104, %c0_28] : memref<424x128xf32, #tpu.memory_space<vmem>>, vector<32x128xf32>
    %cst_29 = arith.constant dense<0.000000e+00> : vector<1x128xf32>
    %55 = tpu.matmul %37, %54, %cst_29 {dimension_numbers = #tpu.dot_dimension_numbers<[1], [0], [0], [1], [0, 0, 1, 1], [], []>} : vector<1x32xf32>, vector<32x128xf32>, vector<1x128xf32> -> vector<1x128xf32>
    %56 = vector.extract_strided_slice %55 {offsets = [0, 0], sizes = [1, 32], strides = [1, 1]} : vector<1x128xf32> to vector<1x32xf32>
    %57 = arith.addf %56, %14 : vector<1x32xf32>
    %cst_30 = arith.constant dense<0.000000e+00> : vector<1xf32>
    %58 = vector.multi_reduction <add>, %57, %cst_30 [1] : vector<1x32xf32> to vector<1xf32>
    %59 = vector.shape_cast %58 : vector<1xf32> to vector<1x1xf32>
    %cst_31 = arith.constant 3.200000e+01 : f32
    %60 = vector.broadcast %cst_31 : f32 to vector<1x1xf32>
    %61 = arith.divf %59, %60 : vector<1x1xf32>
    %62 = vector.broadcast %61 : vector<1x1xf32> to vector<1x32xf32>
    %63 = arith.subf %57, %62 : vector<1x32xf32>
    %64 = arith.mulf %63, %63 : vector<1x32xf32>
    %cst_32 = arith.constant dense<0.000000e+00> : vector<1xf32>
    %65 = vector.multi_reduction <add>, %64, %cst_32 [1] : vector<1x32xf32> to vector<1xf32>
    %66 = vector.shape_cast %65 : vector<1xf32> to vector<1x1xf32>
    %cst_33 = arith.constant 3.200000e+01 : f32
    %67 = vector.broadcast %cst_33 : f32 to vector<1x1xf32>
    %68 = arith.divf %66, %67 : vector<1x1xf32>
    %69 = vector.broadcast %61 : vector<1x1xf32> to vector<1x32xf32>
    %70 = arith.subf %57, %69 : vector<1x32xf32>
    %cst_34 = arith.constant 9.99999974E-6 : f32
    %71 = vector.broadcast %cst_34 : f32 to vector<1x1xf32>
    %72 = arith.addf %68, %71 : vector<1x1xf32>
    %73 = math.rsqrt %72 : vector<1x1xf32>
    %74 = vector.broadcast %73 : vector<1x1xf32> to vector<1x32xf32>
    %75 = arith.mulf %70, %74 : vector<1x32xf32>
    %76 = arith.mulf %75, %15 : vector<1x32xf32>
    %77 = arith.addf %76, %16 : vector<1x32xf32>
    %c136 = arith.constant 136 : index
    %c0_35 = arith.constant 0 : index
    %78 = vector.load %arg2[%c136, %c0_35] : memref<424x128xf32, #tpu.memory_space<vmem>>, vector<32x128xf32>
    %cst_36 = arith.constant dense<0.000000e+00> : vector<1x128xf32>
    %79 = tpu.matmul %77, %78, %cst_36 {dimension_numbers = #tpu.dot_dimension_numbers<[1], [0], [0], [1], [0, 0, 1, 1], [], []>} : vector<1x32xf32>, vector<32x128xf32>, vector<1x128xf32> -> vector<1x128xf32>
    %80 = vector.extract_strided_slice %79 {offsets = [0, 0], sizes = [1, 64], strides = [1, 1]} : vector<1x128xf32> to vector<1x64xf32>
    %81 = arith.addf %80, %17 : vector<1x64xf32>
    %cst_37 = arith.constant 0.000000e+00 : f32
    %82 = vector.broadcast %cst_37 : f32 to vector<1x64xf32>
    %83 = arith.maximumf %81, %82 : vector<1x64xf32>
    %c168 = arith.constant 168 : index
    %c0_38 = arith.constant 0 : index
    %84 = vector.load %arg2[%c168, %c0_38] : memref<424x128xf32, #tpu.memory_space<vmem>>, vector<64x128xf32>
    %cst_39 = arith.constant dense<0.000000e+00> : vector<1x128xf32>
    %85 = tpu.matmul %83, %84, %cst_39 {dimension_numbers = #tpu.dot_dimension_numbers<[1], [0], [0], [1], [0, 0, 1, 1], [], []>} : vector<1x64xf32>, vector<64x128xf32>, vector<1x128xf32> -> vector<1x128xf32>
    %86 = vector.extract_strided_slice %85 {offsets = [0, 0], sizes = [1, 32], strides = [1, 1]} : vector<1x128xf32> to vector<1x32xf32>
    %87 = arith.addf %86, %18 : vector<1x32xf32>
    %88 = arith.addf %77, %87 : vector<1x32xf32>
    %cst_40 = arith.constant dense<0.000000e+00> : vector<1xf32>
    %89 = vector.multi_reduction <add>, %88, %cst_40 [1] : vector<1x32xf32> to vector<1xf32>
    %90 = vector.shape_cast %89 : vector<1xf32> to vector<1x1xf32>
    %cst_41 = arith.constant 3.200000e+01 : f32
    %91 = vector.broadcast %cst_41 : f32 to vector<1x1xf32>
    %92 = arith.divf %90, %91 : vector<1x1xf32>
    %93 = vector.broadcast %92 : vector<1x1xf32> to vector<1x32xf32>
    %94 = arith.subf %88, %93 : vector<1x32xf32>
    %95 = arith.mulf %94, %94 : vector<1x32xf32>
    %cst_42 = arith.constant dense<0.000000e+00> : vector<1xf32>
    %96 = vector.multi_reduction <add>, %95, %cst_42 [1] : vector<1x32xf32> to vector<1xf32>
    %97 = vector.shape_cast %96 : vector<1xf32> to vector<1x1xf32>
    %cst_43 = arith.constant 3.200000e+01 : f32
    %98 = vector.broadcast %cst_43 : f32 to vector<1x1xf32>
    %99 = arith.divf %97, %98 : vector<1x1xf32>
    %100 = vector.broadcast %92 : vector<1x1xf32> to vector<1x32xf32>
    %101 = arith.subf %88, %100 : vector<1x32xf32>
    %cst_44 = arith.constant 9.99999974E-6 : f32
    %102 = vector.broadcast %cst_44 : f32 to vector<1x1xf32>
    %103 = arith.addf %99, %102 : vector<1x1xf32>
    %104 = math.rsqrt %103 : vector<1x1xf32>
    %105 = vector.broadcast %104 : vector<1x1xf32> to vector<1x32xf32>
    %106 = arith.mulf %101, %105 : vector<1x32xf32>
    %107 = arith.mulf %106, %19 : vector<1x32xf32>
    %108 = arith.addf %107, %20 : vector<1x32xf32>
    %c232 = arith.constant 232 : index
    %c0_45 = arith.constant 0 : index
    %109 = vector.load %arg2[%c232, %c0_45] : memref<424x128xf32, #tpu.memory_space<vmem>>, vector<32x128xf32>
    %cst_46 = arith.constant dense<0.000000e+00> : vector<1x128xf32>
    %110 = tpu.matmul %108, %109, %cst_46 {dimension_numbers = #tpu.dot_dimension_numbers<[1], [0], [0], [1], [0, 0, 1, 1], [], []>} : vector<1x32xf32>, vector<32x128xf32>, vector<1x128xf32> -> vector<1x128xf32>
    %111 = vector.extract_strided_slice %110 {offsets = [0, 0], sizes = [1, 32], strides = [1, 1]} : vector<1x128xf32> to vector<1x32xf32>
    %112 = arith.addf %111, %21 : vector<1x32xf32>
    %cst_47 = arith.constant dense<0.000000e+00> : vector<1xf32>
    %113 = vector.multi_reduction <add>, %112, %cst_47 [1] : vector<1x32xf32> to vector<1xf32>
    %114 = vector.shape_cast %113 : vector<1xf32> to vector<1x1xf32>
    %cst_48 = arith.constant 3.200000e+01 : f32
    %115 = vector.broadcast %cst_48 : f32 to vector<1x1xf32>
    %116 = arith.divf %114, %115 : vector<1x1xf32>
    %117 = vector.broadcast %116 : vector<1x1xf32> to vector<1x32xf32>
    %118 = arith.subf %112, %117 : vector<1x32xf32>
    %119 = arith.mulf %118, %118 : vector<1x32xf32>
    %cst_49 = arith.constant dense<0.000000e+00> : vector<1xf32>
    %120 = vector.multi_reduction <add>, %119, %cst_49 [1] : vector<1x32xf32> to vector<1xf32>
    %121 = vector.shape_cast %120 : vector<1xf32> to vector<1x1xf32>
    %cst_50 = arith.constant 3.200000e+01 : f32
    %122 = vector.broadcast %cst_50 : f32 to vector<1x1xf32>
    %123 = arith.divf %121, %122 : vector<1x1xf32>
    %124 = vector.broadcast %116 : vector<1x1xf32> to vector<1x32xf32>
    %125 = arith.subf %112, %124 : vector<1x32xf32>
    %cst_51 = arith.constant 9.99999974E-6 : f32
    %126 = vector.broadcast %cst_51 : f32 to vector<1x1xf32>
    %127 = arith.addf %123, %126 : vector<1x1xf32>
    %128 = math.rsqrt %127 : vector<1x1xf32>
    %129 = vector.broadcast %128 : vector<1x1xf32> to vector<1x32xf32>
    %130 = arith.mulf %125, %129 : vector<1x32xf32>
    %131 = arith.mulf %130, %22 : vector<1x32xf32>
    %132 = arith.addf %131, %23 : vector<1x32xf32>
    %c264 = arith.constant 264 : index
    %c0_52 = arith.constant 0 : index
    %133 = vector.load %arg2[%c264, %c0_52] : memref<424x128xf32, #tpu.memory_space<vmem>>, vector<32x128xf32>
    %cst_53 = arith.constant dense<0.000000e+00> : vector<1x128xf32>
    %134 = tpu.matmul %132, %133, %cst_53 {dimension_numbers = #tpu.dot_dimension_numbers<[1], [0], [0], [1], [0, 0, 1, 1], [], []>} : vector<1x32xf32>, vector<32x128xf32>, vector<1x128xf32> -> vector<1x128xf32>
    %135 = vector.extract_strided_slice %134 {offsets = [0, 0], sizes = [1, 64], strides = [1, 1]} : vector<1x128xf32> to vector<1x64xf32>
    %136 = arith.addf %135, %24 : vector<1x64xf32>
    %cst_54 = arith.constant 0.000000e+00 : f32
    %137 = vector.broadcast %cst_54 : f32 to vector<1x64xf32>
    %138 = arith.maximumf %136, %137 : vector<1x64xf32>
    %c296 = arith.constant 296 : index
    %c0_55 = arith.constant 0 : index
    %139 = vector.load %arg2[%c296, %c0_55] : memref<424x128xf32, #tpu.memory_space<vmem>>, vector<64x128xf32>
    %cst_56 = arith.constant dense<0.000000e+00> : vector<1x128xf32>
    %140 = tpu.matmul %138, %139, %cst_56 {dimension_numbers = #tpu.dot_dimension_numbers<[1], [0], [0], [1], [0, 0, 1, 1], [], []>} : vector<1x64xf32>, vector<64x128xf32>, vector<1x128xf32> -> vector<1x128xf32>
    %141 = vector.extract_strided_slice %140 {offsets = [0, 0], sizes = [1, 32], strides = [1, 1]} : vector<1x128xf32> to vector<1x32xf32>
    %142 = arith.addf %141, %25 : vector<1x32xf32>
    %143 = arith.addf %132, %142 : vector<1x32xf32>
    %cst_57 = arith.constant dense<0.000000e+00> : vector<1xf32>
    %144 = vector.multi_reduction <add>, %143, %cst_57 [1] : vector<1x32xf32> to vector<1xf32>
    %145 = vector.shape_cast %144 : vector<1xf32> to vector<1x1xf32>
    %cst_58 = arith.constant 3.200000e+01 : f32
    %146 = vector.broadcast %cst_58 : f32 to vector<1x1xf32>
    %147 = arith.divf %145, %146 : vector<1x1xf32>
    %148 = vector.broadcast %147 : vector<1x1xf32> to vector<1x32xf32>
    %149 = arith.subf %143, %148 : vector<1x32xf32>
    %150 = arith.mulf %149, %149 : vector<1x32xf32>
    %cst_59 = arith.constant dense<0.000000e+00> : vector<1xf32>
    %151 = vector.multi_reduction <add>, %150, %cst_59 [1] : vector<1x32xf32> to vector<1xf32>
    %152 = vector.shape_cast %151 : vector<1xf32> to vector<1x1xf32>
    %cst_60 = arith.constant 3.200000e+01 : f32
    %153 = vector.broadcast %cst_60 : f32 to vector<1x1xf32>
    %154 = arith.divf %152, %153 : vector<1x1xf32>
    %155 = vector.broadcast %147 : vector<1x1xf32> to vector<1x32xf32>
    %156 = arith.subf %143, %155 : vector<1x32xf32>
    %cst_61 = arith.constant 9.99999974E-6 : f32
    %157 = vector.broadcast %cst_61 : f32 to vector<1x1xf32>
    %158 = arith.addf %154, %157 : vector<1x1xf32>
    %159 = math.rsqrt %158 : vector<1x1xf32>
    %160 = vector.broadcast %159 : vector<1x1xf32> to vector<1x32xf32>
    %161 = arith.mulf %156, %160 : vector<1x32xf32>
    %162 = arith.mulf %161, %26 : vector<1x32xf32>
    %163 = arith.addf %162, %27 : vector<1x32xf32>
    %164 = tpu.concatenate %53, %163 in 1 : vector<1x32xf32>, vector<1x32xf32> -> vector<1x64xf32>
    %c360 = arith.constant 360 : index
    %c0_62 = arith.constant 0 : index
    %165 = vector.load %arg2[%c360, %c0_62] : memref<424x128xf32, #tpu.memory_space<vmem>>, vector<64x128xf32>
    %cst_63 = arith.constant dense<0.000000e+00> : vector<1x128xf32>
    %166 = tpu.matmul %164, %165, %cst_63 {dimension_numbers = #tpu.dot_dimension_numbers<[1], [0], [0], [1], [0, 0, 1, 1], [], []>} : vector<1x64xf32>, vector<64x128xf32>, vector<1x128xf32> -> vector<1x128xf32>
    %167 = arith.addf %166, %13 : vector<1x128xf32>
    %168 = vector.broadcast %2 : f32 to vector<1x128xf32>
    %169 = arith.mulf %167, %168 : vector<1x128xf32>
    %170 = arith.addf %28, %169 : vector<1x128xf32>
    %c1_64 = arith.constant 1 : index
    %171 = memref.load %arg0[%c1_64] : memref<5xf32, #tpu.memory_space<smem>>
    %172 = vector.broadcast %171 : f32 to vector<1x128xf32>
    %173 = arith.mulf %172, %7 : vector<1x128xf32>
    %174 = arith.addf %170, %173 : vector<1x128xf32>
    %175 = arith.addf %174, %11 : vector<1x128xf32>
    %176 = vector.extract_strided_slice %175 {offsets = [0, 0], sizes = [1, 72], strides = [1, 1]} : vector<1x128xf32> to vector<1x72xf32>
    %c0_65 = arith.constant 0 : index
    %c0_66 = arith.constant 0 : index
    %177 = vector.load %arg2[%c0_65, %c0_66] : memref<424x128xf32, #tpu.memory_space<vmem>>, vector<72x128xf32>
    %cst_67 = arith.constant dense<0.000000e+00> : vector<1x128xf32>
    %178 = tpu.matmul %176, %177, %cst_67 {dimension_numbers = #tpu.dot_dimension_numbers<[1], [0], [0], [1], [0, 0, 1, 1], [], []>} : vector<1x72xf32>, vector<72x128xf32>, vector<1x128xf32> -> vector<1x128xf32>
    %179 = vector.extract_strided_slice %178 {offsets = [0, 0], sizes = [1, 32], strides = [1, 1]} : vector<1x128xf32> to vector<1x32xf32>
    %180 = vector.extract_strided_slice %178 {offsets = [0, 32], sizes = [1, 32], strides = [1, 1]} : vector<1x128xf32> to vector<1x32xf32>
    %181 = math.tanh %180 : vector<1x32xf32>
    %c72_68 = arith.constant 72 : index
    %c0_69 = arith.constant 0 : index
    %182 = vector.load %arg2[%c72_68, %c0_69] : memref<424x128xf32, #tpu.memory_space<vmem>>, vector<32x128xf32>
    %cst_70 = arith.constant dense<0.000000e+00> : vector<1x128xf32>
    %183 = tpu.matmul %181, %182, %cst_70 {dimension_numbers = #tpu.dot_dimension_numbers<[1], [0], [0], [1], [0, 0, 1, 1], [], []>} : vector<1x32xf32>, vector<32x128xf32>, vector<1x128xf32> -> vector<1x128xf32>
    %184 = vector.extract_strided_slice %183 {offsets = [0, 0], sizes = [1, 32], strides = [1, 1]} : vector<1x128xf32> to vector<1x32xf32>
    %185 = arith.addf %184, %12 : vector<1x32xf32>
    %cst_71 = arith.constant 0.000000e+00 : f32
    %186 = vector.broadcast %cst_71 : f32 to vector<1x32xf32>
    %187 = arith.maximumf %185, %186 : vector<1x32xf32>
    %188 = math.absf %185 : vector<1x32xf32>
    %cst_72 = arith.constant 0.000000e+00 : f32
    %189 = vector.broadcast %cst_72 : f32 to vector<1x32xf32>
    %190 = arith.subf %189, %188 : vector<1x32xf32>
    %191 = math.exp %190 : vector<1x32xf32>
    %cst_73 = arith.constant 1.000000e+00 : f32
    %192 = vector.broadcast %cst_73 : f32 to vector<1x32xf32>
    %193 = arith.addf %192, %191 : vector<1x32xf32>
    %194 = math.log %193 : vector<1x32xf32>
    %195 = arith.addf %187, %194 : vector<1x32xf32>
    %c104_74 = arith.constant 104 : index
    %c0_75 = arith.constant 0 : index
    %196 = vector.load %arg2[%c104_74, %c0_75] : memref<424x128xf32, #tpu.memory_space<vmem>>, vector<32x128xf32>
    %cst_76 = arith.constant dense<0.000000e+00> : vector<1x128xf32>
    %197 = tpu.matmul %179, %196, %cst_76 {dimension_numbers = #tpu.dot_dimension_numbers<[1], [0], [0], [1], [0, 0, 1, 1], [], []>} : vector<1x32xf32>, vector<32x128xf32>, vector<1x128xf32> -> vector<1x128xf32>
    %198 = vector.extract_strided_slice %197 {offsets = [0, 0], sizes = [1, 32], strides = [1, 1]} : vector<1x128xf32> to vector<1x32xf32>
    %199 = arith.addf %198, %14 : vector<1x32xf32>
    %cst_77 = arith.constant dense<0.000000e+00> : vector<1xf32>
    %200 = vector.multi_reduction <add>, %199, %cst_77 [1] : vector<1x32xf32> to vector<1xf32>
    %201 = vector.shape_cast %200 : vector<1xf32> to vector<1x1xf32>
    %cst_78 = arith.constant 3.200000e+01 : f32
    %202 = vector.broadcast %cst_78 : f32 to vector<1x1xf32>
    %203 = arith.divf %201, %202 : vector<1x1xf32>
    %204 = vector.broadcast %203 : vector<1x1xf32> to vector<1x32xf32>
    %205 = arith.subf %199, %204 : vector<1x32xf32>
    %206 = arith.mulf %205, %205 : vector<1x32xf32>
    %cst_79 = arith.constant dense<0.000000e+00> : vector<1xf32>
    %207 = vector.multi_reduction <add>, %206, %cst_79 [1] : vector<1x32xf32> to vector<1xf32>
    %208 = vector.shape_cast %207 : vector<1xf32> to vector<1x1xf32>
    %cst_80 = arith.constant 3.200000e+01 : f32
    %209 = vector.broadcast %cst_80 : f32 to vector<1x1xf32>
    %210 = arith.divf %208, %209 : vector<1x1xf32>
    %211 = vector.broadcast %203 : vector<1x1xf32> to vector<1x32xf32>
    %212 = arith.subf %199, %211 : vector<1x32xf32>
    %cst_81 = arith.constant 9.99999974E-6 : f32
    %213 = vector.broadcast %cst_81 : f32 to vector<1x1xf32>
    %214 = arith.addf %210, %213 : vector<1x1xf32>
    %215 = math.rsqrt %214 : vector<1x1xf32>
    %216 = vector.broadcast %215 : vector<1x1xf32> to vector<1x32xf32>
    %217 = arith.mulf %212, %216 : vector<1x32xf32>
    %218 = arith.mulf %217, %15 : vector<1x32xf32>
    %219 = arith.addf %218, %16 : vector<1x32xf32>
    %c136_82 = arith.constant 136 : index
    %c0_83 = arith.constant 0 : index
    %220 = vector.load %arg2[%c136_82, %c0_83] : memref<424x128xf32, #tpu.memory_space<vmem>>, vector<32x128xf32>
    %cst_84 = arith.constant dense<0.000000e+00> : vector<1x128xf32>
    %221 = tpu.matmul %219, %220, %cst_84 {dimension_numbers = #tpu.dot_dimension_numbers<[1], [0], [0], [1], [0, 0, 1, 1], [], []>} : vector<1x32xf32>, vector<32x128xf32>, vector<1x128xf32> -> vector<1x128xf32>
    %222 = vector.extract_strided_slice %221 {offsets = [0, 0], sizes = [1, 64], strides = [1, 1]} : vector<1x128xf32> to vector<1x64xf32>
    %223 = arith.addf %222, %17 : vector<1x64xf32>
    %cst_85 = arith.constant 0.000000e+00 : f32
    %224 = vector.broadcast %cst_85 : f32 to vector<1x64xf32>
    %225 = arith.maximumf %223, %224 : vector<1x64xf32>
    %c168_86 = arith.constant 168 : index
    %c0_87 = arith.constant 0 : index
    %226 = vector.load %arg2[%c168_86, %c0_87] : memref<424x128xf32, #tpu.memory_space<vmem>>, vector<64x128xf32>
    %cst_88 = arith.constant dense<0.000000e+00> : vector<1x128xf32>
    %227 = tpu.matmul %225, %226, %cst_88 {dimension_numbers = #tpu.dot_dimension_numbers<[1], [0], [0], [1], [0, 0, 1, 1], [], []>} : vector<1x64xf32>, vector<64x128xf32>, vector<1x128xf32> -> vector<1x128xf32>
    %228 = vector.extract_strided_slice %227 {offsets = [0, 0], sizes = [1, 32], strides = [1, 1]} : vector<1x128xf32> to vector<1x32xf32>
    %229 = arith.addf %228, %18 : vector<1x32xf32>
    %230 = arith.addf %219, %229 : vector<1x32xf32>
    %cst_89 = arith.constant dense<0.000000e+00> : vector<1xf32>
    %231 = vector.multi_reduction <add>, %230, %cst_89 [1] : vector<1x32xf32> to vector<1xf32>
    %232 = vector.shape_cast %231 : vector<1xf32> to vector<1x1xf32>
    %cst_90 = arith.constant 3.200000e+01 : f32
    %233 = vector.broadcast %cst_90 : f32 to vector<1x1xf32>
    %234 = arith.divf %232, %233 : vector<1x1xf32>
    %235 = vector.broadcast %234 : vector<1x1xf32> to vector<1x32xf32>
    %236 = arith.subf %230, %235 : vector<1x32xf32>
    %237 = arith.mulf %236, %236 : vector<1x32xf32>
    %cst_91 = arith.constant dense<0.000000e+00> : vector<1xf32>
    %238 = vector.multi_reduction <add>, %237, %cst_91 [1] : vector<1x32xf32> to vector<1xf32>
    %239 = vector.shape_cast %238 : vector<1xf32> to vector<1x1xf32>
    %cst_92 = arith.constant 3.200000e+01 : f32
    %240 = vector.broadcast %cst_92 : f32 to vector<1x1xf32>
    %241 = arith.divf %239, %240 : vector<1x1xf32>
    %242 = vector.broadcast %234 : vector<1x1xf32> to vector<1x32xf32>
    %243 = arith.subf %230, %242 : vector<1x32xf32>
    %cst_93 = arith.constant 9.99999974E-6 : f32
    %244 = vector.broadcast %cst_93 : f32 to vector<1x1xf32>
    %245 = arith.addf %241, %244 : vector<1x1xf32>
    %246 = math.rsqrt %245 : vector<1x1xf32>
    %247 = vector.broadcast %246 : vector<1x1xf32> to vector<1x32xf32>
    %248 = arith.mulf %243, %247 : vector<1x32xf32>
    %249 = arith.mulf %248, %19 : vector<1x32xf32>
    %250 = arith.addf %249, %20 : vector<1x32xf32>
    %c232_94 = arith.constant 232 : index
    %c0_95 = arith.constant 0 : index
    %251 = vector.load %arg2[%c232_94, %c0_95] : memref<424x128xf32, #tpu.memory_space<vmem>>, vector<32x128xf32>
    %cst_96 = arith.constant dense<0.000000e+00> : vector<1x128xf32>
    %252 = tpu.matmul %250, %251, %cst_96 {dimension_numbers = #tpu.dot_dimension_numbers<[1], [0], [0], [1], [0, 0, 1, 1], [], []>} : vector<1x32xf32>, vector<32x128xf32>, vector<1x128xf32> -> vector<1x128xf32>
    %253 = vector.extract_strided_slice %252 {offsets = [0, 0], sizes = [1, 32], strides = [1, 1]} : vector<1x128xf32> to vector<1x32xf32>
    %254 = arith.addf %253, %21 : vector<1x32xf32>
    %cst_97 = arith.constant dense<0.000000e+00> : vector<1xf32>
    %255 = vector.multi_reduction <add>, %254, %cst_97 [1] : vector<1x32xf32> to vector<1xf32>
    %256 = vector.shape_cast %255 : vector<1xf32> to vector<1x1xf32>
    %cst_98 = arith.constant 3.200000e+01 : f32
    %257 = vector.broadcast %cst_98 : f32 to vector<1x1xf32>
    %258 = arith.divf %256, %257 : vector<1x1xf32>
    %259 = vector.broadcast %258 : vector<1x1xf32> to vector<1x32xf32>
    %260 = arith.subf %254, %259 : vector<1x32xf32>
    %261 = arith.mulf %260, %260 : vector<1x32xf32>
    %cst_99 = arith.constant dense<0.000000e+00> : vector<1xf32>
    %262 = vector.multi_reduction <add>, %261, %cst_99 [1] : vector<1x32xf32> to vector<1xf32>
    %263 = vector.shape_cast %262 : vector<1xf32> to vector<1x1xf32>
    %cst_100 = arith.constant 3.200000e+01 : f32
    %264 = vector.broadcast %cst_100 : f32 to vector<1x1xf32>
    %265 = arith.divf %263, %264 : vector<1x1xf32>
    %266 = vector.broadcast %258 : vector<1x1xf32> to vector<1x32xf32>
    %267 = arith.subf %254, %266 : vector<1x32xf32>
    %cst_101 = arith.constant 9.99999974E-6 : f32
    %268 = vector.broadcast %cst_101 : f32 to vector<1x1xf32>
    %269 = arith.addf %265, %268 : vector<1x1xf32>
    %270 = math.rsqrt %269 : vector<1x1xf32>
    %271 = vector.broadcast %270 : vector<1x1xf32> to vector<1x32xf32>
    %272 = arith.mulf %267, %271 : vector<1x32xf32>
    %273 = arith.mulf %272, %22 : vector<1x32xf32>
    %274 = arith.addf %273, %23 : vector<1x32xf32>
    %c264_102 = arith.constant 264 : index
    %c0_103 = arith.constant 0 : index
    %275 = vector.load %arg2[%c264_102, %c0_103] : memref<424x128xf32, #tpu.memory_space<vmem>>, vector<32x128xf32>
    %cst_104 = arith.constant dense<0.000000e+00> : vector<1x128xf32>
    %276 = tpu.matmul %274, %275, %cst_104 {dimension_numbers = #tpu.dot_dimension_numbers<[1], [0], [0], [1], [0, 0, 1, 1], [], []>} : vector<1x32xf32>, vector<32x128xf32>, vector<1x128xf32> -> vector<1x128xf32>
    %277 = vector.extract_strided_slice %276 {offsets = [0, 0], sizes = [1, 64], strides = [1, 1]} : vector<1x128xf32> to vector<1x64xf32>
    %278 = arith.addf %277, %24 : vector<1x64xf32>
    %cst_105 = arith.constant 0.000000e+00 : f32
    %279 = vector.broadcast %cst_105 : f32 to vector<1x64xf32>
    %280 = arith.maximumf %278, %279 : vector<1x64xf32>
    %c296_106 = arith.constant 296 : index
    %c0_107 = arith.constant 0 : index
    %281 = vector.load %arg2[%c296_106, %c0_107] : memref<424x128xf32, #tpu.memory_space<vmem>>, vector<64x128xf32>
    %cst_108 = arith.constant dense<0.000000e+00> : vector<1x128xf32>
    %282 = tpu.matmul %280, %281, %cst_108 {dimension_numbers = #tpu.dot_dimension_numbers<[1], [0], [0], [1], [0, 0, 1, 1], [], []>} : vector<1x64xf32>, vector<64x128xf32>, vector<1x128xf32> -> vector<1x128xf32>
    %283 = vector.extract_strided_slice %282 {offsets = [0, 0], sizes = [1, 32], strides = [1, 1]} : vector<1x128xf32> to vector<1x32xf32>
    %284 = arith.addf %283, %25 : vector<1x32xf32>
    %285 = arith.addf %274, %284 : vector<1x32xf32>
    %cst_109 = arith.constant dense<0.000000e+00> : vector<1xf32>
    %286 = vector.multi_reduction <add>, %285, %cst_109 [1] : vector<1x32xf32> to vector<1xf32>
    %287 = vector.shape_cast %286 : vector<1xf32> to vector<1x1xf32>
    %cst_110 = arith.constant 3.200000e+01 : f32
    %288 = vector.broadcast %cst_110 : f32 to vector<1x1xf32>
    %289 = arith.divf %287, %288 : vector<1x1xf32>
    %290 = vector.broadcast %289 : vector<1x1xf32> to vector<1x32xf32>
    %291 = arith.subf %285, %290 : vector<1x32xf32>
    %292 = arith.mulf %291, %291 : vector<1x32xf32>
    %cst_111 = arith.constant dense<0.000000e+00> : vector<1xf32>
    %293 = vector.multi_reduction <add>, %292, %cst_111 [1] : vector<1x32xf32> to vector<1xf32>
    %294 = vector.shape_cast %293 : vector<1xf32> to vector<1x1xf32>
    %cst_112 = arith.constant 3.200000e+01 : f32
    %295 = vector.broadcast %cst_112 : f32 to vector<1x1xf32>
    %296 = arith.divf %294, %295 : vector<1x1xf32>
    %297 = vector.broadcast %289 : vector<1x1xf32> to vector<1x32xf32>
    %298 = arith.subf %285, %297 : vector<1x32xf32>
    %cst_113 = arith.constant 9.99999974E-6 : f32
    %299 = vector.broadcast %cst_113 : f32 to vector<1x1xf32>
    %300 = arith.addf %296, %299 : vector<1x1xf32>
    %301 = math.rsqrt %300 : vector<1x1xf32>
    %302 = vector.broadcast %301 : vector<1x1xf32> to vector<1x32xf32>
    %303 = arith.mulf %298, %302 : vector<1x32xf32>
    %304 = arith.mulf %303, %26 : vector<1x32xf32>
    %305 = arith.addf %304, %27 : vector<1x32xf32>
    %306 = tpu.concatenate %195, %305 in 1 : vector<1x32xf32>, vector<1x32xf32> -> vector<1x64xf32>
    %c360_114 = arith.constant 360 : index
    %c0_115 = arith.constant 0 : index
    %307 = vector.load %arg2[%c360_114, %c0_115] : memref<424x128xf32, #tpu.memory_space<vmem>>, vector<64x128xf32>
    %cst_116 = arith.constant dense<0.000000e+00> : vector<1x128xf32>
    %308 = tpu.matmul %306, %307, %cst_116 {dimension_numbers = #tpu.dot_dimension_numbers<[1], [0], [0], [1], [0, 0, 1, 1], [], []>} : vector<1x64xf32>, vector<64x128xf32>, vector<1x128xf32> -> vector<1x128xf32>
    %309 = arith.addf %308, %13 : vector<1x128xf32>
    %310 = vector.broadcast %2 : f32 to vector<1x128xf32>
    %311 = arith.mulf %309, %310 : vector<1x128xf32>
    %312 = arith.addf %170, %311 : vector<1x128xf32>
    %c2_117 = arith.constant 2 : index
    %313 = memref.load %arg0[%c2_117] : memref<5xf32, #tpu.memory_space<smem>>
    %314 = vector.broadcast %313 : f32 to vector<1x128xf32>
    %315 = arith.mulf %314, %7 : vector<1x128xf32>
    %316 = arith.addf %312, %315 : vector<1x128xf32>
    %317 = arith.addf %316, %11 : vector<1x128xf32>
    %318 = vector.extract_strided_slice %317 {offsets = [0, 0], sizes = [1, 72], strides = [1, 1]} : vector<1x128xf32> to vector<1x72xf32>
    %c0_118 = arith.constant 0 : index
    %c0_119 = arith.constant 0 : index
    %319 = vector.load %arg2[%c0_118, %c0_119] : memref<424x128xf32, #tpu.memory_space<vmem>>, vector<72x128xf32>
    %cst_120 = arith.constant dense<0.000000e+00> : vector<1x128xf32>
    %320 = tpu.matmul %318, %319, %cst_120 {dimension_numbers = #tpu.dot_dimension_numbers<[1], [0], [0], [1], [0, 0, 1, 1], [], []>} : vector<1x72xf32>, vector<72x128xf32>, vector<1x128xf32> -> vector<1x128xf32>
    %321 = vector.extract_strided_slice %320 {offsets = [0, 0], sizes = [1, 32], strides = [1, 1]} : vector<1x128xf32> to vector<1x32xf32>
    %322 = vector.extract_strided_slice %320 {offsets = [0, 32], sizes = [1, 32], strides = [1, 1]} : vector<1x128xf32> to vector<1x32xf32>
    %323 = math.tanh %322 : vector<1x32xf32>
    %c72_121 = arith.constant 72 : index
    %c0_122 = arith.constant 0 : index
    %324 = vector.load %arg2[%c72_121, %c0_122] : memref<424x128xf32, #tpu.memory_space<vmem>>, vector<32x128xf32>
    %cst_123 = arith.constant dense<0.000000e+00> : vector<1x128xf32>
    %325 = tpu.matmul %323, %324, %cst_123 {dimension_numbers = #tpu.dot_dimension_numbers<[1], [0], [0], [1], [0, 0, 1, 1], [], []>} : vector<1x32xf32>, vector<32x128xf32>, vector<1x128xf32> -> vector<1x128xf32>
    %326 = vector.extract_strided_slice %325 {offsets = [0, 0], sizes = [1, 32], strides = [1, 1]} : vector<1x128xf32> to vector<1x32xf32>
    %327 = arith.addf %326, %12 : vector<1x32xf32>
    %cst_124 = arith.constant 0.000000e+00 : f32
    %328 = vector.broadcast %cst_124 : f32 to vector<1x32xf32>
    %329 = arith.maximumf %327, %328 : vector<1x32xf32>
    %330 = math.absf %327 : vector<1x32xf32>
    %cst_125 = arith.constant 0.000000e+00 : f32
    %331 = vector.broadcast %cst_125 : f32 to vector<1x32xf32>
    %332 = arith.subf %331, %330 : vector<1x32xf32>
    %333 = math.exp %332 : vector<1x32xf32>
    %cst_126 = arith.constant 1.000000e+00 : f32
    %334 = vector.broadcast %cst_126 : f32 to vector<1x32xf32>
    %335 = arith.addf %334, %333 : vector<1x32xf32>
    %336 = math.log %335 : vector<1x32xf32>
    %337 = arith.addf %329, %336 : vector<1x32xf32>
    %c104_127 = arith.constant 104 : index
    %c0_128 = arith.constant 0 : index
    %338 = vector.load %arg2[%c104_127, %c0_128] : memref<424x128xf32, #tpu.memory_space<vmem>>, vector<32x128xf32>
    %cst_129 = arith.constant dense<0.000000e+00> : vector<1x128xf32>
    %339 = tpu.matmul %321, %338, %cst_129 {dimension_numbers = #tpu.dot_dimension_numbers<[1], [0], [0], [1], [0, 0, 1, 1], [], []>} : vector<1x32xf32>, vector<32x128xf32>, vector<1x128xf32> -> vector<1x128xf32>
    %340 = vector.extract_strided_slice %339 {offsets = [0, 0], sizes = [1, 32], strides = [1, 1]} : vector<1x128xf32> to vector<1x32xf32>
    %341 = arith.addf %340, %14 : vector<1x32xf32>
    %cst_130 = arith.constant dense<0.000000e+00> : vector<1xf32>
    %342 = vector.multi_reduction <add>, %341, %cst_130 [1] : vector<1x32xf32> to vector<1xf32>
    %343 = vector.shape_cast %342 : vector<1xf32> to vector<1x1xf32>
    %cst_131 = arith.constant 3.200000e+01 : f32
    %344 = vector.broadcast %cst_131 : f32 to vector<1x1xf32>
    %345 = arith.divf %343, %344 : vector<1x1xf32>
    %346 = vector.broadcast %345 : vector<1x1xf32> to vector<1x32xf32>
    %347 = arith.subf %341, %346 : vector<1x32xf32>
    %348 = arith.mulf %347, %347 : vector<1x32xf32>
    %cst_132 = arith.constant dense<0.000000e+00> : vector<1xf32>
    %349 = vector.multi_reduction <add>, %348, %cst_132 [1] : vector<1x32xf32> to vector<1xf32>
    %350 = vector.shape_cast %349 : vector<1xf32> to vector<1x1xf32>
    %cst_133 = arith.constant 3.200000e+01 : f32
    %351 = vector.broadcast %cst_133 : f32 to vector<1x1xf32>
    %352 = arith.divf %350, %351 : vector<1x1xf32>
    %353 = vector.broadcast %345 : vector<1x1xf32> to vector<1x32xf32>
    %354 = arith.subf %341, %353 : vector<1x32xf32>
    %cst_134 = arith.constant 9.99999974E-6 : f32
    %355 = vector.broadcast %cst_134 : f32 to vector<1x1xf32>
    %356 = arith.addf %352, %355 : vector<1x1xf32>
    %357 = math.rsqrt %356 : vector<1x1xf32>
    %358 = vector.broadcast %357 : vector<1x1xf32> to vector<1x32xf32>
    %359 = arith.mulf %354, %358 : vector<1x32xf32>
    %360 = arith.mulf %359, %15 : vector<1x32xf32>
    %361 = arith.addf %360, %16 : vector<1x32xf32>
    %c136_135 = arith.constant 136 : index
    %c0_136 = arith.constant 0 : index
    %362 = vector.load %arg2[%c136_135, %c0_136] : memref<424x128xf32, #tpu.memory_space<vmem>>, vector<32x128xf32>
    %cst_137 = arith.constant dense<0.000000e+00> : vector<1x128xf32>
    %363 = tpu.matmul %361, %362, %cst_137 {dimension_numbers = #tpu.dot_dimension_numbers<[1], [0], [0], [1], [0, 0, 1, 1], [], []>} : vector<1x32xf32>, vector<32x128xf32>, vector<1x128xf32> -> vector<1x128xf32>
    %364 = vector.extract_strided_slice %363 {offsets = [0, 0], sizes = [1, 64], strides = [1, 1]} : vector<1x128xf32> to vector<1x64xf32>
    %365 = arith.addf %364, %17 : vector<1x64xf32>
    %cst_138 = arith.constant 0.000000e+00 : f32
    %366 = vector.broadcast %cst_138 : f32 to vector<1x64xf32>
    %367 = arith.maximumf %365, %366 : vector<1x64xf32>
    %c168_139 = arith.constant 168 : index
    %c0_140 = arith.constant 0 : index
    %368 = vector.load %arg2[%c168_139, %c0_140] : memref<424x128xf32, #tpu.memory_space<vmem>>, vector<64x128xf32>
    %cst_141 = arith.constant dense<0.000000e+00> : vector<1x128xf32>
    %369 = tpu.matmul %367, %368, %cst_141 {dimension_numbers = #tpu.dot_dimension_numbers<[1], [0], [0], [1], [0, 0, 1, 1], [], []>} : vector<1x64xf32>, vector<64x128xf32>, vector<1x128xf32> -> vector<1x128xf32>
    %370 = vector.extract_strided_slice %369 {offsets = [0, 0], sizes = [1, 32], strides = [1, 1]} : vector<1x128xf32> to vector<1x32xf32>
    %371 = arith.addf %370, %18 : vector<1x32xf32>
    %372 = arith.addf %361, %371 : vector<1x32xf32>
    %cst_142 = arith.constant dense<0.000000e+00> : vector<1xf32>
    %373 = vector.multi_reduction <add>, %372, %cst_142 [1] : vector<1x32xf32> to vector<1xf32>
    %374 = vector.shape_cast %373 : vector<1xf32> to vector<1x1xf32>
    %cst_143 = arith.constant 3.200000e+01 : f32
    %375 = vector.broadcast %cst_143 : f32 to vector<1x1xf32>
    %376 = arith.divf %374, %375 : vector<1x1xf32>
    %377 = vector.broadcast %376 : vector<1x1xf32> to vector<1x32xf32>
    %378 = arith.subf %372, %377 : vector<1x32xf32>
    %379 = arith.mulf %378, %378 : vector<1x32xf32>
    %cst_144 = arith.constant dense<0.000000e+00> : vector<1xf32>
    %380 = vector.multi_reduction <add>, %379, %cst_144 [1] : vector<1x32xf32> to vector<1xf32>
    %381 = vector.shape_cast %380 : vector<1xf32> to vector<1x1xf32>
    %cst_145 = arith.constant 3.200000e+01 : f32
    %382 = vector.broadcast %cst_145 : f32 to vector<1x1xf32>
    %383 = arith.divf %381, %382 : vector<1x1xf32>
    %384 = vector.broadcast %376 : vector<1x1xf32> to vector<1x32xf32>
    %385 = arith.subf %372, %384 : vector<1x32xf32>
    %cst_146 = arith.constant 9.99999974E-6 : f32
    %386 = vector.broadcast %cst_146 : f32 to vector<1x1xf32>
    %387 = arith.addf %383, %386 : vector<1x1xf32>
    %388 = math.rsqrt %387 : vector<1x1xf32>
    %389 = vector.broadcast %388 : vector<1x1xf32> to vector<1x32xf32>
    %390 = arith.mulf %385, %389 : vector<1x32xf32>
    %391 = arith.mulf %390, %19 : vector<1x32xf32>
    %392 = arith.addf %391, %20 : vector<1x32xf32>
    %c232_147 = arith.constant 232 : index
    %c0_148 = arith.constant 0 : index
    %393 = vector.load %arg2[%c232_147, %c0_148] : memref<424x128xf32, #tpu.memory_space<vmem>>, vector<32x128xf32>
    %cst_149 = arith.constant dense<0.000000e+00> : vector<1x128xf32>
    %394 = tpu.matmul %392, %393, %cst_149 {dimension_numbers = #tpu.dot_dimension_numbers<[1], [0], [0], [1], [0, 0, 1, 1], [], []>} : vector<1x32xf32>, vector<32x128xf32>, vector<1x128xf32> -> vector<1x128xf32>
    %395 = vector.extract_strided_slice %394 {offsets = [0, 0], sizes = [1, 32], strides = [1, 1]} : vector<1x128xf32> to vector<1x32xf32>
    %396 = arith.addf %395, %21 : vector<1x32xf32>
    %cst_150 = arith.constant dense<0.000000e+00> : vector<1xf32>
    %397 = vector.multi_reduction <add>, %396, %cst_150 [1] : vector<1x32xf32> to vector<1xf32>
    %398 = vector.shape_cast %397 : vector<1xf32> to vector<1x1xf32>
    %cst_151 = arith.constant 3.200000e+01 : f32
    %399 = vector.broadcast %cst_151 : f32 to vector<1x1xf32>
    %400 = arith.divf %398, %399 : vector<1x1xf32>
    %401 = vector.broadcast %400 : vector<1x1xf32> to vector<1x32xf32>
    %402 = arith.subf %396, %401 : vector<1x32xf32>
    %403 = arith.mulf %402, %402 : vector<1x32xf32>
    %cst_152 = arith.constant dense<0.000000e+00> : vector<1xf32>
    %404 = vector.multi_reduction <add>, %403, %cst_152 [1] : vector<1x32xf32> to vector<1xf32>
    %405 = vector.shape_cast %404 : vector<1xf32> to vector<1x1xf32>
    %cst_153 = arith.constant 3.200000e+01 : f32
    %406 = vector.broadcast %cst_153 : f32 to vector<1x1xf32>
    %407 = arith.divf %405, %406 : vector<1x1xf32>
    %408 = vector.broadcast %400 : vector<1x1xf32> to vector<1x32xf32>
    %409 = arith.subf %396, %408 : vector<1x32xf32>
    %cst_154 = arith.constant 9.99999974E-6 : f32
    %410 = vector.broadcast %cst_154 : f32 to vector<1x1xf32>
    %411 = arith.addf %407, %410 : vector<1x1xf32>
    %412 = math.rsqrt %411 : vector<1x1xf32>
    %413 = vector.broadcast %412 : vector<1x1xf32> to vector<1x32xf32>
    %414 = arith.mulf %409, %413 : vector<1x32xf32>
    %415 = arith.mulf %414, %22 : vector<1x32xf32>
    %416 = arith.addf %415, %23 : vector<1x32xf32>
    %c264_155 = arith.constant 264 : index
    %c0_156 = arith.constant 0 : index
    %417 = vector.load %arg2[%c264_155, %c0_156] : memref<424x128xf32, #tpu.memory_space<vmem>>, vector<32x128xf32>
    %cst_157 = arith.constant dense<0.000000e+00> : vector<1x128xf32>
    %418 = tpu.matmul %416, %417, %cst_157 {dimension_numbers = #tpu.dot_dimension_numbers<[1], [0], [0], [1], [0, 0, 1, 1], [], []>} : vector<1x32xf32>, vector<32x128xf32>, vector<1x128xf32> -> vector<1x128xf32>
    %419 = vector.extract_strided_slice %418 {offsets = [0, 0], sizes = [1, 64], strides = [1, 1]} : vector<1x128xf32> to vector<1x64xf32>
    %420 = arith.addf %419, %24 : vector<1x64xf32>
    %cst_158 = arith.constant 0.000000e+00 : f32
    %421 = vector.broadcast %cst_158 : f32 to vector<1x64xf32>
    %422 = arith.maximumf %420, %421 : vector<1x64xf32>
    %c296_159 = arith.constant 296 : index
    %c0_160 = arith.constant 0 : index
    %423 = vector.load %arg2[%c296_159, %c0_160] : memref<424x128xf32, #tpu.memory_space<vmem>>, vector<64x128xf32>
    %cst_161 = arith.constant dense<0.000000e+00> : vector<1x128xf32>
    %424 = tpu.matmul %422, %423, %cst_161 {dimension_numbers = #tpu.dot_dimension_numbers<[1], [0], [0], [1], [0, 0, 1, 1], [], []>} : vector<1x64xf32>, vector<64x128xf32>, vector<1x128xf32> -> vector<1x128xf32>
    %425 = vector.extract_strided_slice %424 {offsets = [0, 0], sizes = [1, 32], strides = [1, 1]} : vector<1x128xf32> to vector<1x32xf32>
    %426 = arith.addf %425, %25 : vector<1x32xf32>
    %427 = arith.addf %416, %426 : vector<1x32xf32>
    %cst_162 = arith.constant dense<0.000000e+00> : vector<1xf32>
    %428 = vector.multi_reduction <add>, %427, %cst_162 [1] : vector<1x32xf32> to vector<1xf32>
    %429 = vector.shape_cast %428 : vector<1xf32> to vector<1x1xf32>
    %cst_163 = arith.constant 3.200000e+01 : f32
    %430 = vector.broadcast %cst_163 : f32 to vector<1x1xf32>
    %431 = arith.divf %429, %430 : vector<1x1xf32>
    %432 = vector.broadcast %431 : vector<1x1xf32> to vector<1x32xf32>
    %433 = arith.subf %427, %432 : vector<1x32xf32>
    %434 = arith.mulf %433, %433 : vector<1x32xf32>
    %cst_164 = arith.constant dense<0.000000e+00> : vector<1xf32>
    %435 = vector.multi_reduction <add>, %434, %cst_164 [1] : vector<1x32xf32> to vector<1xf32>
    %436 = vector.shape_cast %435 : vector<1xf32> to vector<1x1xf32>
    %cst_165 = arith.constant 3.200000e+01 : f32
    %437 = vector.broadcast %cst_165 : f32 to vector<1x1xf32>
    %438 = arith.divf %436, %437 : vector<1x1xf32>
    %439 = vector.broadcast %431 : vector<1x1xf32> to vector<1x32xf32>
    %440 = arith.subf %427, %439 : vector<1x32xf32>
    %cst_166 = arith.constant 9.99999974E-6 : f32
    %441 = vector.broadcast %cst_166 : f32 to vector<1x1xf32>
    %442 = arith.addf %438, %441 : vector<1x1xf32>
    %443 = math.rsqrt %442 : vector<1x1xf32>
    %444 = vector.broadcast %443 : vector<1x1xf32> to vector<1x32xf32>
    %445 = arith.mulf %440, %444 : vector<1x32xf32>
    %446 = arith.mulf %445, %26 : vector<1x32xf32>
    %447 = arith.addf %446, %27 : vector<1x32xf32>
    %448 = tpu.concatenate %337, %447 in 1 : vector<1x32xf32>, vector<1x32xf32> -> vector<1x64xf32>
    %c360_167 = arith.constant 360 : index
    %c0_168 = arith.constant 0 : index
    %449 = vector.load %arg2[%c360_167, %c0_168] : memref<424x128xf32, #tpu.memory_space<vmem>>, vector<64x128xf32>
    %cst_169 = arith.constant dense<0.000000e+00> : vector<1x128xf32>
    %450 = tpu.matmul %448, %449, %cst_169 {dimension_numbers = #tpu.dot_dimension_numbers<[1], [0], [0], [1], [0, 0, 1, 1], [], []>} : vector<1x64xf32>, vector<64x128xf32>, vector<1x128xf32> -> vector<1x128xf32>
    %451 = arith.addf %450, %13 : vector<1x128xf32>
    %452 = vector.broadcast %2 : f32 to vector<1x128xf32>
    %453 = arith.mulf %451, %452 : vector<1x128xf32>
    %454 = arith.addf %312, %453 : vector<1x128xf32>
    %c3_170 = arith.constant 3 : index
    %455 = memref.load %arg0[%c3_170] : memref<5xf32, #tpu.memory_space<smem>>
    %456 = vector.broadcast %455 : f32 to vector<1x128xf32>
    %457 = arith.mulf %456, %7 : vector<1x128xf32>
    %458 = arith.addf %454, %457 : vector<1x128xf32>
    %459 = arith.addf %458, %11 : vector<1x128xf32>
    %460 = vector.extract_strided_slice %459 {offsets = [0, 0], sizes = [1, 72], strides = [1, 1]} : vector<1x128xf32> to vector<1x72xf32>
    %c0_171 = arith.constant 0 : index
    %c0_172 = arith.constant 0 : index
    %461 = vector.load %arg2[%c0_171, %c0_172] : memref<424x128xf32, #tpu.memory_space<vmem>>, vector<72x128xf32>
    %cst_173 = arith.constant dense<0.000000e+00> : vector<1x128xf32>
    %462 = tpu.matmul %460, %461, %cst_173 {dimension_numbers = #tpu.dot_dimension_numbers<[1], [0], [0], [1], [0, 0, 1, 1], [], []>} : vector<1x72xf32>, vector<72x128xf32>, vector<1x128xf32> -> vector<1x128xf32>
    %463 = vector.extract_strided_slice %462 {offsets = [0, 0], sizes = [1, 32], strides = [1, 1]} : vector<1x128xf32> to vector<1x32xf32>
    %464 = vector.extract_strided_slice %462 {offsets = [0, 32], sizes = [1, 32], strides = [1, 1]} : vector<1x128xf32> to vector<1x32xf32>
    %465 = math.tanh %464 : vector<1x32xf32>
    %c72_174 = arith.constant 72 : index
    %c0_175 = arith.constant 0 : index
    %466 = vector.load %arg2[%c72_174, %c0_175] : memref<424x128xf32, #tpu.memory_space<vmem>>, vector<32x128xf32>
    %cst_176 = arith.constant dense<0.000000e+00> : vector<1x128xf32>
    %467 = tpu.matmul %465, %466, %cst_176 {dimension_numbers = #tpu.dot_dimension_numbers<[1], [0], [0], [1], [0, 0, 1, 1], [], []>} : vector<1x32xf32>, vector<32x128xf32>, vector<1x128xf32> -> vector<1x128xf32>
    %468 = vector.extract_strided_slice %467 {offsets = [0, 0], sizes = [1, 32], strides = [1, 1]} : vector<1x128xf32> to vector<1x32xf32>
    %469 = arith.addf %468, %12 : vector<1x32xf32>
    %cst_177 = arith.constant 0.000000e+00 : f32
    %470 = vector.broadcast %cst_177 : f32 to vector<1x32xf32>
    %471 = arith.maximumf %469, %470 : vector<1x32xf32>
    %472 = math.absf %469 : vector<1x32xf32>
    %cst_178 = arith.constant 0.000000e+00 : f32
    %473 = vector.broadcast %cst_178 : f32 to vector<1x32xf32>
    %474 = arith.subf %473, %472 : vector<1x32xf32>
    %475 = math.exp %474 : vector<1x32xf32>
    %cst_179 = arith.constant 1.000000e+00 : f32
    %476 = vector.broadcast %cst_179 : f32 to vector<1x32xf32>
    %477 = arith.addf %476, %475 : vector<1x32xf32>
    %478 = math.log %477 : vector<1x32xf32>
    %479 = arith.addf %471, %478 : vector<1x32xf32>
    %c104_180 = arith.constant 104 : index
    %c0_181 = arith.constant 0 : index
    %480 = vector.load %arg2[%c104_180, %c0_181] : memref<424x128xf32, #tpu.memory_space<vmem>>, vector<32x128xf32>
    %cst_182 = arith.constant dense<0.000000e+00> : vector<1x128xf32>
    %481 = tpu.matmul %463, %480, %cst_182 {dimension_numbers = #tpu.dot_dimension_numbers<[1], [0], [0], [1], [0, 0, 1, 1], [], []>} : vector<1x32xf32>, vector<32x128xf32>, vector<1x128xf32> -> vector<1x128xf32>
    %482 = vector.extract_strided_slice %481 {offsets = [0, 0], sizes = [1, 32], strides = [1, 1]} : vector<1x128xf32> to vector<1x32xf32>
    %483 = arith.addf %482, %14 : vector<1x32xf32>
    %cst_183 = arith.constant dense<0.000000e+00> : vector<1xf32>
    %484 = vector.multi_reduction <add>, %483, %cst_183 [1] : vector<1x32xf32> to vector<1xf32>
    %485 = vector.shape_cast %484 : vector<1xf32> to vector<1x1xf32>
    %cst_184 = arith.constant 3.200000e+01 : f32
    %486 = vector.broadcast %cst_184 : f32 to vector<1x1xf32>
    %487 = arith.divf %485, %486 : vector<1x1xf32>
    %488 = vector.broadcast %487 : vector<1x1xf32> to vector<1x32xf32>
    %489 = arith.subf %483, %488 : vector<1x32xf32>
    %490 = arith.mulf %489, %489 : vector<1x32xf32>
    %cst_185 = arith.constant dense<0.000000e+00> : vector<1xf32>
    %491 = vector.multi_reduction <add>, %490, %cst_185 [1] : vector<1x32xf32> to vector<1xf32>
    %492 = vector.shape_cast %491 : vector<1xf32> to vector<1x1xf32>
    %cst_186 = arith.constant 3.200000e+01 : f32
    %493 = vector.broadcast %cst_186 : f32 to vector<1x1xf32>
    %494 = arith.divf %492, %493 : vector<1x1xf32>
    %495 = vector.broadcast %487 : vector<1x1xf32> to vector<1x32xf32>
    %496 = arith.subf %483, %495 : vector<1x32xf32>
    %cst_187 = arith.constant 9.99999974E-6 : f32
    %497 = vector.broadcast %cst_187 : f32 to vector<1x1xf32>
    %498 = arith.addf %494, %497 : vector<1x1xf32>
    %499 = math.rsqrt %498 : vector<1x1xf32>
    %500 = vector.broadcast %499 : vector<1x1xf32> to vector<1x32xf32>
    %501 = arith.mulf %496, %500 : vector<1x32xf32>
    %502 = arith.mulf %501, %15 : vector<1x32xf32>
    %503 = arith.addf %502, %16 : vector<1x32xf32>
    %c136_188 = arith.constant 136 : index
    %c0_189 = arith.constant 0 : index
    %504 = vector.load %arg2[%c136_188, %c0_189] : memref<424x128xf32, #tpu.memory_space<vmem>>, vector<32x128xf32>
    %cst_190 = arith.constant dense<0.000000e+00> : vector<1x128xf32>
    %505 = tpu.matmul %503, %504, %cst_190 {dimension_numbers = #tpu.dot_dimension_numbers<[1], [0], [0], [1], [0, 0, 1, 1], [], []>} : vector<1x32xf32>, vector<32x128xf32>, vector<1x128xf32> -> vector<1x128xf32>
    %506 = vector.extract_strided_slice %505 {offsets = [0, 0], sizes = [1, 64], strides = [1, 1]} : vector<1x128xf32> to vector<1x64xf32>
    %507 = arith.addf %506, %17 : vector<1x64xf32>
    %cst_191 = arith.constant 0.000000e+00 : f32
    %508 = vector.broadcast %cst_191 : f32 to vector<1x64xf32>
    %509 = arith.maximumf %507, %508 : vector<1x64xf32>
    %c168_192 = arith.constant 168 : index
    %c0_193 = arith.constant 0 : index
    %510 = vector.load %arg2[%c168_192, %c0_193] : memref<424x128xf32, #tpu.memory_space<vmem>>, vector<64x128xf32>
    %cst_194 = arith.constant dense<0.000000e+00> : vector<1x128xf32>
    %511 = tpu.matmul %509, %510, %cst_194 {dimension_numbers = #tpu.dot_dimension_numbers<[1], [0], [0], [1], [0, 0, 1, 1], [], []>} : vector<1x64xf32>, vector<64x128xf32>, vector<1x128xf32> -> vector<1x128xf32>
    %512 = vector.extract_strided_slice %511 {offsets = [0, 0], sizes = [1, 32], strides = [1, 1]} : vector<1x128xf32> to vector<1x32xf32>
    %513 = arith.addf %512, %18 : vector<1x32xf32>
    %514 = arith.addf %503, %513 : vector<1x32xf32>
    %cst_195 = arith.constant dense<0.000000e+00> : vector<1xf32>
    %515 = vector.multi_reduction <add>, %514, %cst_195 [1] : vector<1x32xf32> to vector<1xf32>
    %516 = vector.shape_cast %515 : vector<1xf32> to vector<1x1xf32>
    %cst_196 = arith.constant 3.200000e+01 : f32
    %517 = vector.broadcast %cst_196 : f32 to vector<1x1xf32>
    %518 = arith.divf %516, %517 : vector<1x1xf32>
    %519 = vector.broadcast %518 : vector<1x1xf32> to vector<1x32xf32>
    %520 = arith.subf %514, %519 : vector<1x32xf32>
    %521 = arith.mulf %520, %520 : vector<1x32xf32>
    %cst_197 = arith.constant dense<0.000000e+00> : vector<1xf32>
    %522 = vector.multi_reduction <add>, %521, %cst_197 [1] : vector<1x32xf32> to vector<1xf32>
    %523 = vector.shape_cast %522 : vector<1xf32> to vector<1x1xf32>
    %cst_198 = arith.constant 3.200000e+01 : f32
    %524 = vector.broadcast %cst_198 : f32 to vector<1x1xf32>
    %525 = arith.divf %523, %524 : vector<1x1xf32>
    %526 = vector.broadcast %518 : vector<1x1xf32> to vector<1x32xf32>
    %527 = arith.subf %514, %526 : vector<1x32xf32>
    %cst_199 = arith.constant 9.99999974E-6 : f32
    %528 = vector.broadcast %cst_199 : f32 to vector<1x1xf32>
    %529 = arith.addf %525, %528 : vector<1x1xf32>
    %530 = math.rsqrt %529 : vector<1x1xf32>
    %531 = vector.broadcast %530 : vector<1x1xf32> to vector<1x32xf32>
    %532 = arith.mulf %527, %531 : vector<1x32xf32>
    %533 = arith.mulf %532, %19 : vector<1x32xf32>
    %534 = arith.addf %533, %20 : vector<1x32xf32>
    %c232_200 = arith.constant 232 : index
    %c0_201 = arith.constant 0 : index
    %535 = vector.load %arg2[%c232_200, %c0_201] : memref<424x128xf32, #tpu.memory_space<vmem>>, vector<32x128xf32>
    %cst_202 = arith.constant dense<0.000000e+00> : vector<1x128xf32>
    %536 = tpu.matmul %534, %535, %cst_202 {dimension_numbers = #tpu.dot_dimension_numbers<[1], [0], [0], [1], [0, 0, 1, 1], [], []>} : vector<1x32xf32>, vector<32x128xf32>, vector<1x128xf32> -> vector<1x128xf32>
    %537 = vector.extract_strided_slice %536 {offsets = [0, 0], sizes = [1, 32], strides = [1, 1]} : vector<1x128xf32> to vector<1x32xf32>
    %538 = arith.addf %537, %21 : vector<1x32xf32>
    %cst_203 = arith.constant dense<0.000000e+00> : vector<1xf32>
    %539 = vector.multi_reduction <add>, %538, %cst_203 [1] : vector<1x32xf32> to vector<1xf32>
    %540 = vector.shape_cast %539 : vector<1xf32> to vector<1x1xf32>
    %cst_204 = arith.constant 3.200000e+01 : f32
    %541 = vector.broadcast %cst_204 : f32 to vector<1x1xf32>
    %542 = arith.divf %540, %541 : vector<1x1xf32>
    %543 = vector.broadcast %542 : vector<1x1xf32> to vector<1x32xf32>
    %544 = arith.subf %538, %543 : vector<1x32xf32>
    %545 = arith.mulf %544, %544 : vector<1x32xf32>
    %cst_205 = arith.constant dense<0.000000e+00> : vector<1xf32>
    %546 = vector.multi_reduction <add>, %545, %cst_205 [1] : vector<1x32xf32> to vector<1xf32>
    %547 = vector.shape_cast %546 : vector<1xf32> to vector<1x1xf32>
    %cst_206 = arith.constant 3.200000e+01 : f32
    %548 = vector.broadcast %cst_206 : f32 to vector<1x1xf32>
    %549 = arith.divf %547, %548 : vector<1x1xf32>
    %550 = vector.broadcast %542 : vector<1x1xf32> to vector<1x32xf32>
    %551 = arith.subf %538, %550 : vector<1x32xf32>
    %cst_207 = arith.constant 9.99999974E-6 : f32
    %552 = vector.broadcast %cst_207 : f32 to vector<1x1xf32>
    %553 = arith.addf %549, %552 : vector<1x1xf32>
    %554 = math.rsqrt %553 : vector<1x1xf32>
    %555 = vector.broadcast %554 : vector<1x1xf32> to vector<1x32xf32>
    %556 = arith.mulf %551, %555 : vector<1x32xf32>
    %557 = arith.mulf %556, %22 : vector<1x32xf32>
    %558 = arith.addf %557, %23 : vector<1x32xf32>
    %c264_208 = arith.constant 264 : index
    %c0_209 = arith.constant 0 : index
    %559 = vector.load %arg2[%c264_208, %c0_209] : memref<424x128xf32, #tpu.memory_space<vmem>>, vector<32x128xf32>
    %cst_210 = arith.constant dense<0.000000e+00> : vector<1x128xf32>
    %560 = tpu.matmul %558, %559, %cst_210 {dimension_numbers = #tpu.dot_dimension_numbers<[1], [0], [0], [1], [0, 0, 1, 1], [], []>} : vector<1x32xf32>, vector<32x128xf32>, vector<1x128xf32> -> vector<1x128xf32>
    %561 = vector.extract_strided_slice %560 {offsets = [0, 0], sizes = [1, 64], strides = [1, 1]} : vector<1x128xf32> to vector<1x64xf32>
    %562 = arith.addf %561, %24 : vector<1x64xf32>
    %cst_211 = arith.constant 0.000000e+00 : f32
    %563 = vector.broadcast %cst_211 : f32 to vector<1x64xf32>
    %564 = arith.maximumf %562, %563 : vector<1x64xf32>
    %c296_212 = arith.constant 296 : index
    %c0_213 = arith.constant 0 : index
    %565 = vector.load %arg2[%c296_212, %c0_213] : memref<424x128xf32, #tpu.memory_space<vmem>>, vector<64x128xf32>
    %cst_214 = arith.constant dense<0.000000e+00> : vector<1x128xf32>
    %566 = tpu.matmul %564, %565, %cst_214 {dimension_numbers = #tpu.dot_dimension_numbers<[1], [0], [0], [1], [0, 0, 1, 1], [], []>} : vector<1x64xf32>, vector<64x128xf32>, vector<1x128xf32> -> vector<1x128xf32>
    %567 = vector.extract_strided_slice %566 {offsets = [0, 0], sizes = [1, 32], strides = [1, 1]} : vector<1x128xf32> to vector<1x32xf32>
    %568 = arith.addf %567, %25 : vector<1x32xf32>
    %569 = arith.addf %558, %568 : vector<1x32xf32>
    %cst_215 = arith.constant dense<0.000000e+00> : vector<1xf32>
    %570 = vector.multi_reduction <add>, %569, %cst_215 [1] : vector<1x32xf32> to vector<1xf32>
    %571 = vector.shape_cast %570 : vector<1xf32> to vector<1x1xf32>
    %cst_216 = arith.constant 3.200000e+01 : f32
    %572 = vector.broadcast %cst_216 : f32 to vector<1x1xf32>
    %573 = arith.divf %571, %572 : vector<1x1xf32>
    %574 = vector.broadcast %573 : vector<1x1xf32> to vector<1x32xf32>
    %575 = arith.subf %569, %574 : vector<1x32xf32>
    %576 = arith.mulf %575, %575 : vector<1x32xf32>
    %cst_217 = arith.constant dense<0.000000e+00> : vector<1xf32>
    %577 = vector.multi_reduction <add>, %576, %cst_217 [1] : vector<1x32xf32> to vector<1xf32>
    %578 = vector.shape_cast %577 : vector<1xf32> to vector<1x1xf32>
    %cst_218 = arith.constant 3.200000e+01 : f32
    %579 = vector.broadcast %cst_218 : f32 to vector<1x1xf32>
    %580 = arith.divf %578, %579 : vector<1x1xf32>
    %581 = vector.broadcast %573 : vector<1x1xf32> to vector<1x32xf32>
    %582 = arith.subf %569, %581 : vector<1x32xf32>
    %cst_219 = arith.constant 9.99999974E-6 : f32
    %583 = vector.broadcast %cst_219 : f32 to vector<1x1xf32>
    %584 = arith.addf %580, %583 : vector<1x1xf32>
    %585 = math.rsqrt %584 : vector<1x1xf32>
    %586 = vector.broadcast %585 : vector<1x1xf32> to vector<1x32xf32>
    %587 = arith.mulf %582, %586 : vector<1x32xf32>
    %588 = arith.mulf %587, %26 : vector<1x32xf32>
    %589 = arith.addf %588, %27 : vector<1x32xf32>
    %590 = tpu.concatenate %479, %589 in 1 : vector<1x32xf32>, vector<1x32xf32> -> vector<1x64xf32>
    %c360_220 = arith.constant 360 : index
    %c0_221 = arith.constant 0 : index
    %591 = vector.load %arg2[%c360_220, %c0_221] : memref<424x128xf32, #tpu.memory_space<vmem>>, vector<64x128xf32>
    %cst_222 = arith.constant dense<0.000000e+00> : vector<1x128xf32>
    %592 = tpu.matmul %590, %591, %cst_222 {dimension_numbers = #tpu.dot_dimension_numbers<[1], [0], [0], [1], [0, 0, 1, 1], [], []>} : vector<1x64xf32>, vector<64x128xf32>, vector<1x128xf32> -> vector<1x128xf32>
    %593 = arith.addf %592, %13 : vector<1x128xf32>
    %594 = vector.broadcast %2 : f32 to vector<1x128xf32>
    %595 = arith.mulf %593, %594 : vector<1x128xf32>
    %596 = arith.addf %454, %595 : vector<1x128xf32>
    %cst_223 = arith.constant 0.000000e+00 : f32
    %597 = vector.broadcast %cst_223 : f32 to vector<3x128xf32>
    %598 = tpu.concatenate %28, %170, %312, %454, %596, %597 in 0 : vector<1x128xf32>, vector<1x128xf32>, vector<1x128xf32>, vector<1x128xf32>, vector<1x128xf32>, vector<3x128xf32> -> vector<8x128xf32>
    %c0_224 = arith.constant 0 : index
    %c0_225 = arith.constant 0 : index
    %599 = vector.load %arg4[%c0_224, %c0_225] : memref<8x128xf32, #tpu.memory_space<vmem>>, vector<8x128xf32>
    tpu.vector_store %arg4[%c0_224, %c0_225], %598 {strides = array<i32>} : memref<8x128xf32, #tpu.memory_space<vmem>>, vector<8x128xf32>,
    return
  }
}

</mosaic_0001>

<bundles_post_ra>
// kernel: tpu_custom_call.1
= control target key start
LH: loop header
LB: loop body
LE: loop exit
PB: predicated region body
PF: predicated region fallthrough
CT: control target
= control target key end

     0   :  { %9 = vsyncpa [#allocation5], 0  ;;  %s5165_s0 = inlined_call_operand.hbm [shape: f32[5], index: 0, kind: input, shape index: {}]   ;;  %s5166_s1 = inlined_call_operand.vmem [shape: f32[1,128], index: 1, kind: input, shape index: {}]   ;;  %s5167_s2 = inlined_call_operand.hbm [shape: f32[424,128], index: 2, kind: input, shape index: {}]   ;;  %s5168_s3 = inlined_call_operand.hbm [shape: f32[16,128], index: 3, kind: input, shape index: {}]   ;;  %s5169_s4 = inlined_call_operand.hbm [shape: f32[8,128], index: 4, kind: output, shape index: {}]  }
   0x1   :  { %10 = vsyncpa [#allocation3], 0 }
   0x2   :  { %11 = vsyncpa [#allocation8], 0 }
   0x3   :  { %12 = vsyncpa [#allocation4], 0  ;;  %s4235_s15 = smov [#allocation2]   ;;  %s4236_s18 = smov [#allocation6]  }
   0x4   :  { %20 = dma.hbm_to_smem %s5165_s0, 16, %s4235_s15, [#allocation5]  }
   0x5   :  { %s28_s19 = sshll.u32 %s4236_s18, 4  ;;  %s29_s19 = int_to_ptr.vmem [resolvable:$true] %s28_s19 }
   0x6   :  { %s4175_s20 = scalar_lea.vmem %s29_s19, 6784  ;;  %p4180_p1 = scmp.lt.s32.totalorder %s29_s19, %s29_s19 }
   0x7   :  { %p4176_p0 = scmp.ne.s32.totalorder %s29_s19, %s4175_s20  ;;  %p4181_p2 = scmp.lt.s32.totalorder %s4175_s20, %s4175_s20 }
   0x9   :  { %p4182_p3 = por %p4181_p2, %p4180_p1 }
   0xb   :  { %p4183_p4 = pnand %p4182_p3, %p4176_p0 }
   0xd   :  { %4186 = shalt.err (!%p4183_p4)
}
   0xe   :  { %s4237_s21 = smov 128   ;;  %s4238_s22 = smov 8  }
   0xf   :  { %34 = dma.hbm_to_vmem [thread:$0]  %s5167_s2, 6784, %s29_s19, [#allocation3], %s4237_s21, %s4237_s21, %s4238_s22  }
  0x10   :  { %s4239_s25 = smov [#allocation7]  }
  0x11   :  { %s40_s26 = sshll.u32 %s4239_s25, 4  ;;  %s41_s26 = int_to_ptr.vmem [resolvable:$true] %s40_s26 }
  0x12   :  { %s4195_s0 = scalar_lea.vmem %s41_s26, 256  ;;  %p4200_p6 = scmp.lt.s32.totalorder %s41_s26, %s41_s26 }
  0x13   :  { %p4196_p5 = scmp.ne.s32.totalorder %s41_s26, %s4195_s0  ;;  %p4201_p7 = scmp.lt.s32.totalorder %s4195_s0, %s4195_s0 }
  0x15   :  { %p4202_p8 = por %p4201_p7, %p4200_p6 }
  0x17   :  { %p4203_p9 = pnand %p4202_p8, %p4196_p5 }
  0x19   :  { %4206 = shalt.err (!%p4203_p9)
}
  0x1a   :  { %46 = dma.hbm_to_vmem [thread:$0]  %s5168_s3, 256, %s41_s26, [#allocation8], %s4237_s21, %s4237_s21, %s4238_s22  }
  0x1b   :  { %4227 = dma.done.wait [#allocation5], 16  }
  0x1c   :  { %4228 = vsyncadd [#allocation5], 4294967280 }
  0x1d   :  { %4229 = dma.done.wait [#allocation3], 6784  }
  0x1e   :  { %4230 = vsyncadd [#allocation3], 4294960512 }
  0x1f   :  { %4231 = dma.done.wait [#allocation8], 256  }
  0x20   :  { %4232 = vsyncadd [#allocation8], 4294967040 }
  0x21   :  { %56 = sfence }
  0x22   :  { %v4279_v0 = vld [vmem:[#allocation6 + $0x40] sm:$0xff]  ;;  %v5170_v1 = vlaneseq  ;;  %v5173_v2 = vmov 0.0   ;;  %v4282_v3 = vld [vmem:[#allocation6 + $0x38] sm:$0xff]  ;;  %vm4241_vm0 = vmmov 0   ;;  %s4286_s2 = sld [smem:[#allocation2]]  ;;  %v4292_v5 = vld [vmem:[#allocation6 + $0x30] sm:$0xff] }
  0x23   :  { %3491 = vmatprep.subr.mxu0 %v5173_v2  ;;  %3509 = vmatprep.mubr.msk.f32.mxu0 %vm4241_vm0, %v5173_v2  ;;  %v4298_v6 = vld [vmem:[#allocation6 + $0x28] sm:$0xff]  ;;  %v4305_v8 = vld [vmem:[#allocation6 + $0x20] sm:$0xff]  ;;  %v4316_v12 = vld [vmem:[#allocation6 + $0x18] sm:$0xff]  ;;  %vm98_vm3 = vcmask 588800   ;;  %s4242_s30 = smov 96   ;;  %vm180_vm4 = vcmask 261120  }
  0x24   :  { %3492 = vmatpush3.msra.mxu0 %v4279_v0  ;;  %v61_v4 = vand.u32 127, %v5170_v1  ;;  %3512 = vmatprep.subr.mxu1 %v5173_v2  ;;  %v4312_v10 = vld [vmem:[%s5166_s1] sm:$0x1]  ;;  %v4320_v13 = vld [vmem:[#allocation6 + $0x10] sm:$0xff]  ;;  %v4328_v16 = vld [vmem:[#allocation6 + $0x8] sm:$0xff]  ;;  %vm341_vm5 = vcmask 253952  }
  0x25   :  { %3493 = vmatprep.subr.mxu0 %v5173_v2  ;;  %3520 = vmatprep.mubr.msk.f32.mxu1 %vm4241_vm0, %v5173_v2  ;;  %v4332_v17 = vld [vmem:[#allocation6] sm:$0xff]  ;;  %v4344_v20 = vld [vmem:[#allocation6 + $0x58] sm:$0xff]  ;;  %v4348_v21 = vld [vmem:[#allocation6 + $0x50] sm:$0xff]  ;;  %vm445_vm6 = vcmask 523264   ;;  %s4243_s5 = smov 32   ;;  %s3202_s6 = sld [smem:[#allocation2 + $0x1]] }
  0x26   :  { %3494 = vmatpush3.msra.mxu0 %v4282_v3  ;;  %vm62_vm1 = vcmp.eq.s32.totalorder %v61_v4, 64  ;;  %vm65_vm2 = vcmp.eq.s32.totalorder %v61_v4, 65  ;;  %5198 = vst [vmem:[#allocation14_spill] sm:$0xff] %v4332_v17  ;;  %v4342_v19 = vld [vmem:[#allocation6 + $0x60] sm:$0xff]  ;;  %v4352_v22 = vld [vmem:[#allocation6 + $0x48] sm:$0xff]  ;;  %v4362_v28 = vld [vmem:[#allocation6 + $0x78] sm:$0xff] }
  0x27   :  { %3495 = vmatprep.subr.mxu0 %v5173_v2  ;;  %v4301_v7 = vsel %vm62_vm1, 1.0, %v5173_v2  ;;  %v4325_v15 = vsel %vm65_vm2, 1.0, %v5173_v2  ;;  %3513 = vmatpush3.msra.mxu1 %v4342_v19  ;;  %v4359_v26 = vld [vmem:[#allocation6 + $0x80] sm:$0xff]  ;;  %v4368_v29 = vld [vmem:[#allocation6 + $0x70] sm:$0xff]  ;;  %v4372_v30 = vld [vmem:[#allocation6 + $0x68] sm:$0xff]  ;;  %s3223_s8 = sld [smem:[#allocation2 + $0x2]] }
  0x28   :  { %3496 = vmatpush3.msra.mxu0 %v4292_v5  ;;  %v85_v9 = vstv %s4286_s2  ;;  %3514 = vmatprep.subr.mxu1 %v5173_v2  ;;  %v4383_v33 = vld [vmem:[#allocation7 + $0x2] sm:$0x1]  ;;  %v4388_v43 = vld [vmem:[#allocation6 + $0xa0] sm:$0xff]  ;;  %v4392_v44 = vld [vmem:[#allocation6 + $0x98] sm:$0xff]  ;;  %s3233_s9 = sld [smem:[#allocation2 + $0x3]]  ;;  %vm3174_vm7 = vcmask 1040384  }
  0x29   :  { %3497 = vmatprep.subr.mxu0 %v5173_v2  ;;  %v86_v11 = vmul.f32 %v4301_v7, %v85_v9  ;;  %3515 = vmatpush3.msra.mxu1 %v4344_v20  ;;  %v4394_v45 = vld [vmem:[#allocation6 + $0x90] sm:$0xff]  ;;  %v4398_v46 = vld [vmem:[#allocation6 + $0x88] sm:$0xff]  ;;  %v4403_v47 = vld [vmem:[#allocation6 + $0xe0] sm:$0xff]  ;;  %vm3176_vm8 = vcmask 1041408   ;;  %vm3178_vm9 = vcmask 1042432   ;;  %vm3180_vm10 = vcmask 1043456  }
  0x2a   :  { %3498 = vmatpush3.msra.mxu0 %v4298_v6  ;;  %3516 = vmatprep.subr.mxu1 %v5173_v2  ;;  %v4405_v48 = vld [vmem:[#allocation6 + $0xd8] sm:$0xff]  ;;  %v4410_v49 = vld [vmem:[#allocation6 + $0xd0] sm:$0xff]  ;;  %v4414_v50 = vld [vmem:[#allocation6 + $0xc8] sm:$0xff]  ;;  %s4244_s12 = smov [#allocation9]   ;;  %vm3182_vm11 = vcmask 1044480  }
  0x2b   :  { %3499 = vmatprep.subr.mxu0 %v5173_v2  ;;  %v87_v14 = vadd.f32 %v86_v11, %v4312_v10  ;;  %3517 = vmatpush3.msra.mxu1 %v4348_v21  ;;  %v4418_v51 = vld [vmem:[#allocation6 + $0xc0] sm:$0xff]  ;;  %v4424_v56 = vld [vmem:[#allocation7 + $0x3] sm:$0x1]  ;;  %v4426_v58 = vld [vmem:[#allocation7 + $0x4] sm:$0x1]  ;;  %s59_s7 = ssub.f32 %s3202_s6, %s4286_s2  ;;  %s3191_s13 = sshll.u32 %s4244_s12, 4  ;;  %s3192_s13 = int_to_ptr.vmem [resolvable:$true] %s3191_s13 }
  0x2c   :  { %3500 = vmatpush3.msra.mxu0 %v4305_v8  ;;  %3518 = vmatprep.subr.mxu1 %v5173_v2  ;;  %v4433_v61 = vld [vmem:[#allocation6 + $0xb8] sm:$0xff]  ;;  %v4437_v62 = vld [vmem:[#allocation6 + $0xb0] sm:$0xff]  ;;  %v4441_v63 = vld [vmem:[#allocation6 + $0xa8] sm:$0xff]  ;;  %s4207_s14 = scalar_lea.vmem %s3192_s13, 128  ;;  %p4212_p11 = scmp.lt.s32.totalorder %s3192_s13, %s3192_s13 }
  0x2d   :  { %3501 = vmatprep.subr.mxu0 %v5173_v2  ;;  %v88_v18 = vadd.f32 %v4325_v15, %v87_v14  ;;  %3519 = vmatpush3.msra.mxu1 %v4352_v22  ;;  %v4445_v4 = vld [vmem:[#allocation7 + $0x5] sm:$0x1]  ;;  %p4208_p10 = scmp.ne.s32.totalorder %s3192_s13, %s4207_s14  ;;  %p4213_p12 = scmp.lt.s32.totalorder %s4207_s14, %s4207_s14 }
  0x2e   :  { %3502 = vmatpush3.msra.mxu0 %v4316_v12  ;;  %3523 = vmatprep.subr.mxu1 %v5173_v2 }
  0x2f   :  { %3503 = vmatprep.subr.mxu0 %v5173_v2  ;;  %p4214_p13 = por %p4213_p12, %p4212_p11 }
  0x30   :  { %3504 = vmatpush3.msra.mxu0 %v4320_v13 }
  0x31   :  { %3505 = vmatprep.subr.mxu0 %v5173_v2  ;;  %p4215_p0 = pnand %p4214_p13, %p4208_p10 }
  0x32   :  { %3506 = vmatpush3.msra.mxu0 %v4328_v16 }
  0x33   :  { %3507 = vmatprep.subr.mxu0 %v5173_v2 }
  0x34   :  { %3508 = vmatpush3.msra.mxu0 %v4332_v17 }
  0x35   :  { %3510 = vmatmul.mubr.msk.f32.vlgmr.msra.gmra.mxu0 %vm98_vm3, %v88_v18  ;;  %3545 = vmatprep.subr.mxu0 %v5173_v2 }
  0x36   :  { %3561 = vmatprep.mubr.msk.f32.mxu0 %vm4241_vm0, %v5173_v2  ;;  %3546 = vmatpush3.msra.mxu0 %v4403_v47 }
  0x37   :  { %3547 = vmatprep.subr.mxu0 %v5173_v2 }
  0x38   :  { %3548 = vmatpush3.msra.mxu0 %v4405_v48 }
  0x39   :  { %3549 = vmatprep.subr.mxu0 %v5173_v2 }
  0x3a   :  { %3550 = vmatpush3.msra.mxu0 %v4410_v49 }
  0x3b   :  { %3551 = vmatprep.subr.mxu0 %v5173_v2 }
  0x3c   :  { %3552 = vmatpush3.msra.mxu0 %v4414_v50 }
  0x3d   :  { %3553 = vmatprep.subr.mxu0 %v5173_v2 }
  0x3e   :  { %3554 = vmatpush3.msra.mxu0 %v4418_v51 }
  0x3f   :  { %3555 = vmatprep.subr.mxu0 %v5173_v2 }
  0x40   :  { %3556 = vmatpush3.msra.mxu0 %v4433_v61 }
  0x41   :  { %3557 = vmatprep.subr.mxu0 %v5173_v2 }
  0x42   :  { %3558 = vmatpush3.msra.mxu0 %v4437_v62 }
  0x43   :  { %3559 = vmatprep.subr.mxu0 %v5173_v2 }
  0x44   :  { %3560 = vmatpush3.msra.mxu0 %v4441_v63 }
  0x45   :  { %3586 = vmatprep.subr.mxu0 %v5173_v2 }
  0xf5   :  { %v168_v23 = vpop.f32.mrf.mxu0 }
  0xf6   :  { %4033 = vtanh.f32 %v168_v23 }
  0xf7   :  { %v3511_v24 = vpop.f32.mrf.mxu0 }
 0x103   :  { %v4034_v25 = vpop.eup %4033 }
 0x104   :  { %178 = vrot.lane.b32.xlu0 %v4034_v25, %s4242_s30 }
 0x176   :  { %v179_v27 = vpop.permute.xlu0 %178 }
 0x177   :  { %3521 = vmatmul.mubr.msk.f32.vlgmr.msra.gmra.mxu1 %vm180_vm4, %v179_v27 }
 0x178   :  { %3524 = vmatpush3.msra.mxu1 %v4359_v26  ;;  %3531 = vmatprep.mubr.msk.f32.mxu1 %vm4241_vm0, %v5173_v2 }
 0x179   :  { %3525 = vmatprep.subr.mxu1 %v5173_v2 }
 0x17a   :  { %3526 = vmatpush3.msra.mxu1 %v4362_v28 }
 0x17b   :  { %3527 = vmatprep.subr.mxu1 %v5173_v2 }
 0x17c   :  { %3528 = vmatpush3.msra.mxu1 %v4368_v29 }
 0x17d   :  { %3529 = vmatprep.subr.mxu1 %v5173_v2 }
 0x17e   :  { %3530 = vmatpush3.msra.mxu1 %v4372_v30 }
 0x17f   :  { %3532 = vmatmul.mubr.msk.f32.vlgmr.msra.gmra.mxu1 %vm180_vm4, %v168_v23  ;;  %3534 = vmatprep.subr.mxu1 %v5173_v2  ;;  %v4451_v23 = vld [vmem:[#allocation7 + $0x6] sm:$0x1] }
 0x180   :  { %3542 = vmatprep.mubr.msk.f32.mxu1 %vm4241_vm0, %v5173_v2  ;;  %3535 = vmatpush3.msra.mxu1 %v4388_v43 }
 0x181   :  { %3536 = vmatprep.subr.mxu1 %v5173_v2 }
 0x182   :  { %3537 = vmatpush3.msra.mxu1 %v4392_v44 }
 0x183   :  { %3538 = vmatprep.subr.mxu1 %v5173_v2 }
 0x184   :  { %3539 = vmatpush3.msra.mxu1 %v4394_v45 }
 0x185   :  { %3540 = vmatprep.subr.mxu1 %v5173_v2 }
 0x186   :  { %3541 = vmatpush3.msra.mxu1 %v4398_v46 }
 0x187   :  { %3564 = vmatprep.subr.mxu1 %v5173_v2 }
 0x237   :  { %v4381_v31 = vpop.f32.mrf.mxu1 }
 0x239   :  { %v3522_v32 = vpop.f32.mrf.mxu1 }
 0x23f   :  { %v336_v34 = vpop.f32.mrf.mxu1 }
 0x240   :  { %v340_v35 = vadd.f32 %v336_v34, %v4383_v33 }
 0x241   :  { %v3533_v36 = vpop.f32.mrf.mxu1 }
 0x242   :  { %v342_v37 = vsel %vm341_vm5, %v340_v35, 0.0 }
 0x243   :  { %343 = vadd.xlane.f32.xlu0 %v342_v37 }
 0x2cc   :  { %v344_v38 = vpop.xlane.xlu0 %343 }
 0x2cd   :  { %v346_v39 = vmul.f32 0.03125, %v344_v38 }
 0x2cf   :  { %v347_v40 = vsub.f32 %v340_v35, %v346_v39 }
 0x2d1   :  { %v348_v41 = vmul.f32 %v347_v40, %v347_v40 }
 0x2d3   :  { %v349_v42 = vsel %vm341_vm5, %v348_v41, 0.0  ;;  %v4460_v41 = vld [vmem:[#allocation6 + $0xf8] sm:$0xff] }
 0x2d4   :  { %350 = vadd.xlane.f32.xlu1 %v349_v42  ;;  %v4462_v42 = vld [vmem:[#allocation6 + $0xf0] sm:$0xff] }
 0x35d   :  { %v351_v52 = vpop.xlane.xlu1 %350 }
 0x35e   :  { %v352_v53 = vmul.f32 0.03125, %v351_v52  ;;  %v4466_v52 = vld [vmem:[#allocation6 + $0xe8] sm:$0xff] }
 0x360   :  { %v353_v54 = vadd.f32 1e-05, %v352_v53 }
 0x362   :  { %4035 = vrsqrt.f32 %v353_v54 }
 0x36f   :  { %v4036_v55 = vpop.eup %4035 }
 0x370   :  { %v355_v57 = vmul.f32 %v4036_v55, %v347_v40  ;;  %v4456_v40 = vld [vmem:[#allocation6 + $0x100] sm:$0xff] }
 0x372   :  { %v356_v59 = vmul.f32 %v355_v57, %v4424_v56 }
 0x374   :  { %v357_v60 = vadd.f32 %v356_v59, %v4426_v58  ;;  %v4472_v59 = vld [vmem:[#allocation7 + $0x7] sm:$0x1] }
 0x376   :  { %3543 = vmatmul.mubr.msk.f32.vlgmr.msra.gmra.mxu1 %vm180_vm4, %v357_v60 }
 0x377   :  { %3572 = vmatprep.mubr.msk.f32.mxu1 %vm4241_vm0, %v5173_v2  ;;  %3565 = vmatpush3.msra.mxu1 %v4456_v40 }
 0x378   :  { %3566 = vmatprep.subr.mxu1 %v5173_v2 }
 0x379   :  { %3567 = vmatpush3.msra.mxu1 %v4460_v41 }
 0x37a   :  { %3568 = vmatprep.subr.mxu1 %v5173_v2 }
 0x37b   :  { %3569 = vmatpush3.msra.mxu1 %v4462_v42 }
 0x37c   :  { %3570 = vmatprep.subr.mxu1 %v5173_v2 }
 0x37d   :  { %3571 = vmatpush3.msra.mxu1 %v4466_v52 }
 0x37e   :  { %3575 = vmatprep.subr.mxu1 %v5173_v2 }
 0x436   :  { %v431_v9 = vpop.f32.mrf.mxu1 }
 0x437   :  { %v435_v11 = vadd.f32 %v431_v9, %v4445_v4  ;;  %v4474_v9 = vld [vmem:[#allocation7 + $0x8] sm:$0x1] }
 0x438   :  { %v3544_v14 = vpop.f32.mrf.mxu1 }
 0x439   :  { %v436_v18 = vmax.f32 %v435_v11, 0.0 }
 0x43b   :  { %3562 = vmatmul.mubr.msk.f32.vlgmr.msra.gmra.mxu0 %vm445_vm6, %v436_v18  ;;  %v4481_v18 = vld [vmem:[#allocation7 + $0x9] sm:$0x1] }
 0x43c   :  { %3602 = vmatprep.mubr.msk.f32.mxu0 %vm4241_vm0, %v5173_v2  ;;  %5199 = vst [vmem:[#allocation15_spill] sm:$0xff] %v4481_v18 }
 0x4fb   :  { %v515_v24 = vpop.f32.mrf.mxu0 }
 0x4fc   :  { %v519_v25 = vadd.f32 %v515_v24, %v4451_v23 }
 0x4fd   :  { %v3563_v27 = vpop.f32.mrf.mxu0 }
 0x4fe   :  { %v520_v32 = vadd.f32 %v519_v25, %v357_v60 }
 0x500   :  { %v521_v34 = vsel %vm341_vm5, %v520_v32, 0.0 }
 0x501   :  { %522 = vadd.xlane.f32.xlu1 %v521_v34 }
 0x58a   :  { %v523_v35 = vpop.xlane.xlu1 %522 }
 0x58b   :  { %v524_v36 = vmul.f32 0.03125, %v523_v35 }
 0x58d   :  { %v525_v37 = vsub.f32 %v520_v32, %v524_v36 }
 0x58f   :  { %v526_v38 = vmul.f32 %v525_v37, %v525_v37 }
 0x591   :  { %v527_v39 = vsel %vm341_vm5, %v526_v38, 0.0 }
 0x592   :  { %528 = vadd.xlane.f32.xlu1 %v527_v39  ;;  %v4486_v39 = vld [vmem:[#allocation6 + $0x120] sm:$0xff] }
 0x61b   :  { %v529_v53 = vpop.xlane.xlu1 %528 }
 0x61c   :  { %v530_v54 = vmul.f32 0.03125, %v529_v53  ;;  %v4490_v53 = vld [vmem:[#allocation6 + $0x118] sm:$0xff] }
 0x61e   :  { %v531_v55 = vadd.f32 1e-05, %v530_v54  ;;  %v4492_v54 = vld [vmem:[#allocation6 + $0x110] sm:$0xff] }
 0x620   :  { %4037 = vrsqrt.f32 %v531_v55  ;;  %v4496_v55 = vld [vmem:[#allocation6 + $0x108] sm:$0xff] }
 0x621   :  { %5200 = vst [vmem:[#allocation16_spill] sm:$0xff] %v4496_v55 }
 0x62d   :  { %v4038_v57 = vpop.eup %4037 }
 0x62e   :  { %v533_v60 = vmul.f32 %v4038_v57, %v525_v37  ;;  %v4501_v57 = vld [vmem:[#allocation6 + $0x160] sm:$0xff] }
 0x62f   :  { %3587 = vmatpush3.msra.mxu0 %v4501_v57 }
 0x630   :  { %v534_v11 = vmul.f32 %v533_v60, %v4472_v59  ;;  %v4503_v60 = vld [vmem:[#allocation6 + $0x158] sm:$0xff]  ;;  %3588 = vmatprep.subr.mxu0 %v5173_v2 }
 0x631   :  { %3589 = vmatpush3.msra.mxu0 %v4503_v60 }
 0x632   :  { %v535_v14 = vadd.f32 %v534_v11, %v4474_v9  ;;  %v4508_v11 = vld [vmem:[#allocation6 + $0x150] sm:$0xff]  ;;  %3590 = vmatprep.subr.mxu0 %v5173_v2 }
 0x633   :  { %3591 = vmatpush3.msra.mxu0 %v4508_v11 }
 0x634   :  { %3573 = vmatmul.mubr.msk.f32.vlgmr.msra.gmra.mxu1 %vm180_vm4, %v535_v14  ;;  %v4512_v14 = vld [vmem:[#allocation6 + $0x148] sm:$0xff]  ;;  %3592 = vmatprep.subr.mxu0 %v5173_v2 }
 0x635   :  { %3583 = vmatprep.mubr.msk.f32.mxu1 %vm4241_vm0, %v5173_v2  ;;  %3576 = vmatpush3.msra.mxu1 %v4486_v39 }
 0x636   :  { %3577 = vmatprep.subr.mxu1 %v5173_v2  ;;  %3593 = vmatpush3.msra.mxu0 %v4512_v14 }
 0x637   :  { %3578 = vmatpush3.msra.mxu1 %v4490_v53  ;;  %3594 = vmatprep.subr.mxu0 %v5173_v2 }
 0x638   :  { %3579 = vmatprep.subr.mxu1 %v5173_v2 }
 0x639   :  { %3580 = vmatpush3.msra.mxu1 %v4492_v54 }
 0x63a   :  { %3581 = vmatprep.subr.mxu1 %v5173_v2 }
 0x63b   :  { %3582 = vmatpush3.msra.mxu1 %v4496_v55  ;;  %v4531_v55 = vld [vmem:[#allocation6 + $0x138] sm:$0xff] }
 0x63c   :  { %3605 = vmatprep.subr.mxu1 %v5173_v2 }
 0x6f4   :  { %v609_v24 = vpop.f32.mrf.mxu1 }
 0x6f5   :  { %v613_v25 = vadd.f32 %v609_v24, %v4481_v18  ;;  %v4516_v24 = vld [vmem:[#allocation6 + $0x140] sm:$0xff] }
 0x6f6   :  { %v3574_v27 = vpop.f32.mrf.mxu1  ;;  %3595 = vmatpush3.msra.mxu0 %v4516_v24 }
 0x6f7   :  { %v614_v32 = vsel %vm341_vm5, %v613_v25, 0.0  ;;  %3596 = vmatprep.subr.mxu0 %v5173_v2 }
 0x6f8   :  { %615 = vadd.xlane.f32.xlu1 %v614_v32  ;;  %3597 = vmatpush3.msra.mxu0 %v4531_v55 }
 0x6f9   :  { %3598 = vmatprep.subr.mxu0 %v5173_v2 }
 0x781   :  { %v616_v34 = vpop.xlane.xlu1 %615 }
 0x782   :  { %v617_v35 = vmul.f32 0.03125, %v616_v34 }
 0x784   :  { %v618_v36 = vsub.f32 %v613_v25, %v617_v35  ;;  %v4522_v35 = vld [vmem:[#allocation7 + $0xa] sm:$0x1] }
 0x786   :  { %v619_v37 = vmul.f32 %v618_v36, %v618_v36 }
 0x788   :  { %v620_v38 = vsel %vm341_vm5, %v619_v37, 0.0 }
 0x789   :  { %621 = vadd.xlane.f32.xlu1 %v620_v38  ;;  %v4524_v38 = vld [vmem:[#allocation7 + $0xb] sm:$0x1] }
 0x812   :  { %v622_v25 = vpop.xlane.xlu1 %621 }
 0x813   :  { %v623_v27 = vmul.f32 0.03125, %v622_v25  ;;  %v4535_v25 = vld [vmem:[#allocation6 + $0x130] sm:$0xff] }
 0x814   :  { %3599 = vmatpush3.msra.mxu0 %v4535_v25 }
 0x815   :  { %v624_v32 = vadd.f32 1e-05, %v623_v27  ;;  %3600 = vmatprep.subr.mxu0 %v5173_v2 }
 0x817   :  { %4039 = vrsqrt.f32 %v624_v32 }
 0x824   :  { %v4040_v34 = vpop.eup %4039 }
 0x825   :  { %v626_v37 = vmul.f32 %v4040_v34, %v618_v36  ;;  %v4539_v36 = vld [vmem:[#allocation6 + $0x128] sm:$0xff] }
 0x826   :  { %3601 = vmatpush3.msra.mxu0 %v4539_v36 }
 0x827   :  { %v627_v1 = vmul.f32 %v626_v37, %v4522_v35  ;;  %3624 = vmatprep.subr.mxu0 %v5173_v2 }
 0x829   :  { %v628_v18 = vadd.f32 %v627_v1, %v4524_v38  ;;  %v4543_v1 = vld [vmem:[#allocation7 + $0xc] sm:$0x1] }
 0x82a   :  { %5201 = vst [vmem:[#allocation17_spill] sm:$0xff] %v4543_v1 }
 0x82b   :  { %3584 = vmatmul.mubr.msk.f32.vlgmr.msra.gmra.mxu1 %vm180_vm4, %v628_v18 }
 0x82c   :  { %3621 = vmatprep.mubr.msk.f32.mxu1 %vm4241_vm0, %v5173_v2 }
 0x8eb   :  { %v702_v27 = vpop.f32.mrf.mxu1 }
 0x8ec   :  { %v706_v32 = vadd.f32 %v702_v27, %v4543_v1 }
 0x8ed   :  { %v3585_v34 = vpop.f32.mrf.mxu1 }
 0x8ee   :  { %v707_v37 = vmax.f32 %v706_v32, 0.0 }
 0x8f0   :  { %3603 = vmatmul.mubr.msk.f32.vlgmr.msra.gmra.mxu0 %vm445_vm6, %v707_v37  ;;  %v4572_v37 = vld [vmem:[#allocation6 + $0x1a0] sm:$0xff] }
 0x8f1   :  { %3625 = vmatpush3.msra.mxu0 %v4279_v0  ;;  %3642 = vmatprep.mubr.msk.f32.mxu0 %vm4241_vm0, %v5173_v2  ;;  %v4567_v0 = vld [vmem:[#allocation7 + $0xd] sm:$0x1] }
 0x8f2   :  { %3626 = vmatprep.subr.mxu0 %v5173_v2  ;;  %5202 = vst [vmem:[#allocation18_spill] sm:$0xff] %v4567_v0  ;;  %3606 = vmatpush3.msra.mxu1 %v4572_v37 }
 0x8f3   :  { %3627 = vmatpush3.msra.mxu0 %v4282_v3 }
 0x8f4   :  { %3628 = vmatprep.subr.mxu0 %v5173_v2 }
 0x8f5   :  { %3629 = vmatpush3.msra.mxu0 %v4292_v5 }
 0x8f6   :  { %3630 = vmatprep.subr.mxu0 %v5173_v2 }
 0x8f7   :  { %3631 = vmatpush3.msra.mxu0 %v4298_v6 }
 0x8f8   :  { %3632 = vmatprep.subr.mxu0 %v5173_v2 }
 0x8f9   :  { %3633 = vmatpush3.msra.mxu0 %v4305_v8 }
 0x8fa   :  { %3634 = vmatprep.subr.mxu0 %v5173_v2 }
 0x8fb   :  { %3635 = vmatpush3.msra.mxu0 %v4316_v12 }
 0x8fc   :  { %3636 = vmatprep.subr.mxu0 %v5173_v2 }
 0x8fd   :  { %3637 = vmatpush3.msra.mxu0 %v4320_v13 }
 0x8fe   :  { %3638 = vmatprep.subr.mxu0 %v5173_v2 }
 0x8ff   :  { %3639 = vmatpush3.msra.mxu0 %v4328_v16 }
 0x900   :  { %3640 = vmatprep.subr.mxu0 %v5173_v2 }
 0x901   :  { %3641 = vmatpush3.msra.mxu0 %v4332_v17  ;;  %v5204_v17 = vmov 0.0  }
 0x902   :  { %3667 = vmatprep.subr.mxu0 %v5173_v2  ;;  %v4574_v2 = vld [vmem:[#allocation6 + $0x198] sm:$0xff]  ;;  %3607 = vmatprep.subr.mxu1 %v5204_v17 }
 0x903   :  { %5203 = vst [vmem:[#allocation19_spill] sm:$0xff] %v4574_v2  ;;  %3608 = vmatpush3.msra.mxu1 %v4574_v2 }
 0x904   :  { %3609 = vmatprep.subr.mxu1 %v5204_v17 }
 0x9b0   :  { %v785_v3 = vpop.f32.mrf.mxu0 }
 0x9b1   :  { %v789_v5 = vadd.f32 %v785_v3, %v4567_v0  ;;  %v4578_v3 = vld [vmem:[#allocation6 + $0x190] sm:$0xff] }
 0x9b2   :  { %v3604_v6 = vpop.f32.mrf.mxu0  ;;  %5205 = vst [vmem:[#allocation20_spill] sm:$0xff] %v4578_v3  ;;  %3610 = vmatpush3.msra.mxu1 %v4578_v3  ;;  %v4604_v0 = vld [vmem:[#allocation7 + $0xe] sm:$0x1] }
 0x9b3   :  { %v790_v8 = vadd.f32 %v789_v5, %v628_v18  ;;  %v4582_v18 = vld [vmem:[#allocation6 + $0x188] sm:$0xff]  ;;  %3611 = vmatprep.subr.mxu1 %v5204_v17  ;;  %v4586_v5 = vld [vmem:[#allocation6 + $0x180] sm:$0xff]  ;;  %v4590_v6 = vld [vmem:[#allocation6 + $0x178] sm:$0xff] }
 0x9b4   :  { %5206 = vst [vmem:[#allocation21_spill] sm:$0xff] %v4582_v18  ;;  %5207 = vst [vmem:[#allocation22_spill] sm:$0xff] %v4586_v5  ;;  %3612 = vmatpush3.msra.mxu1 %v4582_v18 }
 0x9b5   :  { %v791_v12 = vsel %vm341_vm5, %v790_v8, 0.0  ;;  %3613 = vmatprep.subr.mxu1 %v5204_v17  ;;  %5208 = vst [vmem:[#allocation23_spill] sm:$0xff] %v4590_v6 }
 0x9b6   :  { %792 = vadd.xlane.f32.xlu1 %v791_v12  ;;  %3614 = vmatpush3.msra.mxu1 %v4586_v5 }
 0x9b7   :  { %3615 = vmatprep.subr.mxu1 %v5204_v17 }
 0x9b8   :  { %3616 = vmatpush3.msra.mxu1 %v4590_v6  ;;  %v4606_v6 = vld [vmem:[#allocation7 + $0xf] sm:$0x1] }
 0x9b9   :  { %3617 = vmatprep.subr.mxu1 %v5204_v17  ;;  %5211 = vst [vmem:[#allocation26_spill] sm:$0xff] %v4606_v6 }
 0xa3f   :  { %v793_v13 = vpop.xlane.xlu1 %792 }
 0xa40   :  { %v794_v27 = vmul.f32 0.03125, %v793_v13 }
 0xa42   :  { %v795_v32 = vsub.f32 %v790_v8, %v794_v27  ;;  %v4594_v8 = vld [vmem:[#allocation6 + $0x170] sm:$0xff] }
 0xa43   :  { %5209 = vst [vmem:[#allocation24_spill] sm:$0xff] %v4594_v8  ;;  %3618 = vmatpush3.msra.mxu1 %v4594_v8 }
 0xa44   :  { %v796_v16 = vmul.f32 %v795_v32, %v795_v32  ;;  %3619 = vmatprep.subr.mxu1 %v5204_v17 }
 0xa46   :  { %v797_v34 = vsel %vm341_vm5, %v796_v16, 0.0  ;;  %v4600_v16 = vld [vmem:[#allocation6 + $0x168] sm:$0xff] }
 0xa47   :  { %798 = vadd.xlane.f32.xlu1 %v797_v34  ;;  %5210 = vst [vmem:[#allocation25_spill] sm:$0xff] %v4600_v16  ;;  %3620 = vmatpush3.msra.mxu1 %v4600_v16 }
 0xa48   :  { %3645 = vmatprep.subr.mxu1 %v5204_v17 }
 0xad0   :  { %v799_v12 = vpop.xlane.xlu1 %798 }
 0xad1   :  { %v800_v13 = vmul.f32 0.03125, %v799_v12  ;;  %v4611_v12 = vld [vmem:[#allocation7 + $0x1] sm:$0x1] }
 0xad3   :  { %v801_v27 = vadd.f32 1e-05, %v800_v13  ;;  %v253_v13 = vadd.f32 %v4381_v31, %v4611_v12  ;;  %v4630_v31 = vstv %s59_s7 }
 0xad5   :  { %4041 = vrsqrt.f32 %v801_v27  ;;  %v255_v27 = vand.u32 2147483647, %v253_v13 }
 0xad7   :  { %v256_v16 = vsub.f32 0.0, %v255_v27 }
 0xad9   :  { %v257_v18 = vmul.f32 1.442695, %v256_v16 }
 0xadb   :  { %4043 = vpow2.f32 %v257_v18 }
 0xae2   :  { %v4042_v34 = vpop.eup %4041 }
 0xae3   :  { %v803_v1 = vmul.f32 %v4042_v34, %v795_v32 }
 0xae5   :  { %v804_v8 = vmul.f32 %v803_v1, %v4604_v0  ;;  %v254_v1 = vmax.f32 %v253_v13, 0.0 }
 0xae7   :  { %v805_v5 = vadd.f32 %v804_v8, %v4606_v6 }
 0xae8   :  { %v4044_v3 = vpop.eup %4043 }
 0xae9   :  { %807 = vrot.lane.b32.xlu1 %v805_v5, %s4243_s5  ;;  %v259_v32 = vadd.f32 1.0, %v4044_v3  ;;  %v895_v3 = vstv %s3202_s6 }
 0xaeb   :  { %4045 = vlog2.f32 %v259_v32 }
 0xaf8   :  { %v4046_v34 = vpop.eup %4045 }
 0xaf9   :  { %v261_v2 = vmul.f32 0.6931472, %v4046_v34 }
 0xafb   :  { %v262_v8 = vadd.f32 %v261_v2, %v254_v1  ;;  %v4628_v2 = vld [vmem:[#allocation7] sm:$0x1] }
 0xb5b   :  { %v808_v6 = vpop.permute.xlu1 %807 }
 0xb5c   :  { %v810_v5 = vsel %vm180_vm4, %v262_v8, %v808_v6 }
 0xb5d   :  { %3622 = vmatmul.mubr.msk.f32.vlgmr.msra.gmra.mxu1 %vm445_vm6, %v810_v5 }
 0xb5e   :  { %3646 = vmatpush3.msra.mxu1 %v4342_v19  ;;  %3653 = vmatprep.mubr.msk.f32.mxu1 %vm4241_vm0, %v5204_v17 }
 0xb5f   :  { %3647 = vmatprep.subr.mxu1 %v5204_v17 }
 0xb60   :  { %3648 = vmatpush3.msra.mxu1 %v4344_v20 }
 0xb61   :  { %3649 = vmatprep.subr.mxu1 %v5204_v17 }
 0xb62   :  { %3650 = vmatpush3.msra.mxu1 %v4348_v21  ;;  %v896_v21 = vmul.f32 %v4301_v7, %v895_v3 }
 0xb63   :  { %3651 = vmatprep.subr.mxu1 %v5204_v17 }
 0xb64   :  { %3652 = vmatpush3.msra.mxu1 %v4352_v22 }
 0xb65   :  { %3656 = vmatprep.subr.mxu1 %v5204_v17 }
 0xc1d   :  { %v888_v19 = vpop.f32.mrf.mxu1 }
 0xc1e   :  { %v889_v20 = vadd.f32 %v888_v19, %v4628_v2 }
 0xc1f   :  { %v3623_v18 = vpop.f32.mrf.mxu1 }
 0xc20   :  { %v893_v6 = vmul.f32 %v4630_v31, %v889_v20 }
 0xc22   :  { %v4636_v16 = vadd.f32 %v893_v6, %v4312_v10 }
 0xc24   :  { %5212 = vst [vmem:[#allocation27_spill] sm:$0xff] %v4636_v16  ;;  %v897_v22 = vadd.f32 %v896_v21, %v4636_v16 }
 0xc26   :  { %v898_v13 = vadd.f32 %v4325_v15, %v897_v22 }
 0xc28   :  { %3643 = vmatmul.mubr.msk.f32.vlgmr.msra.gmra.mxu0 %vm98_vm3, %v898_v13 }
 0xc29   :  { %3668 = vmatpush3.msra.mxu0 %v4388_v43  ;;  %3675 = vmatprep.mubr.msk.f32.mxu0 %vm4241_vm0, %v5204_v17 }
 0xc2a   :  { %3669 = vmatprep.subr.mxu0 %v5204_v17 }
 0xc2b   :  { %3670 = vmatpush3.msra.mxu0 %v4392_v44 }
 0xc2c   :  { %3671 = vmatprep.subr.mxu0 %v5204_v17 }
 0xc2d   :  { %3672 = vmatpush3.msra.mxu0 %v4394_v45 }
 0xc2e   :  { %3673 = vmatprep.subr.mxu0 %v5204_v17 }
 0xc2f   :  { %3674 = vmatpush3.msra.mxu0 %v4398_v46 }
 0xc30   :  { %3697 = vmatprep.subr.mxu0 %v5204_v17 }
 0xce8   :  { %v968_v10 = vpop.f32.mrf.mxu0 }
 0xce9   :  { %4047 = vtanh.f32 %v968_v10 }
 0xcea   :  { %v3644_v27 = vpop.f32.mrf.mxu0 }
 0xcf6   :  { %v4048_v32 = vpop.eup %4047 }
 0xcf7   :  { %974 = vrot.lane.b32.xlu0 %v4048_v32, %s4242_s30 }
 0xd69   :  { %v975_v34 = vpop.permute.xlu0 %974 }
 0xd6a   :  { %3654 = vmatmul.mubr.msk.f32.vlgmr.msra.gmra.mxu1 %vm180_vm4, %v975_v34 }
 0xd6b   :  { %3657 = vmatpush3.msra.mxu1 %v4359_v26  ;;  %3664 = vmatprep.mubr.msk.f32.mxu1 %vm4241_vm0, %v5204_v17 }
 0xd6c   :  { %3658 = vmatprep.subr.mxu1 %v5204_v17 }
 0xd6d   :  { %3659 = vmatpush3.msra.mxu1 %v4362_v28 }
 0xd6e   :  { %3660 = vmatprep.subr.mxu1 %v5204_v17 }
 0xd6f   :  { %3661 = vmatpush3.msra.mxu1 %v4368_v29 }
 0xd70   :  { %3662 = vmatprep.subr.mxu1 %v5204_v17 }
 0xd71   :  { %3663 = vmatpush3.msra.mxu1 %v4372_v30 }
 0xd72   :  { %3665 = vmatmul.mubr.msk.f32.vlgmr.msra.gmra.mxu1 %vm180_vm4, %v968_v10  ;;  %3678 = vmatprep.subr.mxu1 %v5204_v17 }
 0xd73   :  { %3679 = vmatpush3.msra.mxu1 %v4403_v47  ;;  %3694 = vmatprep.mubr.msk.f32.mxu1 %vm4241_vm0, %v5204_v17 }
 0xd74   :  { %3680 = vmatprep.subr.mxu1 %v5204_v17 }
 0xd75   :  { %3681 = vmatpush3.msra.mxu1 %v4405_v48 }
 0xd76   :  { %3682 = vmatprep.subr.mxu1 %v5204_v17 }
 0xd77   :  { %3683 = vmatpush3.msra.mxu1 %v4410_v49 }
 0xd78   :  { %3684 = vmatprep.subr.mxu1 %v5204_v17 }
 0xd79   :  { %3685 = vmatpush3.msra.mxu1 %v4414_v50 }
 0xd7a   :  { %3686 = vmatprep.subr.mxu1 %v5204_v17 }
 0xd7b   :  { %3687 = vmatpush3.msra.mxu1 %v4418_v51 }
 0xd7c   :  { %3688 = vmatprep.subr.mxu1 %v5204_v17 }
 0xd7d   :  { %3689 = vmatpush3.msra.mxu1 %v4433_v61 }
 0xd7e   :  { %3690 = vmatprep.subr.mxu1 %v5204_v17 }
 0xd7f   :  { %3691 = vmatpush3.msra.mxu1 %v4437_v62 }
 0xd80   :  { %3692 = vmatprep.subr.mxu1 %v5204_v17 }
 0xd81   :  { %3693 = vmatpush3.msra.mxu1 %v4441_v63 }
 0xd82   :  { %3719 = vmatprep.subr.mxu1 %v5204_v17 }
 0xe2a   :  { %v4682_v26 = vpop.f32.mrf.mxu1 }
 0xe2c   :  { %v3655_v28 = vpop.f32.mrf.mxu1 }
 0xe32   :  { %v1127_v29 = vpop.f32.mrf.mxu1 }
 0xe33   :  { %v1131_v30 = vadd.f32 %v1127_v29, %v4383_v33 }
 0xe34   :  { %v3666_v47 = vpop.f32.mrf.mxu1 }
 0xe35   :  { %v1132_v48 = vsel %vm341_vm5, %v1131_v30, 0.0 }
 0xe36   :  { %1133 = vadd.xlane.f32.xlu1 %v1132_v48 }
 0xebf   :  { %v1134_v49 = vpop.xlane.xlu1 %1133 }
 0xec0   :  { %v1135_v50 = vmul.f32 0.03125, %v1134_v49 }
 0xec2   :  { %v1136_v51 = vsub.f32 %v1131_v30, %v1135_v50 }
 0xec4   :  { %v1137_v1 = vmul.f32 %v1136_v51, %v1136_v51 }
 0xec6   :  { %v1138_v8 = vsel %vm341_vm5, %v1137_v1, 0.0 }
 0xec7   :  { %1139 = vadd.xlane.f32.xlu0 %v1138_v8 }
 0xf50   :  { %v1140_v5 = vpop.xlane.xlu0 %1139 }
 0xf51   :  { %v1141_v19 = vmul.f32 0.03125, %v1140_v5  ;;  %v5214_v5 = vld [vmem:[#allocation15_spill] sm:$0xff] }
 0xf53   :  { %v1142_v3 = vadd.f32 1e-05, %v1141_v19 }
 0xf55   :  { %4049 = vrsqrt.f32 %v1142_v3 }
 0xf62   :  { %v4050_v20 = vpop.eup %4049 }
 0xf63   :  { %v1144_v18 = vmul.f32 %v4050_v20, %v1136_v51 }
 0xf65   :  { %v1145_v6 = vmul.f32 %v1144_v18, %v4424_v56 }
 0xf67   :  { %v1146_v33 = vadd.f32 %v1145_v6, %v4426_v58 }
 0xf69   :  { %3676 = vmatmul.mubr.msk.f32.vlgmr.msra.gmra.mxu0 %vm180_vm4, %v1146_v33 }
 0xf6a   :  { %3698 = vmatpush3.msra.mxu0 %v4456_v40  ;;  %3705 = vmatprep.mubr.msk.f32.mxu0 %vm4241_vm0, %v5204_v17 }
 0xf6b   :  { %3699 = vmatprep.subr.mxu0 %v5204_v17 }
 0xf6c   :  { %3700 = vmatpush3.msra.mxu0 %v4460_v41 }
 0xf6d   :  { %3701 = vmatprep.subr.mxu0 %v5204_v17 }
 0xf6e   :  { %3702 = vmatpush3.msra.mxu0 %v4462_v42 }
 0xf6f   :  { %3703 = vmatprep.subr.mxu0 %v5204_v17 }
 0xf70   :  { %3704 = vmatpush3.msra.mxu0 %v4466_v52 }
 0xf71   :  { %3708 = vmatprep.subr.mxu0 %v5204_v17 }
0x1029   :  { %v1216_v56 = vpop.f32.mrf.mxu0 }
0x102a   :  { %v1220_v58 = vadd.f32 %v1216_v56, %v4445_v4 }
0x102b   :  { %v3677_v21 = vpop.f32.mrf.mxu0 }
0x102c   :  { %v1221_v22 = vmax.f32 %v1220_v58, 0.0 }
0x102e   :  { %3695 = vmatmul.mubr.msk.f32.vlgmr.msra.gmra.mxu1 %vm445_vm6, %v1221_v22 }
0x102f   :  { %3720 = vmatpush3.msra.mxu1 %v4501_v57  ;;  %3735 = vmatprep.mubr.msk.f32.mxu1 %vm4241_vm0, %v5204_v17 }
0x1030   :  { %3721 = vmatprep.subr.mxu1 %v5204_v17 }
0x1031   :  { %3722 = vmatpush3.msra.mxu1 %v4503_v60 }
0x1032   :  { %3723 = vmatprep.subr.mxu1 %v5204_v17 }
0x1033   :  { %3724 = vmatpush3.msra.mxu1 %v4508_v11 }
0x1034   :  { %3725 = vmatprep.subr.mxu1 %v5204_v17 }
0x1035   :  { %3726 = vmatpush3.msra.mxu1 %v4512_v14 }
0x1036   :  { %3727 = vmatprep.subr.mxu1 %v5204_v17 }
0x1037   :  { %3728 = vmatpush3.msra.mxu1 %v4516_v24 }
0x1038   :  { %3729 = vmatprep.subr.mxu1 %v5204_v17 }
0x1039   :  { %3730 = vmatpush3.msra.mxu1 %v4531_v55 }
0x103a   :  { %3731 = vmatprep.subr.mxu1 %v5204_v17 }
0x103b   :  { %3732 = vmatpush3.msra.mxu1 %v4535_v25 }
0x103c   :  { %3733 = vmatprep.subr.mxu1 %v5204_v17 }
0x103d   :  { %3734 = vmatpush3.msra.mxu1 %v4539_v36 }
0x103e   :  { %3757 = vmatprep.subr.mxu1 %v5204_v17 }
0x10ee   :  { %v1291_v4 = vpop.f32.mrf.mxu1 }
0x10ef   :  { %v1295_v13 = vadd.f32 %v1291_v4, %v4451_v23 }
0x10f0   :  { %v3696_v10 = vpop.f32.mrf.mxu1 }
0x10f1   :  { %v1296_v27 = vadd.f32 %v1295_v13, %v1146_v33  ;;  %v5215_v10 = vld [vmem:[#allocation19_spill] sm:$0xff] }
0x10f3   :  { %v1297_v32 = vsel %vm341_vm5, %v1296_v27, 0.0 }
0x10f4   :  { %1298 = vadd.xlane.f32.xlu1 %v1297_v32  ;;  %v5219_v32 = vld [vmem:[#allocation23_spill] sm:$0xff] }
0x117d   :  { %v1299_v34 = vpop.xlane.xlu1 %1298 }
0x117e   :  { %v1300_v28 = vmul.f32 0.03125, %v1299_v34  ;;  %v5220_v34 = vld [vmem:[#allocation24_spill] sm:$0xff] }
0x1180   :  { %v1301_v29 = vsub.f32 %v1296_v27, %v1300_v28  ;;  %v5216_v27 = vld [vmem:[#allocation20_spill] sm:$0xff]  ;;  %v5221_v28 = vld [vmem:[#allocation25_spill] sm:$0xff] }
0x1182   :  { %v1302_v30 = vmul.f32 %v1301_v29, %v1301_v29 }
0x1184   :  { %v1303_v47 = vsel %vm341_vm5, %v1302_v30, 0.0  ;;  %v5222_v30 = vld [vmem:[#allocation17_spill] sm:$0xff] }
0x1185   :  { %1304 = vadd.xlane.f32.xlu1 %v1303_v47 }
0x120e   :  { %v1305_v48 = vpop.xlane.xlu1 %1304 }
0x120f   :  { %v1306_v49 = vmul.f32 0.03125, %v1305_v48 }
0x1211   :  { %v1307_v50 = vadd.f32 1e-05, %v1306_v49 }
0x1213   :  { %4051 = vrsqrt.f32 %v1307_v50  ;;  %v4762_v50 = vld [vmem:[#allocation6 + $0x40] sm:$0xff] }
0x1220   :  { %v4052_v51 = vpop.eup %4051 }
0x1221   :  { %v1309_v1 = vmul.f32 %v4052_v51, %v1301_v29  ;;  %v4768_v51 = vld [vmem:[#allocation6 + $0x38] sm:$0xff] }
0x1223   :  { %v1310_v23 = vmul.f32 %v1309_v1, %v4472_v59  ;;  %v5213_v59 = vld [vmem:[#allocation16_spill] sm:$0xff] }
0x1224   :  { %v4772_v1 = vld [vmem:[#allocation6 + $0x30] sm:$0xff] }
0x1225   :  { %v1311_v8 = vadd.f32 %v1310_v23, %v4474_v9  ;;  %v4776_v23 = vld [vmem:[#allocation6 + $0x28] sm:$0xff] }
0x1227   :  { %3706 = vmatmul.mubr.msk.f32.vlgmr.msra.gmra.mxu0 %vm180_vm4, %v1311_v8  ;;  %v4780_v8 = vld [vmem:[#allocation6 + $0x20] sm:$0xff] }
0x1228   :  { %3709 = vmatpush3.msra.mxu0 %v4486_v39  ;;  %3716 = vmatprep.mubr.msk.f32.mxu0 %vm4241_vm0, %v5204_v17 }
0x1229   :  { %3710 = vmatprep.subr.mxu0 %v5204_v17 }
0x122a   :  { %3711 = vmatpush3.msra.mxu0 %v4490_v53 }
0x122b   :  { %3712 = vmatprep.subr.mxu0 %v5204_v17 }
0x122c   :  { %3713 = vmatpush3.msra.mxu0 %v4492_v54 }
0x122d   :  { %3714 = vmatprep.subr.mxu0 %v5204_v17 }
0x122e   :  { %3715 = vmatpush3.msra.mxu0 %v5213_v59  ;;  %v4784_v59 = vld [vmem:[#allocation6 + $0x18] sm:$0xff] }
0x122f   :  { %3738 = vmatprep.subr.mxu0 %v5204_v17 }
0x12e7   :  { %v1381_v9 = vpop.f32.mrf.mxu0 }
0x12e8   :  { %v1385_v39 = vadd.f32 %v1381_v9, %v5214_v5  ;;  %v4788_v9 = vld [vmem:[#allocation6 + $0x10] sm:$0xff]  ;;  %v4792_v5 = vld [vmem:[#allocation6 + $0x8] sm:$0xff] }
0x12e9   :  { %v3707_v19 = vpop.f32.mrf.mxu0 }
0x12ea   :  { %v1386_v3 = vsel %vm341_vm5, %v1385_v39, 0.0 }
0x12eb   :  { %1387 = vadd.xlane.f32.xlu0 %v1386_v3  ;;  %v5224_v3 = vld [vmem:[#allocation18_spill] sm:$0xff] }
0x1374   :  { %v1388_v20 = vpop.xlane.xlu0 %1387 }
0x1375   :  { %v1389_v18 = vmul.f32 0.03125, %v1388_v20 }
0x1377   :  { %v1390_v53 = vsub.f32 %v1385_v39, %v1389_v18  ;;  %v5223_v39 = vld [vmem:[#allocation14_spill] sm:$0xff] }
0x1379   :  { %v1391_v6 = vmul.f32 %v1390_v53, %v1390_v53 }
0x137b   :  { %v1392_v33 = vsel %vm341_vm5, %v1391_v6, 0.0 }
0x137c   :  { %1393 = vadd.xlane.f32.xlu1 %v1392_v33 }
0x1405   :  { %v1394_v54 = vpop.xlane.xlu1 %1393 }
0x1406   :  { %v1395_v56 = vmul.f32 0.03125, %v1394_v54 }
0x1408   :  { %v1396_v58 = vadd.f32 1e-05, %v1395_v56 }
0x140a   :  { %4053 = vrsqrt.f32 %v1396_v58 }
0x1417   :  { %v4054_v21 = vpop.eup %4053 }
0x1418   :  { %v1398_v22 = vmul.f32 %v4054_v21, %v1390_v53 }
0x141a   :  { %v1399_v4 = vmul.f32 %v1398_v22, %v4522_v35  ;;  %v5217_v35 = vld [vmem:[#allocation21_spill] sm:$0xff] }
0x141c   :  { %v1400_v13 = vadd.f32 %v1399_v4, %v4524_v38  ;;  %v5218_v38 = vld [vmem:[#allocation22_spill] sm:$0xff] }
0x141e   :  { %3717 = vmatmul.mubr.msk.f32.vlgmr.msra.gmra.mxu0 %vm180_vm4, %v1400_v13 }
0x141f   :  { %3739 = vmatpush3.msra.mxu0 %v4572_v37  ;;  %3754 = vmatprep.mubr.msk.f32.mxu0 %vm4241_vm0, %v5204_v17 }
0x1420   :  { %3740 = vmatprep.subr.mxu0 %v5204_v17 }
0x1421   :  { %3741 = vmatpush3.msra.mxu0 %v5215_v10 }
0x1422   :  { %3742 = vmatprep.subr.mxu0 %v5204_v17 }
0x1423   :  { %3743 = vmatpush3.msra.mxu0 %v5216_v27 }
0x1424   :  { %3744 = vmatprep.subr.mxu0 %v5204_v17 }
0x1425   :  { %3745 = vmatpush3.msra.mxu0 %v5217_v35 }
0x1426   :  { %3746 = vmatprep.subr.mxu0 %v5204_v17 }
0x1427   :  { %3747 = vmatpush3.msra.mxu0 %v5218_v38 }
0x1428   :  { %3748 = vmatprep.subr.mxu0 %v5204_v17 }
0x1429   :  { %3749 = vmatpush3.msra.mxu0 %v5219_v32 }
0x142a   :  { %3750 = vmatprep.subr.mxu0 %v5204_v17 }
0x142b   :  { %3751 = vmatpush3.msra.mxu0 %v5220_v34 }
0x142c   :  { %3752 = vmatprep.subr.mxu0 %v5204_v17 }
0x142d   :  { %3753 = vmatpush3.msra.mxu0 %v5221_v28 }
0x142e   :  { %3778 = vmatprep.subr.mxu0 %v5204_v17 }
0x14de   :  { %v1470_v29 = vpop.f32.mrf.mxu0 }
0x14df   :  { %v1474_v47 = vadd.f32 %v1470_v29, %v5222_v30 }
0x14e0   :  { %v3718_v48 = vpop.f32.mrf.mxu0 }
0x14e1   :  { %v1475_v49 = vmax.f32 %v1474_v47, 0.0 }
0x14e3   :  { %3736 = vmatmul.mubr.msk.f32.vlgmr.msra.gmra.mxu1 %vm445_vm6, %v1475_v49  ;;  %v5225_v49 = vld [vmem:[#allocation26_spill] sm:$0xff] }
0x14e4   :  { %3758 = vmatpush3.msra.mxu1 %v4762_v50  ;;  %3775 = vmatprep.mubr.msk.f32.mxu1 %vm4241_vm0, %v5204_v17 }
0x14e5   :  { %3759 = vmatprep.subr.mxu1 %v5204_v17 }
0x14e6   :  { %3760 = vmatpush3.msra.mxu1 %v4768_v51 }
0x14e7   :  { %3761 = vmatprep.subr.mxu1 %v5204_v17 }
0x14e8   :  { %3762 = vmatpush3.msra.mxu1 %v4772_v1 }
0x14e9   :  { %3763 = vmatprep.subr.mxu1 %v5204_v17 }
0x14ea   :  { %3764 = vmatpush3.msra.mxu1 %v4776_v23 }
0x14eb   :  { %3765 = vmatprep.subr.mxu1 %v5204_v17 }
0x14ec   :  { %3766 = vmatpush3.msra.mxu1 %v4780_v8 }
0x14ed   :  { %3767 = vmatprep.subr.mxu1 %v5204_v17 }
0x14ee   :  { %3768 = vmatpush3.msra.mxu1 %v4784_v59 }
0x14ef   :  { %3769 = vmatprep.subr.mxu1 %v5204_v17 }
0x14f0   :  { %3770 = vmatpush3.msra.mxu1 %v4788_v9 }
0x14f1   :  { %3771 = vmatprep.subr.mxu1 %v5204_v17 }
0x14f2   :  { %3772 = vmatpush3.msra.mxu1 %v4792_v5 }
0x14f3   :  { %3773 = vmatprep.subr.mxu1 %v5204_v17 }
0x14f4   :  { %3774 = vmatpush3.msra.mxu1 %v5223_v39  ;;  %v1048_v39 = vadd.f32 %v4682_v26, %v4611_v12  ;;  %v4814_v26 = vld [vmem:[#allocation6 + $0x58] sm:$0xff] }
0x14f5   :  { %3800 = vmatprep.subr.mxu1 %v5204_v17 }
0x15a3   :  { %v1545_v19 = vpop.f32.mrf.mxu1 }
0x15a4   :  { %v1549_v20 = vadd.f32 %v1545_v19, %v5224_v3  ;;  %v1050_v19 = vand.u32 2147483647, %v1048_v39 }
0x15a5   :  { %v3737_v18 = vpop.f32.mrf.mxu1 }
0x15a6   :  { %v1550_v53 = vadd.f32 %v1549_v20, %v1400_v13  ;;  %v1051_v3 = vsub.f32 0.0, %v1050_v19 }
0x15a8   :  { %v1551_v6 = vsel %vm341_vm5, %v1550_v53, 0.0  ;;  %v1052_v20 = vmul.f32 1.442695, %v1051_v3 }
0x15a9   :  { %1552 = vadd.xlane.f32.xlu0 %v1551_v6 }
0x1632   :  { %v1553_v33 = vpop.xlane.xlu0 %1552 }
0x1633   :  { %v1554_v54 = vmul.f32 0.03125, %v1553_v33 }
0x1635   :  { %v1555_v56 = vsub.f32 %v1550_v53, %v1554_v54  ;;  %v1049_v54 = vmax.f32 %v1048_v39, 0.0 }
0x1637   :  { %v1556_v58 = vmul.f32 %v1555_v56, %v1555_v56 }
0x1639   :  { %v1557_v21 = vsel %vm341_vm5, %v1556_v58, 0.0 }
0x163a   :  { %1558 = vadd.xlane.f32.xlu1 %v1557_v21 }
0x16c3   :  { %v1559_v22 = vpop.xlane.xlu1 %1558 }
0x16c4   :  { %v1560_v4 = vmul.f32 0.03125, %v1559_v22  ;;  %v4808_v22 = vld [vmem:[#allocation6 + $0x60] sm:$0xff] }
0x16c6   :  { %v1561_v29 = vadd.f32 1e-05, %v1560_v4  ;;  %v4818_v4 = vld [vmem:[#allocation6 + $0x50] sm:$0xff] }
0x16c8   :  { %4055 = vrsqrt.f32 %v1561_v29  ;;  %v4822_v29 = vld [vmem:[#allocation6 + $0x48] sm:$0xff] }
0x16c9   :  { %4057 = vpow2.f32 %v1052_v20 }
0x16d5   :  { %v4056_v30 = vpop.eup %4055 }
0x16d6   :  { %v1563_v47 = vmul.f32 %v4056_v30, %v1555_v56  ;;  %v4058_v18 = vpop.eup %4057 }
0x16d7   :  { %v1054_v53 = vadd.f32 1.0, %v4058_v18 }
0x16d8   :  { %v1564_v48 = vmul.f32 %v1563_v47, %v4604_v0  ;;  %v1647_v47 = vstv %s3223_s8 }
0x16d9   :  { %4059 = vlog2.f32 %v1054_v53  ;;  %v1648_v19 = vmul.f32 %v4301_v7, %v1647_v47  ;;  %v4884_v47 = vld [vmem:[#allocation6 + $0xc0] sm:$0xff] }
0x16da   :  { %v1565_v13 = vadd.f32 %v1564_v48, %v5225_v49  ;;  %5228 = vst [vmem:[#allocation19_spill] sm:$0xff] %v4884_v47 }
0x16dc   :  { %1567 = vrot.lane.b32.xlu0 %v1565_v13, %s4243_s5 }
0x16e6   :  { %v4060_v6 = vpop.eup %4059 }
0x16e7   :  { %v1056_v33 = vmul.f32 0.6931472, %v4060_v6 }
0x16e9   :  { %v1057_v56 = vadd.f32 %v1056_v33, %v1049_v54  ;;  %v4861_v54 = vld [vmem:[#allocation6 + $0x68] sm:$0xff] }
0x174e   :  { %v1568_v58 = vpop.permute.xlu0 %1567 }
0x174f   :  { %v1570_v21 = vsel %vm180_vm4, %v1057_v56, %v1568_v58  ;;  %v4866_v56 = vld [vmem:[#allocation6 + $0xe0] sm:$0xff]  ;;  %v4872_v58 = vld [vmem:[#allocation6 + $0xd8] sm:$0xff] }
0x1750   :  { %3755 = vmatmul.mubr.msk.f32.vlgmr.msra.gmra.mxu0 %vm445_vm6, %v1570_v21  ;;  %v4876_v21 = vld [vmem:[#allocation6 + $0xd0] sm:$0xff] }
0x1751   :  { %3779 = vmatpush3.msra.mxu0 %v4808_v22  ;;  %3786 = vmatprep.mubr.msk.f32.mxu0 %vm4241_vm0, %v5204_v17  ;;  %5226 = vst [vmem:[#allocation16_spill] sm:$0xff] %v4876_v21 }
0x1752   :  { %3780 = vmatprep.subr.mxu0 %v5204_v17 }
0x1753   :  { %3781 = vmatpush3.msra.mxu0 %v4814_v26 }
0x1754   :  { %3782 = vmatprep.subr.mxu0 %v5204_v17 }
0x1755   :  { %3783 = vmatpush3.msra.mxu0 %v4818_v4 }
0x1756   :  { %3784 = vmatprep.subr.mxu0 %v5204_v17 }
0x1757   :  { %3785 = vmatpush3.msra.mxu0 %v4822_v29 }
0x1758   :  { %3789 = vmatprep.subr.mxu0 %v5204_v17 }
0x1810   :  { %v1640_v30 = vpop.f32.mrf.mxu0 }
0x1811   :  { %v1641_v48 = vadd.f32 %v1640_v30, %v4628_v2  ;;  %v4880_v30 = vld [vmem:[#allocation6 + $0xc8] sm:$0xff] }
0x1812   :  { %v3756_v13 = vpop.f32.mrf.mxu0  ;;  %5227 = vst [vmem:[#allocation15_spill] sm:$0xff] %v4880_v30 }
0x1813   :  { %v1644_v39 = vmul.f32 %v1641_v48, %v4630_v31 }
0x1815   :  { %v4830_v3 = vadd.f32 %v1644_v39, %v4636_v16 }
0x1817   :  { %v1649_v20 = vadd.f32 %v1648_v19, %v4830_v3  ;;  %v4896_v19 = vld [vmem:[#allocation7 + $0x2] sm:$0x1] }
0x1819   :  { %v1650_v18 = vadd.f32 %v4325_v15, %v1649_v20 }
0x181b   :  { %3776 = vmatmul.mubr.msk.f32.vlgmr.msra.gmra.mxu1 %vm98_vm3, %v1650_v18 }
0x181c   :  { %3801 = vmatpush3.msra.mxu1 %v4388_v43  ;;  %3808 = vmatprep.mubr.msk.f32.mxu1 %vm4241_vm0, %v5204_v17 }
0x181d   :  { %3802 = vmatprep.subr.mxu1 %v5204_v17 }
0x181e   :  { %3803 = vmatpush3.msra.mxu1 %v4392_v44  ;;  %v4847_v44 = vld [vmem:[#allocation6 + $0x80] sm:$0xff] }
0x181f   :  { %3804 = vmatprep.subr.mxu1 %v5204_v17 }
0x1820   :  { %3805 = vmatpush3.msra.mxu1 %v4394_v45  ;;  %v4853_v45 = vld [vmem:[#allocation6 + $0x78] sm:$0xff] }
0x1821   :  { %3806 = vmatprep.subr.mxu1 %v5204_v17 }
0x1822   :  { %3807 = vmatpush3.msra.mxu1 %v4398_v46  ;;  %v4857_v46 = vld [vmem:[#allocation6 + $0x70] sm:$0xff] }
0x1823   :  { %3830 = vmatprep.subr.mxu1 %v5204_v17 }
0x18db   :  { %v1720_v53 = vpop.f32.mrf.mxu1 }
0x18dc   :  { %4061 = vtanh.f32 %v1720_v53 }
0x18dd   :  { %v3777_v43 = vpop.f32.mrf.mxu1 }
0x18e9   :  { %v4062_v6 = vpop.eup %4061 }
0x18ea   :  { %1726 = vrot.lane.b32.xlu1 %v4062_v6, %s4242_s30 }
0x195c   :  { %v1727_v33 = vpop.permute.xlu1 %1726 }
0x195d   :  { %3787 = vmatmul.mubr.msk.f32.vlgmr.msra.gmra.mxu0 %vm180_vm4, %v1727_v33 }
0x195e   :  { %3790 = vmatpush3.msra.mxu0 %v4847_v44  ;;  %3797 = vmatprep.mubr.msk.f32.mxu0 %vm4241_vm0, %v5204_v17 }
0x195f   :  { %3791 = vmatprep.subr.mxu0 %v5204_v17 }
0x1960   :  { %3792 = vmatpush3.msra.mxu0 %v4853_v45 }
0x1961   :  { %3793 = vmatprep.subr.mxu0 %v5204_v17 }
0x1962   :  { %3794 = vmatpush3.msra.mxu0 %v4857_v46 }
0x1963   :  { %3795 = vmatprep.subr.mxu0 %v5204_v17 }
0x1964   :  { %3796 = vmatpush3.msra.mxu0 %v4861_v54 }
0x1965   :  { %3798 = vmatmul.mubr.msk.f32.vlgmr.msra.gmra.mxu0 %vm180_vm4, %v1720_v53  ;;  %3811 = vmatprep.subr.mxu0 %v5204_v17 }
0x1966   :  { %3812 = vmatpush3.msra.mxu0 %v4866_v56  ;;  %3827 = vmatprep.mubr.msk.f32.mxu0 %vm4241_vm0, %v5204_v17 }
0x1967   :  { %3813 = vmatprep.subr.mxu0 %v5204_v17 }
0x1968   :  { %3814 = vmatpush3.msra.mxu0 %v4872_v58 }
0x1969   :  { %3815 = vmatprep.subr.mxu0 %v5204_v17 }
0x196a   :  { %3816 = vmatpush3.msra.mxu0 %v4876_v21  ;;  %v4901_v21 = vld [vmem:[#allocation7 + $0x3] sm:$0x1] }
0x196b   :  { %3817 = vmatprep.subr.mxu0 %v5204_v17 }
0x196c   :  { %3818 = vmatpush3.msra.mxu0 %v4880_v30 }
0x196d   :  { %3819 = vmatprep.subr.mxu0 %v5204_v17 }
0x196e   :  { %3820 = vmatpush3.msra.mxu0 %v4884_v47 }
0x196f   :  { %3821 = vmatprep.subr.mxu0 %v5204_v17 }
0x1970   :  { %3822 = vmatpush3.msra.mxu0 %v4433_v61 }
0x1971   :  { %3823 = vmatprep.subr.mxu0 %v5204_v17 }
0x1972   :  { %3824 = vmatpush3.msra.mxu0 %v4437_v62 }
0x1973   :  { %3825 = vmatprep.subr.mxu0 %v5204_v17 }
0x1974   :  { %3826 = vmatpush3.msra.mxu0 %v4441_v63 }
0x1975   :  { %3852 = vmatprep.subr.mxu0 %v5204_v17 }
0x1a1d   :  { %v4894_v48 = vpop.f32.mrf.mxu0 }
0x1a1f   :  { %v3788_v13 = vpop.f32.mrf.mxu0 }
0x1a25   :  { %v1879_v39 = vpop.f32.mrf.mxu0 }
0x1a26   :  { %v1883_v20 = vadd.f32 %v4896_v19, %v1879_v39 }
0x1a27   :  { %v3799_v18 = vpop.f32.mrf.mxu0 }
0x1a28   :  { %v1884_v61 = vsel %vm341_vm5, %v1883_v20, 0.0  ;;  %v4904_v18 = vld [vmem:[#allocation7 + $0x4] sm:$0x1] }
0x1a29   :  { %1885 = vadd.xlane.f32.xlu1 %v1884_v61 }
0x1ab2   :  { %v1886_v53 = vpop.xlane.xlu1 %1885 }
0x1ab3   :  { %v1887_v62 = vmul.f32 0.03125, %v1886_v53 }
0x1ab5   :  { %v1888_v43 = vsub.f32 %v1883_v20, %v1887_v62 }
0x1ab7   :  { %v1889_v6 = vmul.f32 %v1888_v43, %v1888_v43 }
0x1ab9   :  { %v1890_v63 = vsel %vm341_vm5, %v1889_v6, 0.0 }
0x1aba   :  { %1891 = vadd.xlane.f32.xlu0 %v1890_v63 }
0x1b43   :  { %v1892_v33 = vpop.xlane.xlu0 %1891 }
0x1b44   :  { %v1893_v16 = vmul.f32 0.03125, %v1892_v33  ;;  %v4945_v33 = vld [vmem:[#allocation7 + $0x7] sm:$0x1] }
0x1b46   :  { %v1894_v47 = vadd.f32 1e-05, %v1893_v16 }
0x1b48   :  { %4063 = vrsqrt.f32 %v1894_v47 }
0x1b55   :  { %v4064_v13 = vpop.eup %4063 }
0x1b56   :  { %v1896_v30 = vmul.f32 %v4064_v13, %v1888_v43 }
0x1b58   :  { %v1897_v39 = vmul.f32 %v4901_v21, %v1896_v30  ;;  %v4918_v30 = vld [vmem:[#allocation7 + $0x5] sm:$0x1] }
0x1b5a   :  { %v1898_v61 = vadd.f32 %v4904_v18, %v1897_v39  ;;  %v4948_v39 = vld [vmem:[#allocation7 + $0x8] sm:$0x1] }
0x1b5c   :  { %3809 = vmatmul.mubr.msk.f32.vlgmr.msra.gmra.mxu1 %vm180_vm4, %v1898_v61 }
0x1b5d   :  { %3831 = vmatpush3.msra.mxu1 %v4456_v40  ;;  %3838 = vmatprep.mubr.msk.f32.mxu1 %vm4241_vm0, %v5204_v17 }
0x1b5e   :  { %3832 = vmatprep.subr.mxu1 %v5204_v17 }
0x1b5f   :  { %3833 = vmatpush3.msra.mxu1 %v4460_v41 }
0x1b60   :  { %3834 = vmatprep.subr.mxu1 %v5204_v17 }
0x1b61   :  { %3835 = vmatpush3.msra.mxu1 %v4462_v42  ;;  %v4940_v42 = vld [vmem:[#allocation7 + $0x6] sm:$0x1] }
0x1b62   :  { %3836 = vmatprep.subr.mxu1 %v5204_v17 }
0x1b63   :  { %3837 = vmatpush3.msra.mxu1 %v4466_v52 }
0x1b64   :  { %3841 = vmatprep.subr.mxu1 %v5204_v17 }
0x1c1c   :  { %v1968_v16 = vpop.f32.mrf.mxu1 }
0x1c1d   :  { %v1972_v40 = vadd.f32 %v4918_v30, %v1968_v16  ;;  %v4952_v16 = vld [vmem:[#allocation6 + $0x120] sm:$0xff] }
0x1c1e   :  { %v3810_v47 = vpop.f32.mrf.mxu1 }
0x1c1f   :  { %v1973_v20 = vmax.f32 %v1972_v40, 0.0  ;;  %v4958_v40 = vld [vmem:[#allocation6 + $0x118] sm:$0xff]  ;;  %v4962_v47 = vld [vmem:[#allocation6 + $0x110] sm:$0xff] }
0x1c21   :  { %3828 = vmatmul.mubr.msk.f32.vlgmr.msra.gmra.mxu0 %vm445_vm6, %v1973_v20  ;;  %v4966_v20 = vld [vmem:[#allocation6 + $0x108] sm:$0xff] }
0x1c22   :  { %3853 = vmatpush3.msra.mxu0 %v4501_v57  ;;  %3868 = vmatprep.mubr.msk.f32.mxu0 %vm4241_vm0, %v5204_v17 }
0x1c23   :  { %3854 = vmatprep.subr.mxu0 %v5204_v17 }
0x1c24   :  { %3855 = vmatpush3.msra.mxu0 %v4503_v60 }
0x1c25   :  { %3856 = vmatprep.subr.mxu0 %v5204_v17 }
0x1c26   :  { %3857 = vmatpush3.msra.mxu0 %v4508_v11 }
0x1c27   :  { %3858 = vmatprep.subr.mxu0 %v5204_v17 }
0x1c28   :  { %3859 = vmatpush3.msra.mxu0 %v4512_v14 }
0x1c29   :  { %3860 = vmatprep.subr.mxu0 %v5204_v17 }
0x1c2a   :  { %3861 = vmatpush3.msra.mxu0 %v4516_v24 }
0x1c2b   :  { %3862 = vmatprep.subr.mxu0 %v5204_v17 }
0x1c2c   :  { %3863 = vmatpush3.msra.mxu0 %v4531_v55 }
0x1c2d   :  { %3864 = vmatprep.subr.mxu0 %v5204_v17 }
0x1c2e   :  { %3865 = vmatpush3.msra.mxu0 %v4535_v25 }
0x1c2f   :  { %3866 = vmatprep.subr.mxu0 %v5204_v17 }
0x1c30   :  { %3867 = vmatpush3.msra.mxu0 %v4539_v36 }
0x1c31   :  { %3890 = vmatprep.subr.mxu0 %v5204_v17 }
0x1ce1   :  { %v2043_v41 = vpop.f32.mrf.mxu0 }
0x1ce2   :  { %v2047_v52 = vadd.f32 %v4940_v42, %v2043_v41 }
0x1ce3   :  { %v3829_v57 = vpop.f32.mrf.mxu0 }
0x1ce4   :  { %v2048_v60 = vadd.f32 %v2047_v52, %v1898_v61  ;;  %v4970_v52 = vld [vmem:[#allocation7 + $0x9] sm:$0x1] }
0x1ce6   :  { %v2049_v11 = vsel %vm341_vm5, %v2048_v60, 0.0 }
0x1ce7   :  { %2050 = vadd.xlane.f32.xlu0 %v2049_v11 }
0x1d70   :  { %v2051_v55 = vpop.xlane.xlu0 %2050 }
0x1d71   :  { %v2052_v14 = vmul.f32 0.03125, %v2051_v55 }
0x1d73   :  { %v2053_v24 = vsub.f32 %v2048_v60, %v2052_v14 }
0x1d75   :  { %v2054_v25 = vmul.f32 %v2053_v24, %v2053_v24 }
0x1d77   :  { %v2055_v53 = vsel %vm341_vm5, %v2054_v25, 0.0 }
0x1d78   :  { %2056 = vadd.xlane.f32.xlu1 %v2055_v53 }
0x1e01   :  { %v2057_v36 = vpop.xlane.xlu1 %2056 }
0x1e02   :  { %v2058_v62 = vmul.f32 0.03125, %v2057_v36 }
0x1e04   :  { %v2059_v43 = vadd.f32 1e-05, %v2058_v62 }
0x1e06   :  { %4065 = vrsqrt.f32 %v2059_v43 }
0x1e13   :  { %v4066_v6 = vpop.eup %4065 }
0x1e14   :  { %v2061_v63 = vmul.f32 %v4066_v6, %v2053_v24 }
0x1e16   :  { %v2062_v13 = vmul.f32 %v4945_v33, %v2061_v63 }
0x1e18   :  { %v2063_v61 = vadd.f32 %v4948_v39, %v2062_v13  ;;  %v4975_v13 = vld [vmem:[#allocation7 + $0xa] sm:$0x1] }
0x1e1a   :  { %3839 = vmatmul.mubr.msk.f32.vlgmr.msra.gmra.mxu1 %vm180_vm4, %v2063_v61 }
0x1e1b   :  { %3842 = vmatpush3.msra.mxu1 %v4952_v16  ;;  %3849 = vmatprep.mubr.msk.f32.mxu1 %vm4241_vm0, %v5204_v17 }
0x1e1c   :  { %3843 = vmatprep.subr.mxu1 %v5204_v17 }
0x1e1d   :  { %3844 = vmatpush3.msra.mxu1 %v4958_v40 }
0x1e1e   :  { %3845 = vmatprep.subr.mxu1 %v5204_v17 }
0x1e1f   :  { %3846 = vmatpush3.msra.mxu1 %v4962_v47 }
0x1e20   :  { %3847 = vmatprep.subr.mxu1 %v5204_v17 }
0x1e21   :  { %3848 = vmatpush3.msra.mxu1 %v4966_v20 }
0x1e22   :  { %3871 = vmatprep.subr.mxu1 %v5204_v17 }
0x1eda   :  { %v2133_v41 = vpop.f32.mrf.mxu1 }
0x1edb   :  { %v2137_v57 = vadd.f32 %v4970_v52, %v2133_v41  ;;  %v4978_v41 = vld [vmem:[#allocation7 + $0xb] sm:$0x1] }
0x1edc   :  { %v3840_v60 = vpop.f32.mrf.mxu1 }
0x1edd   :  { %v2138_v11 = vsel %vm341_vm5, %v2137_v57, 0.0 }
0x1ede   :  { %2139 = vadd.xlane.f32.xlu0 %v2138_v11 }
0x1f67   :  { %v2140_v55 = vpop.xlane.xlu0 %2139 }
0x1f68   :  { %v2141_v14 = vmul.f32 0.03125, %v2140_v55 }
0x1f6a   :  { %v2142_v24 = vsub.f32 %v2137_v57, %v2141_v14 }
0x1f6c   :  { %v2143_v25 = vmul.f32 %v2142_v24, %v2142_v24 }
0x1f6e   :  { %v2144_v53 = vsel %vm341_vm5, %v2143_v25, 0.0 }
0x1f6f   :  { %2145 = vadd.xlane.f32.xlu1 %v2144_v53 }
0x1ff8   :  { %v2146_v36 = vpop.xlane.xlu1 %2145 }
0x1ff9   :  { %v2147_v62 = vmul.f32 0.03125, %v2146_v36 }
0x1ffb   :  { %v2148_v43 = vadd.f32 1e-05, %v2147_v62  ;;  %v1800_v62 = vadd.f32 %v4894_v48, %v4611_v12 }
0x1ffd   :  { %4067 = vrsqrt.f32 %v2148_v43  ;;  %v1802_v43 = vand.u32 2147483647, %v1800_v62 }
0x200a   :  { %v4068_v6 = vpop.eup %4067 }
0x200b   :  { %v2150_v63 = vmul.f32 %v4068_v6, %v2142_v24  ;;  %v1803_v6 = vsub.f32 0.0, %v1802_v43 }
0x200d   :  { %v2151_v61 = vmul.f32 %v4975_v13, %v2150_v63  ;;  %v1804_v63 = vmul.f32 1.442695, %v1803_v6 }
0x200f   :  { %v2152_v60 = vadd.f32 %v4978_v41, %v2151_v61 }
0x2011   :  { %3850 = vmatmul.mubr.msk.f32.vlgmr.msra.gmra.mxu1 %vm180_vm4, %v2152_v60 }
0x2012   :  { %3872 = vmatpush3.msra.mxu1 %v4572_v37  ;;  %3887 = vmatprep.mubr.msk.f32.mxu1 %vm4241_vm0, %v5204_v17 }
0x2013   :  { %3873 = vmatprep.subr.mxu1 %v5204_v17 }
0x2014   :  { %3874 = vmatpush3.msra.mxu1 %v5215_v10  ;;  %v5000_v10 = vld [vmem:[#allocation7 + $0xc] sm:$0x1] }
0x2015   :  { %3875 = vmatprep.subr.mxu1 %v5204_v17 }
0x2016   :  { %3876 = vmatpush3.msra.mxu1 %v5216_v27 }
0x2017   :  { %3877 = vmatprep.subr.mxu1 %v5204_v17 }
0x2018   :  { %3878 = vmatpush3.msra.mxu1 %v5217_v35 }
0x2019   :  { %3879 = vmatprep.subr.mxu1 %v5204_v17 }
0x201a   :  { %3880 = vmatpush3.msra.mxu1 %v5218_v38 }
0x201b   :  { %3881 = vmatprep.subr.mxu1 %v5204_v17 }
0x201c   :  { %3882 = vmatpush3.msra.mxu1 %v5219_v32  ;;  %v4125_v32 = vld [vmem:[#allocation6] sm:$0xff] }
0x201d   :  { %3883 = vmatprep.subr.mxu1 %v5204_v17 }
0x201e   :  { %3884 = vmatpush3.msra.mxu1 %v5220_v34 }
0x201f   :  { %3885 = vmatprep.subr.mxu1 %v5204_v17 }
0x2020   :  { %3886 = vmatpush3.msra.mxu1 %v5221_v28  ;;  %v5023_v28 = vld [vmem:[#allocation7 + $0xd] sm:$0x1] }
0x2021   :  { %3911 = vmatprep.subr.mxu1 %v5204_v17 }
0x20d1   :  { %v2222_v37 = vpop.f32.mrf.mxu1 }
0x20d2   :  { %v2226_v27 = vadd.f32 %v5000_v10, %v2222_v37 }
0x20d3   :  { %v3851_v35 = vpop.f32.mrf.mxu1 }
0x20d4   :  { %v2227_v38 = vmax.f32 %v2226_v27, 0.0  ;;  %v1801_v35 = vmax.f32 %v1800_v62, 0.0 }
0x20d6   :  { %3869 = vmatmul.mubr.msk.f32.vlgmr.msra.gmra.mxu0 %vm445_vm6, %v2227_v38 }
0x20d7   :  { %3891 = vmatpush3.msra.mxu0 %v4762_v50  ;;  %3908 = vmatprep.mubr.msk.f32.mxu0 %vm4241_vm0, %v5204_v17 }
0x20d8   :  { %3892 = vmatprep.subr.mxu0 %v5204_v17 }
0x20d9   :  { %3893 = vmatpush3.msra.mxu0 %v4768_v51 }
0x20da   :  { %3894 = vmatprep.subr.mxu0 %v5204_v17 }
0x20db   :  { %3895 = vmatpush3.msra.mxu0 %v4772_v1 }
0x20dc   :  { %3896 = vmatprep.subr.mxu0 %v5204_v17 }
0x20dd   :  { %3897 = vmatpush3.msra.mxu0 %v4776_v23 }
0x20de   :  { %3898 = vmatprep.subr.mxu0 %v5204_v17 }
0x20df   :  { %3899 = vmatpush3.msra.mxu0 %v4780_v8 }
0x20e0   :  { %3900 = vmatprep.subr.mxu0 %v5204_v17 }
0x20e1   :  { %3901 = vmatpush3.msra.mxu0 %v4784_v59 }
0x20e2   :  { %3902 = vmatprep.subr.mxu0 %v5204_v17 }
0x20e3   :  { %3903 = vmatpush3.msra.mxu0 %v4788_v9 }
0x20e4   :  { %3904 = vmatprep.subr.mxu0 %v5204_v17 }
0x20e5   :  { %3905 = vmatpush3.msra.mxu0 %v4792_v5 }
0x20e6   :  { %3906 = vmatprep.subr.mxu0 %v5204_v17 }
0x20e7   :  { %3907 = vmatpush3.msra.mxu0 %v4125_v32 }
0x20e8   :  { %3933 = vmatprep.subr.mxu0 %v5204_v17 }
0x2196   :  { %v2297_v34 = vpop.f32.mrf.mxu0 }
0x2197   :  { %v2301_v50 = vadd.f32 %v5023_v28, %v2297_v34 }
0x2198   :  { %v3870_v51 = vpop.f32.mrf.mxu0 }
0x2199   :  { %v2302_v1 = vadd.f32 %v2301_v50, %v2152_v60 }
0x219b   :  { %v2303_v23 = vsel %vm341_vm5, %v2302_v1, 0.0 }
0x219c   :  { %2304 = vadd.xlane.f32.xlu0 %v2303_v23 }
0x2225   :  { %v2305_v8 = vpop.xlane.xlu0 %2304 }
0x2226   :  { %v2306_v59 = vmul.f32 0.03125, %v2305_v8 }
0x2228   :  { %v2307_v9 = vsub.f32 %v2302_v1, %v2306_v59  ;;  %v4130_v1 = vld [vmem:[#allocation6 + $0x88] sm:$0xff] }
0x222a   :  { %v2308_v5 = vmul.f32 %v2307_v9, %v2307_v9 }
0x222c   :  { %v2309_v57 = vsel %vm341_vm5, %v2308_v5, 0.0 }
0x222d   :  { %2310 = vadd.xlane.f32.xlu1 %v2309_v57 }
0x22b6   :  { %v2311_v11 = vpop.xlane.xlu1 %2310 }
0x22b7   :  { %v2312_v55 = vmul.f32 0.03125, %v2311_v11 }
0x22b9   :  { %v2313_v14 = vadd.f32 1e-05, %v2312_v55 }
0x22bb   :  { %4069 = vrsqrt.f32 %v2313_v14 }
0x22bc   :  { %4071 = vpow2.f32 %v1804_v63 }
0x22c8   :  { %v4070_v24 = vpop.eup %4069 }
0x22c9   :  { %v2315_v25 = vmul.f32 %v4070_v24, %v2307_v9  ;;  %v4072_v61 = vpop.eup %4071 }
0x22ca   :  { %v1806_v60 = vadd.f32 1.0, %v4072_v61 }
0x22cb   :  { %v2316_v53 = vmul.f32 %v2315_v25, %v4604_v0 }
0x22cc   :  { %4073 = vlog2.f32 %v1806_v60 }
0x22cd   :  { %v2317_v36 = vadd.f32 %v2316_v53, %v5225_v49  ;;  %v2399_v49 = vstv %s3233_s9 }
0x22cf   :  { %2319 = vrot.lane.b32.xlu0 %v2317_v36, %s4243_s5 }
0x22d9   :  { %v4074_v37 = vpop.eup %4073 }
0x22da   :  { %v1808_v27 = vmul.f32 0.6931472, %v4074_v37 }
0x22dc   :  { %v1809_v38 = vadd.f32 %v1808_v27, %v1801_v35  ;;  %v4134_v27 = vld [vmem:[#allocation6 + $0x100] sm:$0xff]  ;;  %v4135_v35 = vld [vmem:[#allocation6 + $0xf8] sm:$0xff] }
0x2341   :  { %v2320_v32 = vpop.permute.xlu0 %2319 }
0x2342   :  { %v2322_v0 = vsel %vm180_vm4, %v1809_v38, %v2320_v32  ;;  %v4136_v38 = vld [vmem:[#allocation6 + $0xf0] sm:$0xff] }
0x2343   :  { %3888 = vmatmul.mubr.msk.f32.vlgmr.msra.gmra.mxu1 %vm445_vm6, %v2322_v0 }
0x2344   :  { %3912 = vmatpush3.msra.mxu1 %v4808_v22  ;;  %3919 = vmatprep.mubr.msk.f32.mxu1 %vm4241_vm0, %v5204_v17 }
0x2345   :  { %3913 = vmatprep.subr.mxu1 %v5204_v17 }
0x2346   :  { %3914 = vmatpush3.msra.mxu1 %v4814_v26  ;;  %v2400_v26 = vmul.f32 %v4301_v7, %v2399_v49  ;;  %v4129_v7 = vld [vmem:[#allocation6 + $0x90] sm:$0xff]  ;;  %v4138_v49 = vld [vmem:[#allocation6 + $0x160] sm:$0xff] }
0x2347   :  { %3915 = vmatprep.subr.mxu1 %v5204_v17 }
0x2348   :  { %3916 = vmatpush3.msra.mxu1 %v4818_v4 }
0x2349   :  { %3917 = vmatprep.subr.mxu1 %v5204_v17 }
0x234a   :  { %3918 = vmatpush3.msra.mxu1 %v4822_v29  ;;  %v4127_v29 = vld [vmem:[#allocation6 + $0xa0] sm:$0xff] }
0x234b   :  { %3922 = vmatprep.subr.mxu1 %v5204_v17 }
0x2403   :  { %v2392_v12 = vpop.f32.mrf.mxu1 }
0x2404   :  { %v2393_v22 = vadd.f32 %v2392_v12, %v4628_v2  ;;  %v4128_v2 = vld [vmem:[#allocation6 + $0x98] sm:$0xff] }
0x2405   :  { %v3889_v48 = vpop.f32.mrf.mxu1 }
0x2406   :  { %v2396_v34 = vmul.f32 %v2393_v22, %v4630_v31  ;;  %v4139_v22 = vld [vmem:[#allocation6 + $0x158] sm:$0xff]  ;;  %v4140_v48 = vld [vmem:[#allocation6 + $0x150] sm:$0xff] }
0x2408   :  { %v5049_v50 = vadd.f32 %v2396_v34, %v4830_v3  ;;  %v4142_v34 = vld [vmem:[#allocation6 + $0x140] sm:$0xff] }
0x240a   :  { %v2401_v4 = vadd.f32 %v2400_v26, %v5049_v50  ;;  %v4143_v26 = vld [vmem:[#allocation6 + $0x138] sm:$0xff] }
0x240c   :  { %v2402_v51 = vadd.f32 %v4325_v15, %v2401_v4  ;;  %v4144_v4 = vld [vmem:[#allocation6 + $0x130] sm:$0xff] }
0x240e   :  { %3909 = vmatmul.mubr.msk.f32.vlgmr.msra.gmra.mxu0 %vm98_vm3, %v2402_v51  ;;  %v4145_v51 = vld [vmem:[#allocation6 + $0x128] sm:$0xff] }
0x240f   :  { %3934 = vmatpush3.msra.mxu0 %v4127_v29  ;;  %3941 = vmatprep.mubr.msk.f32.mxu0 %vm4241_vm0, %v5204_v17 }
0x2410   :  { %3935 = vmatprep.subr.mxu0 %v5204_v17 }
0x2411   :  { %3936 = vmatpush3.msra.mxu0 %v4128_v2 }
0x2412   :  { %3937 = vmatprep.subr.mxu0 %v5204_v17 }
0x2413   :  { %3938 = vmatpush3.msra.mxu0 %v4129_v7 }
0x2414   :  { %3939 = vmatprep.subr.mxu0 %v5204_v17 }
0x2415   :  { %3940 = vmatpush3.msra.mxu0 %v4130_v1 }
0x2416   :  { %3963 = vmatprep.subr.mxu0 %v5204_v17 }
0x24ce   :  { %v2472_v15 = vpop.f32.mrf.mxu0 }
0x24cf   :  { %4075 = vtanh.f32 %v2472_v15 }
0x24d0   :  { %v3910_v23 = vpop.f32.mrf.mxu0 }
0x24dc   :  { %v4076_v8 = vpop.eup %4075 }
0x24dd   :  { %2478 = vrot.lane.b32.xlu1 %v4076_v8, %s4242_s30 }
0x254f   :  { %v2479_v59 = vpop.permute.xlu1 %2478 }
0x2550   :  { %3920 = vmatmul.mubr.msk.f32.vlgmr.msra.gmra.mxu1 %vm180_vm4, %v2479_v59 }
0x2551   :  { %3923 = vmatpush3.msra.mxu1 %v4847_v44  ;;  %3930 = vmatprep.mubr.msk.f32.mxu1 %vm4241_vm0, %v5204_v17  ;;  %v5229_v44 = vld [vmem:[#allocation16_spill] sm:$0xff] }
0x2552   :  { %3924 = vmatprep.subr.mxu1 %v5204_v17 }
0x2553   :  { %3925 = vmatpush3.msra.mxu1 %v4853_v45  ;;  %v5230_v45 = vld [vmem:[#allocation15_spill] sm:$0xff] }
0x2554   :  { %3926 = vmatprep.subr.mxu1 %v5204_v17 }
0x2555   :  { %3927 = vmatpush3.msra.mxu1 %v4857_v46  ;;  %v5231_v46 = vld [vmem:[#allocation19_spill] sm:$0xff] }
0x2556   :  { %3928 = vmatprep.subr.mxu1 %v5204_v17 }
0x2557   :  { %3929 = vmatpush3.msra.mxu1 %v4861_v54  ;;  %v4131_v54 = vld [vmem:[#allocation6 + $0xb8] sm:$0xff] }
0x2558   :  { %3931 = vmatmul.mubr.msk.f32.vlgmr.msra.gmra.mxu1 %vm180_vm4, %v2472_v15  ;;  %3944 = vmatprep.subr.mxu1 %v5204_v17 }
0x2559   :  { %3945 = vmatpush3.msra.mxu1 %v4866_v56  ;;  %3960 = vmatprep.mubr.msk.f32.mxu1 %vm4241_vm0, %v5204_v17  ;;  %v4132_v56 = vld [vmem:[#allocation6 + $0xb0] sm:$0xff] }
0x255a   :  { %3946 = vmatprep.subr.mxu1 %v5204_v17 }
0x255b   :  { %3947 = vmatpush3.msra.mxu1 %v4872_v58  ;;  %v4133_v58 = vld [vmem:[#allocation6 + $0xa8] sm:$0xff] }
0x255c   :  { %3948 = vmatprep.subr.mxu1 %v5204_v17 }
0x255d   :  { %3949 = vmatpush3.msra.mxu1 %v5229_v44 }
0x255e   :  { %3950 = vmatprep.subr.mxu1 %v5204_v17 }
0x255f   :  { %3951 = vmatpush3.msra.mxu1 %v5230_v45 }
0x2560   :  { %3952 = vmatprep.subr.mxu1 %v5204_v17 }
0x2561   :  { %3953 = vmatpush3.msra.mxu1 %v5231_v46 }
0x2562   :  { %3954 = vmatprep.subr.mxu1 %v5204_v17 }
0x2563   :  { %3955 = vmatpush3.msra.mxu1 %v4131_v54 }
0x2564   :  { %3956 = vmatprep.subr.mxu1 %v5204_v17 }
0x2565   :  { %3957 = vmatpush3.msra.mxu1 %v4132_v56 }
0x2566   :  { %3958 = vmatprep.subr.mxu1 %v5204_v17 }
0x2567   :  { %3959 = vmatpush3.msra.mxu1 %v4133_v58 }
0x2568   :  { %3985 = vmatprep.subr.mxu1 %v5204_v17 }
0x2610   :  { %v5088_v9 = vpop.f32.mrf.mxu1 }
0x2612   :  { %v3921_v5 = vpop.f32.mrf.mxu1 }
0x2618   :  { %v2631_v57 = vpop.f32.mrf.mxu1 }
0x2619   :  { %v2635_v11 = vadd.f32 %v4896_v19, %v2631_v57 }
0x261a   :  { %v3932_v55 = vpop.f32.mrf.mxu1 }
0x261b   :  { %v2636_v14 = vsel %vm341_vm5, %v2635_v11, 0.0 }
0x261c   :  { %2637 = vadd.xlane.f32.xlu1 %v2636_v14 }
0x26a5   :  { %v2638_v24 = vpop.xlane.xlu1 %2637 }
0x26a6   :  { %v2639_v25 = vmul.f32 0.03125, %v2638_v24 }
0x26a8   :  { %v2640_v53 = vsub.f32 %v2635_v11, %v2639_v25 }
0x26aa   :  { %v2641_v36 = vmul.f32 %v2640_v53, %v2640_v53 }
0x26ac   :  { %v2642_v62 = vsel %vm341_vm5, %v2641_v36, 0.0 }
0x26ad   :  { %2643 = vadd.xlane.f32.xlu0 %v2642_v62 }
0x2736   :  { %v2644_v43 = vpop.xlane.xlu0 %2643 }
0x2737   :  { %v2645_v6 = vmul.f32 0.03125, %v2644_v43 }
0x2739   :  { %v2646_v63 = vadd.f32 1e-05, %v2645_v6  ;;  %v4146_v6 = vld [vmem:[#allocation6 + $0x1a0] sm:$0xff] }
0x273b   :  { %4077 = vrsqrt.f32 %v2646_v63  ;;  %v4147_v63 = vld [vmem:[#allocation6 + $0x198] sm:$0xff] }
0x2748   :  { %v4078_v61 = vpop.eup %4077 }
0x2749   :  { %v2648_v60 = vmul.f32 %v4078_v61, %v2640_v53  ;;  %v4148_v61 = vld [vmem:[#allocation6 + $0x190] sm:$0xff] }
0x274b   :  { %v2649_v37 = vmul.f32 %v4901_v21, %v2648_v60  ;;  %v4137_v21 = vld [vmem:[#allocation6 + $0xe8] sm:$0xff]  ;;  %v4151_v60 = vld [vmem:[#allocation6 + $0x178] sm:$0xff] }
0x274d   :  { %v2650_v19 = vadd.f32 %v4904_v18, %v2649_v37  ;;  %v4152_v37 = vld [vmem:[#allocation6 + $0x170] sm:$0xff] }
0x274f   :  { %3942 = vmatmul.mubr.msk.f32.vlgmr.msra.gmra.mxu0 %vm180_vm4, %v2650_v19 }
0x2750   :  { %3964 = vmatpush3.msra.mxu0 %v4134_v27  ;;  %3971 = vmatprep.mubr.msk.f32.mxu0 %vm4241_vm0, %v5204_v17 }
0x2751   :  { %3965 = vmatprep.subr.mxu0 %v5204_v17 }
0x2752   :  { %3966 = vmatpush3.msra.mxu0 %v4135_v35 }
0x2753   :  { %3967 = vmatprep.subr.mxu0 %v5204_v17 }
0x2754   :  { %3968 = vmatpush3.msra.mxu0 %v4136_v38 }
0x2755   :  { %3969 = vmatprep.subr.mxu0 %v5204_v17 }
0x2756   :  { %3970 = vmatpush3.msra.mxu0 %v4137_v21 }
0x2757   :  { %3974 = vmatprep.subr.mxu0 %v5204_v17 }
0x280f   :  { %v2720_v18 = vpop.f32.mrf.mxu0 }
0x2810   :  { %v2724_v32 = vadd.f32 %v4918_v30, %v2720_v18  ;;  %v4141_v30 = vld [vmem:[#allocation6 + $0x148] sm:$0xff] }
0x2811   :  { %v3943_v0 = vpop.f32.mrf.mxu0 }
0x2812   :  { %v2725_v12 = vmax.f32 %v2724_v32, 0.0 }
0x2814   :  { %3961 = vmatmul.mubr.msk.f32.vlgmr.msra.gmra.mxu1 %vm445_vm6, %v2725_v12 }
0x2815   :  { %3986 = vmatpush3.msra.mxu1 %v4138_v49  ;;  %4001 = vmatprep.mubr.msk.f32.mxu1 %vm4241_vm0, %v5204_v17 }
0x2816   :  { %3987 = vmatprep.subr.mxu1 %v5204_v17 }
0x2817   :  { %3988 = vmatpush3.msra.mxu1 %v4139_v22 }
0x2818   :  { %3989 = vmatprep.subr.mxu1 %v5204_v17 }
0x2819   :  { %3990 = vmatpush3.msra.mxu1 %v4140_v48 }
0x281a   :  { %3991 = vmatprep.subr.mxu1 %v5204_v17 }
0x281b   :  { %3992 = vmatpush3.msra.mxu1 %v4141_v30 }
0x281c   :  { %3993 = vmatprep.subr.mxu1 %v5204_v17 }
0x281d   :  { %3994 = vmatpush3.msra.mxu1 %v4142_v34 }
0x281e   :  { %3995 = vmatprep.subr.mxu1 %v5204_v17 }
0x281f   :  { %3996 = vmatpush3.msra.mxu1 %v4143_v26 }
0x2820   :  { %3997 = vmatprep.subr.mxu1 %v5204_v17 }
0x2821   :  { %3998 = vmatpush3.msra.mxu1 %v4144_v4 }
0x2822   :  { %3999 = vmatprep.subr.mxu1 %v5204_v17 }
0x2823   :  { %4000 = vmatpush3.msra.mxu1 %v4145_v51 }
0x28d4   :  { %v2795_v29 = vpop.f32.mrf.mxu1 }
0x28d5   :  { %v2799_v2 = vadd.f32 %v4940_v42, %v2795_v29 }
0x28d6   :  { %v3962_v7 = vpop.f32.mrf.mxu1 }
0x28d7   :  { %v2800_v1 = vadd.f32 %v2799_v2, %v2650_v19  ;;  %v4153_v19 = vld [vmem:[#allocation6 + $0x168] sm:$0xff]  ;;  %v4154_v2 = vld [vmem:[#allocation7 + $0xe] sm:$0x1]  ;;  %v4155_v7 = vld [vmem:[#allocation7 + $0xf] sm:$0x1] }
0x28d9   :  { %v2801_v15 = vsel %vm341_vm5, %v2800_v1, 0.0 }
0x28da   :  { %2802 = vadd.xlane.f32.xlu0 %v2801_v15  ;;  %v4156_v15 = vld [vmem:[#allocation7 + $0x1] sm:$0x1] }
0x2963   :  { %v2803_v23 = vpop.xlane.xlu0 %2802 }
0x2964   :  { %v2804_v8 = vmul.f32 0.03125, %v2803_v23  ;;  %v2552_v23 = vadd.f32 %v4156_v15, %v5088_v9 }
0x2966   :  { %v2805_v59 = vsub.f32 %v2800_v1, %v2804_v8  ;;  %v2554_v8 = vand.u32 2147483647, %v2552_v23 }
0x2968   :  { %v2806_v44 = vmul.f32 %v2805_v59, %v2805_v59 }
0x296a   :  { %v2807_v45 = vsel %vm341_vm5, %v2806_v44, 0.0 }
0x296b   :  { %2808 = vadd.xlane.f32.xlu1 %v2807_v45 }
0x29f4   :  { %v2809_v46 = vpop.xlane.xlu1 %2808 }
0x29f5   :  { %v2810_v54 = vmul.f32 0.03125, %v2809_v46 }
0x29f7   :  { %v2811_v56 = vadd.f32 1e-05, %v2810_v54 }
0x29f9   :  { %4079 = vrsqrt.f32 %v2811_v56 }
0x2a06   :  { %v4080_v58 = vpop.eup %4079 }
0x2a07   :  { %v2813_v5 = vmul.f32 %v4080_v58, %v2805_v59  ;;  %v2555_v59 = vsub.f32 0.0, %v2554_v8  ;;  %v2553_v58 = vmax.f32 %v2552_v23, 0.0 }
0x2a09   :  { %v2814_v42 = vmul.f32 %v4945_v33, %v2813_v5  ;;  %v2556_v44 = vmul.f32 1.442695, %v2555_v59 }
0x2a0b   :  { %v2815_v57 = vadd.f32 %v4948_v39, %v2814_v42 }
0x2a0d   :  { %3972 = vmatmul.mubr.msk.f32.vlgmr.msra.gmra.mxu0 %vm180_vm4, %v2815_v57 }
0x2a0e   :  { %3975 = vmatpush3.msra.mxu0 %v4952_v16  ;;  %3982 = vmatprep.mubr.msk.f32.mxu0 %vm4241_vm0, %v5204_v17 }
0x2a0f   :  { %3976 = vmatprep.subr.mxu0 %v5204_v17 }
0x2a10   :  { %3977 = vmatpush3.msra.mxu0 %v4958_v40 }
0x2a11   :  { %3978 = vmatprep.subr.mxu0 %v5204_v17 }
0x2a12   :  { %3979 = vmatpush3.msra.mxu0 %v4962_v47 }
0x2a13   :  { %3980 = vmatprep.subr.mxu0 %v5204_v17 }
0x2a14   :  { %3981 = vmatpush3.msra.mxu0 %v4966_v20 }
0x2a15   :  { %4004 = vmatprep.subr.mxu0 %v5204_v17 }
0x2acd   :  { %v2885_v33 = vpop.f32.mrf.mxu0 }
0x2ace   :  { %v2889_v39 = vadd.f32 %v4970_v52, %v2885_v33  ;;  %v5232_v33 = vlaneseq }
0x2acf   :  { %v3973_v16 = vpop.f32.mrf.mxu0 }
0x2ad0   :  { %v2890_v11 = vsel %vm341_vm5, %v2889_v39, 0.0 }
0x2ad1   :  { %2891 = vadd.xlane.f32.xlu0 %v2890_v11  ;;  %v4157_v11 = vld [vmem:[#allocation7] sm:$0x1] }
0x2b5a   :  { %v2892_v55 = vpop.xlane.xlu0 %2891 }
0x2b5b   :  { %v2893_v14 = vmul.f32 0.03125, %v2892_v55 }
0x2b5d   :  { %v2894_v40 = vsub.f32 %v2889_v39, %v2893_v14  ;;  %v3152_v39 = vshrl.u32 %v5232_v33, 7  ;;  %v5233_v14 = vld [vmem:[#allocation27_spill] sm:$0xff] }
0x2b5f   :  { %v2895_v24 = vmul.f32 %v2894_v40, %v2894_v40  ;;  %v3153_v16 = vsub.s32 0, %v3152_v39 }
0x2b61   :  { %v2896_v25 = vsel %vm341_vm5, %v2895_v24, 0.0 }
0x2b62   :  { %2897 = vadd.xlane.f32.xlu1 %v2896_v25  ;;  %v3160_v25 = vrot.slane %v4830_v3, %v3153_v16 }
0x2beb   :  { %v2898_v47 = vpop.xlane.xlu1 %2897 }
0x2bec   :  { %v2899_v53 = vmul.f32 0.03125, %v2898_v47 }
0x2bee   :  { %v2900_v36 = vadd.f32 1e-05, %v2899_v53  ;;  %v3166_v53 = vrot.slane %v5049_v50, %v3153_v16 }
0x2bf0   :  { %4081 = vrsqrt.f32 %v2900_v36 }
0x2bfd   :  { %v4082_v20 = vpop.eup %4081 }
0x2bfe   :  { %v2902_v62 = vmul.f32 %v4082_v20, %v2894_v40  ;;  %v3154_v40 = vrot.slane %v5233_v14, %v3153_v16  ;;  %v4158_v20 = vld [vmem:[%s5166_s1] sm:$0x1] }
0x2c00   :  { %v2903_v43 = vmul.f32 %v4975_v13, %v2902_v62  ;;  %v4149_v13 = vld [vmem:[#allocation6 + $0x188] sm:$0xff]  ;;  %v3175_v62 = vsel %vm3174_vm7, %v4158_v20, %v3154_v40 }
0x2c02   :  { %v2904_v52 = vadd.f32 %v4978_v41, %v2903_v43  ;;  %v4150_v41 = vld [vmem:[#allocation6 + $0x180] sm:$0xff] }
0x2c04   :  { %3983 = vmatmul.mubr.msk.f32.vlgmr.msra.gmra.mxu0 %vm180_vm4, %v2904_v52 }
0x2c05   :  { %4005 = vmatpush3.msra.mxu0 %v4146_v6  ;;  %4020 = vmatprep.mubr.msk.f32.mxu0 %vm4241_vm0, %v5204_v17 }
0x2c06   :  { %4006 = vmatprep.subr.mxu0 %v5204_v17 }
0x2c07   :  { %4007 = vmatpush3.msra.mxu0 %v4147_v63 }
0x2c08   :  { %4008 = vmatprep.subr.mxu0 %v5204_v17 }
0x2c09   :  { %4009 = vmatpush3.msra.mxu0 %v4148_v61 }
0x2c0a   :  { %4010 = vmatprep.subr.mxu0 %v5204_v17 }
0x2c0b   :  { %4011 = vmatpush3.msra.mxu0 %v4149_v13 }
0x2c0c   :  { %4012 = vmatprep.subr.mxu0 %v5204_v17 }
0x2c0d   :  { %4013 = vmatpush3.msra.mxu0 %v4150_v41 }
0x2c0e   :  { %4014 = vmatprep.subr.mxu0 %v5204_v17 }
0x2c0f   :  { %4015 = vmatpush3.msra.mxu0 %v4151_v60 }
0x2c10   :  { %4016 = vmatprep.subr.mxu0 %v5204_v17 }
0x2c11   :  { %4017 = vmatpush3.msra.mxu0 %v4152_v37 }
0x2c12   :  { %4018 = vmatprep.subr.mxu0 %v5204_v17 }
0x2c13   :  { %4019 = vmatpush3.msra.mxu0 %v4153_v19 }
0x2cc4   :  { %v2974_v27 = vpop.f32.mrf.mxu0 }
0x2cc5   :  { %v2978_v35 = vadd.f32 %v5000_v10, %v2974_v27 }
0x2cc6   :  { %v3984_v38 = vpop.f32.mrf.mxu0 }
0x2cc7   :  { %v2979_v21 = vmax.f32 %v2978_v35, 0.0 }
0x2cc9   :  { %4002 = vmatmul.mubr.msk.f32.vlgmr.msra.gmra.mxu1 %vm445_vm6, %v2979_v21 }
0x2d89   :  { %v3049_v18 = vpop.f32.mrf.mxu1 }
0x2d8a   :  { %v3053_v32 = vadd.f32 %v5023_v28, %v3049_v18 }
0x2d8b   :  { %v4003_v0 = vpop.f32.mrf.mxu1 }
0x2d8c   :  { %v3054_v12 = vadd.f32 %v3053_v32, %v2904_v52  ;;  %v3177_v52 = vsel %vm3176_vm8, %v3175_v62, %v3160_v25 }
0x2d8d   :  { %v3179_v3 = vsel %vm3178_vm9, %v3177_v52, %v3166_v53 }
0x2d8e   :  { %v3055_v49 = vsel %vm341_vm5, %v3054_v12, 0.0 }
0x2d8f   :  { %3056 = vadd.xlane.f32.xlu0 %v3055_v49 }
0x2e18   :  { %v3057_v22 = vpop.xlane.xlu0 %3056 }
0x2e19   :  { %v3058_v48 = vmul.f32 0.03125, %v3057_v22 }
0x2e1b   :  { %v3059_v17 = vsub.f32 %v3054_v12, %v3058_v48 }
0x2e1d   :  { %v3060_v30 = vmul.f32 %v3059_v17, %v3059_v17 }
0x2e1f   :  { %v3061_v34 = vsel %vm341_vm5, %v3060_v30, 0.0 }
0x2e20   :  { %3062 = vadd.xlane.f32.xlu1 %v3061_v34 }
0x2ea9   :  { %v3063_v10 = vpop.xlane.xlu1 %3062 }
0x2eaa   :  { %v3064_v26 = vmul.f32 0.03125, %v3063_v10 }
0x2eac   :  { %v3065_v4 = vadd.f32 1e-05, %v3064_v26 }
0x2eae   :  { %4083 = vrsqrt.f32 %v3065_v4 }
0x2eaf   :  { %4085 = vpow2.f32 %v2556_v44 }
0x2ebb   :  { %v4084_v51 = vpop.eup %4083 }
0x2ebc   :  { %v3067_v29 = vmul.f32 %v4084_v51, %v3059_v17  ;;  %v4086_v45 = vpop.eup %4085 }
0x2ebd   :  { %v2558_v46 = vadd.f32 1.0, %v4086_v45 }
0x2ebe   :  { %v3068_v28 = vmul.f32 %v4154_v2, %v3067_v29 }
0x2ebf   :  { %4087 = vlog2.f32 %v2558_v46 }
0x2ec0   :  { %v3069_v1 = vadd.f32 %v4155_v7, %v3068_v28 }
0x2ec2   :  { %3071 = vrot.lane.b32.xlu0 %v3069_v1, %s4243_s5 }
0x2ecc   :  { %v4088_v54 = vpop.eup %4087 }
0x2ecd   :  { %v2560_v56 = vmul.f32 0.6931472, %v4088_v54 }
0x2ecf   :  { %v2561_v5 = vadd.f32 %v2560_v56, %v2553_v58 }
0x2f34   :  { %v3072_v42 = vpop.permute.xlu0 %3071 }
0x2f35   :  { %v3074_v57 = vsel %vm180_vm4, %v2561_v5, %v3072_v42 }
0x2f36   :  { %4021 = vmatmul.mubr.msk.f32.vlgmr.msra.gmra.mxu0 %vm445_vm6, %v3074_v57 }
0x2ff6   :  { %v3144_v9 = vpop.f32.mrf.mxu0 }
0x2ff7   :  { %v3145_v55 = vadd.f32 %v4157_v11, %v3144_v9 }
0x2ff8   :  { %v4022_v24 = vpop.f32.mrf.mxu0 }
0x2ff9   :  { %v3148_v47 = vmul.f32 %v3145_v55, %v4630_v31 }
0x2ffb   :  { %v3149_v36 = vadd.f32 %v3148_v47, %v5049_v50 }
0x2ffd   :  { %v3172_v43 = vrot.slane %v3149_v36, %v3153_v16 }
0x2fff   :  { %v3181_v31 = vsel %vm3180_vm10, %v3179_v3, %v3172_v43 }
0x3000   :  { %v3183_v6 = vsel %vm3182_vm11, %v3181_v31, 0.0 }
0x3001   :  { %3184 = vst [vmem:[#allocation9] sm:$0xff] %v3183_v6 }
0x3002   :  { %4218 = shalt.err (!%p4215_p0)
}
0x3003   :  { %3194 = dma.vmem_to_hbm [thread:$0]  %s3192_s13, 128, %s5169_s4, [#allocation4]  }
0x3004   :  { %4233 = dma.done.wait [#allocation4], 128  }
0x3005   :  { %4234 = vsyncadd [#allocation4], 4294967168 }
0x3006   :  { %3198 = vsyncpa [#allocation3], 1 }
0x3007   :  { %3199 = vsyncpa [#allocation8], 1 }
0x3008   :  { %3200 = vsyncpa [#allocation4], 1 }
0x3009   :  { %3201 = vsyncpa [#allocation5], 1 }

</bundles_post_ra>
